<compile_context>
chip_gen: v7x
topology: tpu7x:2x2x1
jax: 0.10.0
libtpu: 0.0.40
codegen_flags: <defaults>
</compile_context>

<pallas_src>
import functools
import math

import jax
import jax.numpy as jnp
import numpy as np
from jax.experimental import pallas as pl
from jax.experimental.pallas import tpu as pltpu


# --------------------------------------------------------------------------- #
# Pallas kernel: one full encoder layer for one batch tile (Bt sequences).
# --------------------------------------------------------------------------- #
def _encoder_layer_kernel(
    x_ref,                                   # (N, D)  with N = Bt*T, f32
    pb_ref,                                  # (H, T, T) raw relative position bias
    w_qkvg_ref,                              # (D, 3D+2H)  fused qkv+gate weight (md)
    b_qkvg_ref,                              # (1, 3D+2H)  fused bias (f32)
    gc_ref,                                  # (1, H)      gru_rel_pos_const per head
    wo_ref, bo_ref,                          # (D, D) md, (1, D) f32
    ln1_g_ref, ln1_b_ref,                    # (1, D)
    ff_w1_ref, ff_b1_ref,                    # (D, I) md, (1, I)
    ff_w2_ref, ff_b2_ref,                    # (I, D) md, (1, D)
    ln2_g_ref, ln2_b_ref,                    # (1, D)
    out_ref,                                 # (N, D) f32
    *, num_heads: int, seq_len: int, eps: float, matmul_dtype, mm_precision,
):
    md = matmul_dtype
    x = x_ref[...]                           # (N, D) f32
    N, D = x.shape
    H = num_heads
    hd = D // H
    T = seq_len
    Bt = N // T
    G = H * Bt                               # fused (head, batch) attention batch

    # ---- fused QKV + gate projection: one lane-dense matmul (MXU) ----
    qkvg = jnp.dot(x.astype(md), w_qkvg_ref[...],
                   preferred_element_type=jnp.float32,
                   precision=mm_precision) + b_qkvg_ref[...]       # (N, 3D+2H) f32
    q = qkvg[:, 0 * D:1 * D]                                       # (N, D), scaling folded
    k = qkvg[:, 1 * D:2 * D]
    v = qkvg[:, 2 * D:3 * D]

    # ---- gated relative position bias (summed proj folded into the weights) ----
    gate_a = jax.nn.sigmoid(qkvg[:, 3 * D:3 * D + H])              # (N, H) f32
    gate_b = jax.nn.sigmoid(qkvg[:, 3 * D + H:3 * D + 2 * H])      # (N, H) f32
    gate = gate_a * (gate_b * gc_ref[...] - 1.0) + 2.0             # (N, H)

    # ---- head split: minor-dim-preserving transposes; g = h*Bt + b ----
    def heads(t):                            # (N, H*hd) -> (G, T, hd)
        return jnp.transpose(t.reshape(N, H, hd), (1, 0, 2)).reshape(G, T, hd)

    qg, kg, vg = heads(q), heads(k), heads(v)
    gate_g = jnp.transpose(gate.reshape(N, H, 1), (1, 0, 2)).reshape(G, T, 1)
    pb_g = jnp.broadcast_to(pb_ref[...][:, None, :, :], (H, Bt, T, T)).reshape(G, T, T)
    bias = gate_g * pb_g                                           # (G, T, T) f32

    # ---- attention: single batched QK^T + softmax + PV ----
    scores = jnp.einsum("gqd,gkd->gqk", qg.astype(md), kg.astype(md),
                        preferred_element_type=jnp.float32,
                        precision=mm_precision) + bias             # (G, T, T) f32
    m = jnp.max(scores, axis=-1, keepdims=True)
    e = jnp.exp(scores - m)
    denom = jnp.sum(e, axis=-1, keepdims=True)
    p = e * pl.reciprocal(denom, approx=True)                      # f32 probs
    ctx = jnp.einsum("gqk,gkd->gqd", p.astype(md), vg.astype(md),
                     preferred_element_type=jnp.float32,
                     precision=mm_precision)                       # (G, T, hd) f32

    # ---- output projection: one (N, D) x (D, D) matmul (head reduction in MXU) ----
    ctx2 = jnp.transpose(ctx.reshape(H, N, hd), (1, 0, 2)).reshape(N, D)
    attn_out = jnp.dot(ctx2.astype(md), wo_ref[...],
                       preferred_element_type=jnp.float32,
                       precision=mm_precision) + bo_ref[...]       # (N, D)

    # ---- residual + LayerNorm 1 (f32) ----
    h1 = x + attn_out
    mu = jnp.mean(h1, axis=-1, keepdims=True)
    d1 = h1 - mu
    var = jnp.mean(d1 * d1, axis=-1, keepdims=True)
    h1n = d1 * jax.lax.rsqrt(var + eps) * ln1_g_ref[...] + ln1_b_ref[...]

    # ---- feed forward (gelu_new == tanh-approximate GELU) ----
    ff = jnp.dot(h1n.astype(md), ff_w1_ref[...],
                 preferred_element_type=jnp.float32,
                 precision=mm_precision) + ff_b1_ref[...]
    ff = jax.nn.gelu(ff, approximate=True)
    ff = jnp.dot(ff.astype(md), ff_w2_ref[...],
                 preferred_element_type=jnp.float32,
                 precision=mm_precision) + ff_b2_ref[...]

    # ---- residual + final LayerNorm (f32) ----
    h2 = h1n + ff
    mu2 = jnp.mean(h2, axis=-1, keepdims=True)
    d2 = h2 - mu2
    var2 = jnp.mean(d2 * d2, axis=-1, keepdims=True)
    out_ref[...] = d2 * jax.lax.rsqrt(var2 + eps) * ln2_g_ref[...] + ln2_b_ref[...]


# --------------------------------------------------------------------------- #
# Generation-aware scoped VMEM budget (~85% of physical, safe fallback).
# --------------------------------------------------------------------------- #
def _vmem_limit_bytes():
    try:
        cap = int(pltpu.get_tpu_info().vmem_capacity_bytes)
        return max(32 * 1024 * 1024, min(int(cap * 0.85), cap - 8 * 1024 * 1024))
    except Exception:
        return 48 * 1024 * 1024


def _const_index_map(ndim):
    if ndim == 2:
        return lambda i: (0, 0)
    return lambda i: (0, 0, 0)


# --------------------------------------------------------------------------- #
# Wrapper: param re-layout (free XLA work) + pallas_call over batch tiles.
# --------------------------------------------------------------------------- #
def mm_encoder_layer_pallas(x, pos_bias, params, *, eps=1e-5, batch_tile=None,
                            matmul_dtype=jnp.bfloat16, single_buffer_weights=True):
    B, T, D = x.shape
    H = pos_bias.shape[0]
    hd = D // H
    I = params["ff_w1"].shape[1]
    # >= 2 grid steps by default so both v7x TensorCores get work.
    Bt = max(1, B // 2) if batch_tile is None else batch_tile
    assert B % Bt == 0, "batch_tile must divide batch"
    num_steps = B // Bt
    scaling = 1.0 / math.sqrt(hd)
    md = matmul_dtype
    f32 = jnp.float32
    mm_precision = (jax.lax.Precision.HIGHEST
                    if matmul_dtype == jnp.float32 else None)

    # ---- fused QKV + gate weight (D, 3D + 2H); gate (...,2,4).sum(-1) folded ----
    gwa = params["gru_w"][:, 0:4].sum(axis=-1)                       # (hd,)
    gwb = params["gru_w"][:, 4:8].sum(axis=-1)                       # (hd,)
    head_sel = (jnp.arange(D)[:, None] // hd
                == jnp.arange(H)[None, :]).astype(f32)               # (D, H)
    wga = head_sel * jnp.tile(gwa, H)[:, None]                       # (D, H) block-diag
    wgb = head_sel * jnp.tile(gwb, H)[:, None]                       # (D, H)
    bga = params["gru_b"][0, 0:4].sum()
    bgb = params["gru_b"][0, 4:8].sum()

    NQ = 3 * D + 2 * H
    w_qkvg = jnp.concatenate(
        [params["wq"] * scaling, params["wk"], params["wv"], wga, wgb],
        axis=1).astype(md)                                           # (D, NQ)
    b_qkvg = jnp.concatenate(
        [params["bq"][0] * scaling, params["bk"][0], params["bv"][0],
         jnp.full((H,), bga, f32), jnp.full((H,), bgb, f32)]
    ).reshape(1, NQ).astype(f32)

    gc = params["gru_c"].reshape(1, H).astype(f32)
    wo = params["wo"].astype(md)
    bo = params["bo"].astype(f32)
    ff_w1 = params["ff_w1"].astype(md)
    ff_w2 = params["ff_w2"].astype(md)

    x2 = x.reshape(B * T, D).astype(f32)
    pb = pos_bias.astype(f32)

    kernel = functools.partial(_encoder_layer_kernel, num_heads=H, seq_len=T,
                               eps=eps, matmul_dtype=md, mm_precision=mm_precision)

    operands = (x2, pb, w_qkvg, b_qkvg, gc, wo, bo,
                params["ln1_g"].astype(f32), params["ln1_b"].astype(f32),
                ff_w1, params["ff_b1"].astype(f32),
                ff_w2, params["ff_b2"].astype(f32),
                params["ln2_g"].astype(f32), params["ln2_b"].astype(f32))

    def build_in_specs(single_buffer):
        def const_spec(shape):
            imap = _const_index_map(len(shape))
            if single_buffer and hasattr(pl, "Buffered"):
                try:
                    # Grid-invariant operand: keep a single resident copy.
                    return pl.BlockSpec(shape, imap, pipeline_mode=pl.Buffered(1))
                except TypeError:
                    pass
            return pl.BlockSpec(shape, imap)

        return [
            pl.BlockSpec((Bt * T, D), lambda i: (i, 0)),   # x rows (batch tile)
            const_spec((H, T, T)),                         # position bias
            const_spec((D, NQ)), const_spec((1, NQ)),      # fused qkv+gate
            const_spec((1, H)),                            # gru const
            const_spec((D, D)), const_spec((1, D)),        # out proj
            const_spec((1, D)), const_spec((1, D)),        # LN1
            const_spec((D, I)), const_spec((1, I)),        # FF in
            const_spec((I, D)), const_spec((1, D)),        # FF out
            const_spec((1, D)), const_spec((1, D)),        # LN2
        ]

    def run(single_buffer):
        return pl.pallas_call(
            kernel,
            out_shape=jax.ShapeDtypeStruct((B * T, D), jnp.float32),
            grid=(num_steps,),
            in_specs=build_in_specs(single_buffer),
            out_specs=pl.BlockSpec((Bt * T, D), lambda i: (i, 0)),
            compiler_params=pltpu.CompilerParams(
                dimension_semantics=("parallel",),
                vmem_limit_bytes=_vmem_limit_bytes(),
            ),
        )(*operands)

    if single_buffer_weights:
        try:
            out2 = run(True)
        except Exception:
            out2 = run(False)   # fallback if Buffered(1) is unsupported here
    else:
        out2 = run(False)

    return out2.reshape(B, T, D)


# --------------------------------------------------------------------------- #
# Plain-JAX glue: relative-position bucket + embedding gather (integer gather
# has no clean tile pattern; done outside the kernel).
# --------------------------------------------------------------------------- #
def compute_position_bias(rel_embed, seq_len, num_buckets, max_distance):
    context = jnp.arange(seq_len, dtype=jnp.int32)[:, None]
    memory = jnp.arange(seq_len, dtype=jnp.int32)[None, :]
    rel = memory - context
    nb = num_buckets // 2
    buckets = (rel > 0).astype(jnp.int32) * nb
    rel_abs = jnp.abs(rel)
    max_exact = nb // 2
    is_small = rel_abs < max_exact
    safe = jnp.maximum(rel_abs, 1).astype(jnp.float32)  # avoid log(0); unused when small
    rel_large = jnp.log(safe / max_exact) / math.log(max_distance / max_exact)
    rel_large = (max_exact + rel_large * (nb - max_exact)).astype(jnp.int32)
    rel_large = jnp.minimum(rel_large, nb - 1)
    buckets = buckets + jnp.where(is_small, rel_abs, rel_large)
    values = rel_embed[buckets]                           # (T, T, H)
    return jnp.transpose(values, (2, 0, 1))               # (H, T, T)


# --------------------------------------------------------------------------- #
# Pure-JAX (f32) reference for correctness checking.
# --------------------------------------------------------------------------- #
def reference_forward(x, pos_bias, params, eps=1e-5):
    B, T, D = x.shape
    H = pos_bias.shape[0]
    hd = D // H
    scaling = 1.0 / math.sqrt(hd)

    def ln(y, g, b):
        mu = jnp.mean(y, axis=-1, keepdims=True)
        var = jnp.mean((y - mu) ** 2, axis=-1, keepdims=True)
        return (y - mu) * jax.lax.rsqrt(var + eps) * g + b

    q = (x @ params["wq"] + params["bq"][0]).reshape(B, T, H, hd).transpose(0, 2, 1, 3)
    k = (x @ params["wk"] + params["bk"][0]).reshape(B, T, H, hd).transpose(0, 2, 1, 3)
    v = (x @ params["wv"] + params["bv"][0]).reshape(B, T, H, hd).transpose(0, 2, 1, 3)

    xh = x.reshape(B, T, H, hd).transpose(0, 2, 1, 3)                       # (B,H,T,hd)
    proj = (xh @ params["gru_w"] + params["gru_b"][0]).reshape(B, H, T, 2, 4).sum(-1)
    gates = jax.nn.sigmoid(proj)
    gate_a, gate_b = gates[..., 0:1], gates[..., 1:2]
    gate = gate_a * (gate_b * params["gru_c"][0][None, :, None, None] - 1.0) + 2.0
    bias = gate * pos_bias[None]                                            # (B,H,T,T)

    scores = jnp.einsum("bhqd,bhkd->bhqk", q * scaling, k) + bias
    p = jax.nn.softmax(scores, axis=-1)
    ctx = jnp.einsum("bhqk,bhkd->bhqd", p, v).transpose(0, 2, 1, 3).reshape(B, T, D)
    attn_out = ctx @ params["wo"] + params["bo"][0]

    h1n = ln(x + attn_out, params["ln1_g"][0], params["ln1_b"][0])
    ff = jax.nn.gelu(h1n @ params["ff_w1"] + params["ff_b1"][0], approximate=True)
    ff = ff @ params["ff_w2"] + params["ff_b2"][0]
    return ln(h1n + ff, params["ln2_g"][0], params["ln2_b"][0])


# --------------------------------------------------------------------------- #
if __name__ == "__main__":
    # config: hidden_size=32, num_attention_heads=4, intermediate_size=64,
    #         num_buckets=320, max_bucket_distance=800, layer_norm_eps=1e-5,
    #         hidden_act="gelu_new", all dropouts inactive (eval mode).
    B, T, D, H, I = 2, 8, 32, 4, 64
    NUM_BUCKETS, MAX_DIST, EPS = 320, 800, 1e-5
    hd = D // H

    key = jax.random.PRNGKey(0)
    ks = jax.random.split(key, 20)
    f = lambda k, shape, s=0.1: (s * jax.random.normal(k, shape)).astype(jnp.float32)

    params = {
        "wq": f(ks[0], (D, D)),  "bq": f(ks[1], (1, D)),
        "wk": f(ks[2], (D, D)),  "bk": f(ks[3], (1, D)),
        "wv": f(ks[4], (D, D)),  "bv": f(ks[5], (1, D)),
        "wo": f(ks[6], (D, D)),  "bo": f(ks[7], (1, D)),
        "gru_w": f(ks[8], (hd, 8)), "gru_b": f(ks[9], (1, 8)),
        "gru_c": jnp.ones((1, H), jnp.float32),          # nn.Parameter(torch.ones(...))
        "ln1_g": jnp.ones((1, D), jnp.float32), "ln1_b": jnp.zeros((1, D), jnp.float32),
        "ff_w1": f(ks[10], (D, I)), "ff_b1": f(ks[11], (1, I)),
        "ff_w2": f(ks[12], (I, D)), "ff_b2": f(ks[13], (1, D)),
        "ln2_g": jnp.ones((1, D), jnp.float32), "ln2_b": jnp.zeros((1, D), jnp.float32),
    }
    rel_attn_embed = f(ks[14], (NUM_BUCKETS, H))
    x = jax.random.normal(ks[15], (B, T, D), jnp.float32)

    # glue: relative position bias (shared across batch), shape (H, T, T)
    pos_bias = compute_position_bias(rel_attn_embed, T, NUM_BUCKETS, MAX_DIST)

    # default perf path: bf16 MXU operands, f32 accumulation
    out_bf16 = jax.block_until_ready(mm_encoder_layer_pallas(x, pos_bias, params, eps=EPS))
    # strict path: f32 matmuls (HIGHEST precision) for a tight reference check
    out_f32 = jax.block_until_ready(
        mm_encoder_layer_pallas(x, pos_bias, params, eps=EPS,
                                matmul_dtype=jnp.float32))

    # module also returns position_bias (bsz*num_heads, tgt, src)
    position_bias_out = jnp.broadcast_to(pos_bias[None], (B, H, T, T)).reshape(B * H, T, T)
    _ = jax.block_until_ready(position_bias_out)

    ref = jax.block_until_ready(reference_forward(x, pos_bias, params, eps=EPS))
    # f32 kernel: only approx-reciprocal softmax deviates from the reference.
    np.testing.assert_allclose(np.asarray(out_f32), np.asarray(ref), rtol=5e-3, atol=5e-3)
    # bf16-operand kernel: ~1e-2-level deviation from the strict f32 reference expected.
    np.testing.assert_allclose(np.asarray(out_bf16), np.asarray(ref), rtol=3e-2, atol=3e-2)

    print("KERNEL_OK")
</pallas_src>

<mosaic_0001>
module attributes {stable_mosaic.version = 11 : i64} {
  func.func @_encoder_layer_kernel(%arg0: i32, %arg1: memref<8x32xf32, #tpu.memory_space<vmem>>, %arg2: memref<4x8x8xf32, #tpu.memory_space<vmem>>, %arg3: memref<32x104xbf16, #tpu.memory_space<vmem>>, %arg4: memref<1x104xf32, #tpu.memory_space<vmem>>, %arg5: memref<1x4xf32, #tpu.memory_space<vmem>>, %arg6: memref<32x32xbf16, #tpu.memory_space<vmem>>, %arg7: memref<1x32xf32, #tpu.memory_space<vmem>>, %arg8: memref<1x32xf32, #tpu.memory_space<vmem>>, %arg9: memref<1x32xf32, #tpu.memory_space<vmem>>, %arg10: memref<32x64xbf16, #tpu.memory_space<vmem>>, %arg11: memref<1x64xf32, #tpu.memory_space<vmem>>, %arg12: memref<64x32xbf16, #tpu.memory_space<vmem>>, %arg13: memref<1x32xf32, #tpu.memory_space<vmem>>, %arg14: memref<1x32xf32, #tpu.memory_space<vmem>>, %arg15: memref<1x32xf32, #tpu.memory_space<vmem>>, %arg16: memref<8x32xf32, #tpu.memory_space<vmem>>) attributes {dimension_semantics = [#tpu.dimension_semantics<parallel>], iteration_bounds = array<i64: 2>, scalar_prefetch = 0 : i64, scratch_operands = 0 : i64, tpu.core_type = #tpu.core_type<tc>, window_params = [{transform_indices = @transform_0, window_bounds = array<i64: 8, 32>}, {pipeline_mode = #tpu.pipeline_mode<synchronous>, transform_indices = @transform_1, window_bounds = array<i64: 4, 8, 8>}, {pipeline_mode = #tpu.pipeline_mode<synchronous>, transform_indices = @transform_2, window_bounds = array<i64: 32, 104>}, {pipeline_mode = #tpu.pipeline_mode<synchronous>, transform_indices = @transform_3, window_bounds = array<i64: 1, 104>}, {pipeline_mode = #tpu.pipeline_mode<synchronous>, transform_indices = @transform_4, window_bounds = array<i64: 1, 4>}, {pipeline_mode = #tpu.pipeline_mode<synchronous>, transform_indices = @transform_5, window_bounds = array<i64: 32, 32>}, {pipeline_mode = #tpu.pipeline_mode<synchronous>, transform_indices = @transform_6, window_bounds = array<i64: 1, 32>}, {pipeline_mode = #tpu.pipeline_mode<synchronous>, transform_indices = @transform_7, window_bounds = array<i64: 1, 32>}, {pipeline_mode = #tpu.pipeline_mode<synchronous>, transform_indices = @transform_8, window_bounds = array<i64: 1, 32>}, {pipeline_mode = #tpu.pipeline_mode<synchronous>, transform_indices = @transform_9, window_bounds = array<i64: 32, 64>}, {pipeline_mode = #tpu.pipeline_mode<synchronous>, transform_indices = @transform_10, window_bounds = array<i64: 1, 64>}, {pipeline_mode = #tpu.pipeline_mode<synchronous>, transform_indices = @transform_11, window_bounds = array<i64: 64, 32>}, {pipeline_mode = #tpu.pipeline_mode<synchronous>, transform_indices = @transform_12, window_bounds = array<i64: 1, 32>}, {pipeline_mode = #tpu.pipeline_mode<synchronous>, transform_indices = @transform_13, window_bounds = array<i64: 1, 32>}, {pipeline_mode = #tpu.pipeline_mode<synchronous>, transform_indices = @transform_14, window_bounds = array<i64: 1, 32>}, {transform_indices = @transform_15, window_bounds = array<i64: 8, 32>}]} {
    %c0 = arith.constant 0 : index
    %c0_0 = arith.constant 0 : index
    %0 = vector.load %arg1[%c0, %c0_0] : memref<8x32xf32, #tpu.memory_space<vmem>>, vector<8x32xf32>
    %1 = arith.truncf %0 : vector<8x32xf32> to vector<8x32xbf16>
    %c0_1 = arith.constant 0 : index
    %c0_2 = arith.constant 0 : index
    %2 = vector.load %arg3[%c0_1, %c0_2] : memref<32x104xbf16, #tpu.memory_space<vmem>>, vector<32x104xbf16>
    %cst = arith.constant dense<0.000000e+00> : vector<8x104xf32>
    %3 = tpu.matmul %1, %2, %cst {dimension_numbers = #tpu.dot_dimension_numbers<[1], [0], [0], [1], [0, 0, 1, 1], [], []>} : vector<8x32xbf16>, vector<32x104xbf16>, vector<8x104xf32> -> vector<8x104xf32>
    %c0_3 = arith.constant 0 : index
    %c0_4 = arith.constant 0 : index
    %4 = vector.load %arg4[%c0_3, %c0_4] : memref<1x104xf32, #tpu.memory_space<vmem>>, vector<1x104xf32>
    %5 = vector.broadcast %4 : vector<1x104xf32> to vector<8x104xf32>
    %6 = arith.addf %3, %5 : vector<8x104xf32>
    %7 = vector.extract_strided_slice %6 {offsets = [0, 0], sizes = [8, 32], strides = [1, 1]} : vector<8x104xf32> to vector<8x32xf32>
    %8 = vector.extract_strided_slice %6 {offsets = [0, 32], sizes = [8, 32], strides = [1, 1]} : vector<8x104xf32> to vector<8x32xf32>
    %9 = vector.extract_strided_slice %6 {offsets = [0, 64], sizes = [8, 32], strides = [1, 1]} : vector<8x104xf32> to vector<8x32xf32>
    %10 = vector.extract_strided_slice %6 {offsets = [0, 96], sizes = [8, 4], strides = [1, 1]} : vector<8x104xf32> to vector<8x4xf32>
    %11 = arith.negf %10 : vector<8x4xf32>
    %12 = math.exp %11 : vector<8x4xf32>
    %cst_5 = arith.constant 1.000000e+00 : f32
    %13 = vector.broadcast %cst_5 : f32 to vector<8x4xf32>
    %14 = arith.addf %13, %12 : vector<8x4xf32>
    %15 = arith.divf %13, %14 : vector<8x4xf32>
    %16 = vector.extract_strided_slice %6 {offsets = [0, 100], sizes = [8, 4], strides = [1, 1]} : vector<8x104xf32> to vector<8x4xf32>
    %17 = arith.negf %16 : vector<8x4xf32>
    %18 = math.exp %17 : vector<8x4xf32>
    %cst_6 = arith.constant 1.000000e+00 : f32
    %19 = vector.broadcast %cst_6 : f32 to vector<8x4xf32>
    %20 = arith.addf %19, %18 : vector<8x4xf32>
    %21 = arith.divf %19, %20 : vector<8x4xf32>
    %c0_7 = arith.constant 0 : index
    %c0_8 = arith.constant 0 : index
    %22 = vector.load %arg5[%c0_7, %c0_8] : memref<1x4xf32, #tpu.memory_space<vmem>>, vector<1x4xf32>
    %23 = vector.broadcast %22 : vector<1x4xf32> to vector<8x4xf32>
    %24 = arith.mulf %21, %23 : vector<8x4xf32>
    %cst_9 = arith.constant 1.000000e+00 : f32
    %25 = vector.broadcast %cst_9 : f32 to vector<8x4xf32>
    %26 = arith.subf %24, %25 : vector<8x4xf32>
    %27 = arith.mulf %15, %26 : vector<8x4xf32>
    %cst_10 = arith.constant 2.000000e+00 : f32
    %28 = vector.broadcast %cst_10 : f32 to vector<8x4xf32>
    %29 = arith.addf %27, %28 : vector<8x4xf32>
    %30 = vector.shape_cast %7 : vector<8x32xf32> to vector<8x4x8xf32>
    %31 = tpu.transpose %30, [1, 0, 2] : vector<8x4x8xf32> -> vector<4x8x8xf32>
    %32 = vector.shape_cast %8 : vector<8x32xf32> to vector<8x4x8xf32>
    %33 = tpu.transpose %32, [1, 0, 2] : vector<8x4x8xf32> -> vector<4x8x8xf32>
    %34 = vector.shape_cast %9 : vector<8x32xf32> to vector<8x4x8xf32>
    %35 = tpu.transpose %34, [1, 0, 2] : vector<8x4x8xf32> -> vector<4x8x8xf32>
    %36 = vector.shape_cast %29 : vector<8x4xf32> to vector<8x4x1xf32>
    %37 = tpu.transpose %36, [1, 0, 2] : vector<8x4x1xf32> -> vector<4x8x1xf32>
    %c0_11 = arith.constant 0 : index
    %c0_12 = arith.constant 0 : index
    %c0_13 = arith.constant 0 : index
    %38 = vector.load %arg2[%c0_11, %c0_12, %c0_13] : memref<4x8x8xf32, #tpu.memory_space<vmem>>, vector<4x8x8xf32>
    %39 = vector.shape_cast %38 : vector<4x8x8xf32> to vector<4x1x8x8xf32>
    %40 = vector.shape_cast %39 : vector<4x1x8x8xf32> to vector<4x8x8xf32>
    %41 = vector.broadcast %37 : vector<4x8x1xf32> to vector<4x8x8xf32>
    %42 = arith.mulf %41, %40 : vector<4x8x8xf32>
    %43 = arith.truncf %31 : vector<4x8x8xf32> to vector<4x8x8xbf16>
    %44 = arith.truncf %33 : vector<4x8x8xf32> to vector<4x8x8xbf16>
    "tpu.trace_start"() <{level = 10 : i32, message = "gqd,gkd->gqk"}> : () -> ()
    %cst_14 = arith.constant dense<0.000000e+00> : vector<4x8x8xf32>
    %45 = tpu.matmul %43, %44, %cst_14 {dimension_numbers = #tpu.dot_dimension_numbers<[2], [2], [1], [1], [0, 0, 0, 1, 1, 1], [0], [0]>} : vector<4x8x8xbf16>, vector<4x8x8xbf16>, vector<4x8x8xf32> -> vector<4x8x8xf32>
    "tpu.trace_stop"() : () -> ()
    %46 = arith.addf %45, %42 : vector<4x8x8xf32>
    %cst_15 = arith.constant dense<0xFF800000> : vector<4x8xf32>
    %47 = vector.multi_reduction <maximumf>, %46, %cst_15 [2] : vector<4x8x8xf32> to vector<4x8xf32>
    %48 = vector.shape_cast %47 : vector<4x8xf32> to vector<4x8x1xf32>
    %49 = vector.broadcast %48 : vector<4x8x1xf32> to vector<4x8x8xf32>
    %50 = arith.subf %46, %49 : vector<4x8x8xf32>
    %51 = math.exp %50 : vector<4x8x8xf32>
    %cst_16 = arith.constant dense<0.000000e+00> : vector<4x8xf32>
    %52 = vector.multi_reduction <add>, %51, %cst_16 [2] : vector<4x8x8xf32> to vector<4x8xf32>
    %53 = vector.shape_cast %52 : vector<4x8xf32> to vector<4x8x1xf32>
    %54 = tpu.reciprocal %53 {approx = true} : vector<4x8x1xf32> -> vector<4x8x1xf32>
    %55 = vector.broadcast %54 : vector<4x8x1xf32> to vector<4x8x8xf32>
    %56 = arith.mulf %51, %55 : vector<4x8x8xf32>
    %57 = arith.truncf %56 : vector<4x8x8xf32> to vector<4x8x8xbf16>
    %58 = arith.truncf %35 : vector<4x8x8xf32> to vector<4x8x8xbf16>
    "tpu.trace_start"() <{level = 10 : i32, message = "gqk,gkd->gqd"}> : () -> ()
    %cst_17 = arith.constant dense<0.000000e+00> : vector<4x8x8xf32>
    %59 = tpu.matmul %57, %58, %cst_17 {dimension_numbers = #tpu.dot_dimension_numbers<[2], [1], [1], [2], [0, 0, 0, 1, 1, 2], [0], [0]>} : vector<4x8x8xbf16>, vector<4x8x8xbf16>, vector<4x8x8xf32> -> vector<4x8x8xf32>
    "tpu.trace_stop"() : () -> ()
    %60 = tpu.transpose %59, [1, 0, 2] : vector<4x8x8xf32> -> vector<8x4x8xf32>
    %61 = vector.shape_cast %60 : vector<8x4x8xf32> to vector<8x32xf32>
    %62 = arith.truncf %61 : vector<8x32xf32> to vector<8x32xbf16>
    %c0_18 = arith.constant 0 : index
    %c0_19 = arith.constant 0 : index
    %63 = vector.load %arg6[%c0_18, %c0_19] : memref<32x32xbf16, #tpu.memory_space<vmem>>, vector<32x32xbf16>
    %cst_20 = arith.constant dense<0.000000e+00> : vector<8x32xf32>
    %64 = tpu.matmul %62, %63, %cst_20 {dimension_numbers = #tpu.dot_dimension_numbers<[1], [0], [0], [1], [0, 0, 1, 1], [], []>} : vector<8x32xbf16>, vector<32x32xbf16>, vector<8x32xf32> -> vector<8x32xf32>
    %c0_21 = arith.constant 0 : index
    %c0_22 = arith.constant 0 : index
    %65 = vector.load %arg7[%c0_21, %c0_22] : memref<1x32xf32, #tpu.memory_space<vmem>>, vector<1x32xf32>
    %66 = vector.broadcast %65 : vector<1x32xf32> to vector<8x32xf32>
    %67 = arith.addf %64, %66 : vector<8x32xf32>
    %68 = arith.addf %0, %67 : vector<8x32xf32>
    %cst_23 = arith.constant dense<0.000000e+00> : vector<8xf32>
    %69 = vector.multi_reduction <add>, %68, %cst_23 [1] : vector<8x32xf32> to vector<8xf32>
    %70 = vector.shape_cast %69 : vector<8xf32> to vector<8x1xf32>
    %cst_24 = arith.constant 3.200000e+01 : f32
    %71 = vector.broadcast %cst_24 : f32 to vector<8x1xf32>
    %72 = arith.divf %70, %71 : vector<8x1xf32>
    %73 = vector.broadcast %72 : vector<8x1xf32> to vector<8x32xf32>
    %74 = arith.subf %68, %73 : vector<8x32xf32>
    %75 = arith.mulf %74, %74 : vector<8x32xf32>
    %cst_25 = arith.constant dense<0.000000e+00> : vector<8xf32>
    %76 = vector.multi_reduction <add>, %75, %cst_25 [1] : vector<8x32xf32> to vector<8xf32>
    %77 = vector.shape_cast %76 : vector<8xf32> to vector<8x1xf32>
    %cst_26 = arith.constant 3.200000e+01 : f32
    %78 = vector.broadcast %cst_26 : f32 to vector<8x1xf32>
    %79 = arith.divf %77, %78 : vector<8x1xf32>
    %cst_27 = arith.constant 9.99999974E-6 : f32
    %80 = vector.broadcast %cst_27 : f32 to vector<8x1xf32>
    %81 = arith.addf %79, %80 : vector<8x1xf32>
    %82 = math.rsqrt %81 : vector<8x1xf32>
    %83 = vector.broadcast %82 : vector<8x1xf32> to vector<8x32xf32>
    %84 = arith.mulf %74, %83 : vector<8x32xf32>
    %c0_28 = arith.constant 0 : index
    %c0_29 = arith.constant 0 : index
    %85 = vector.load %arg8[%c0_28, %c0_29] : memref<1x32xf32, #tpu.memory_space<vmem>>, vector<1x32xf32>
    %86 = vector.broadcast %85 : vector<1x32xf32> to vector<8x32xf32>
    %87 = arith.mulf %84, %86 : vector<8x32xf32>
    %c0_30 = arith.constant 0 : index
    %c0_31 = arith.constant 0 : index
    %88 = vector.load %arg9[%c0_30, %c0_31] : memref<1x32xf32, #tpu.memory_space<vmem>>, vector<1x32xf32>
    %89 = vector.broadcast %88 : vector<1x32xf32> to vector<8x32xf32>
    %90 = arith.addf %87, %89 : vector<8x32xf32>
    %91 = arith.truncf %90 : vector<8x32xf32> to vector<8x32xbf16>
    %c0_32 = arith.constant 0 : index
    %c0_33 = arith.constant 0 : index
    %92 = vector.load %arg10[%c0_32, %c0_33] : memref<32x64xbf16, #tpu.memory_space<vmem>>, vector<32x64xbf16>
    %cst_34 = arith.constant dense<0.000000e+00> : vector<8x64xf32>
    %93 = tpu.matmul %91, %92, %cst_34 {dimension_numbers = #tpu.dot_dimension_numbers<[1], [0], [0], [1], [0, 0, 1, 1], [], []>} : vector<8x32xbf16>, vector<32x64xbf16>, vector<8x64xf32> -> vector<8x64xf32>
    %c0_35 = arith.constant 0 : index
    %c0_36 = arith.constant 0 : index
    %94 = vector.load %arg11[%c0_35, %c0_36] : memref<1x64xf32, #tpu.memory_space<vmem>>, vector<1x64xf32>
    %95 = vector.broadcast %94 : vector<1x64xf32> to vector<8x64xf32>
    %96 = arith.addf %93, %95 : vector<8x64xf32>
    %97 = arith.mulf %96, %96 : vector<8x64xf32>
    %98 = arith.mulf %96, %97 : vector<8x64xf32>
    %cst_37 = arith.constant 4.471500e-02 : f32
    %99 = vector.broadcast %cst_37 : f32 to vector<8x64xf32>
    %100 = arith.mulf %99, %98 : vector<8x64xf32>
    %101 = arith.addf %96, %100 : vector<8x64xf32>
    %cst_38 = arith.constant 0.797884583 : f32
    %102 = vector.broadcast %cst_38 : f32 to vector<8x64xf32>
    %103 = arith.mulf %102, %101 : vector<8x64xf32>
    %104 = math.tanh %103 : vector<8x64xf32>
    %cst_39 = arith.constant 1.000000e+00 : f32
    %105 = vector.broadcast %cst_39 : f32 to vector<8x64xf32>
    %106 = arith.addf %105, %104 : vector<8x64xf32>
    %cst_40 = arith.constant 5.000000e-01 : f32
    %107 = vector.broadcast %cst_40 : f32 to vector<8x64xf32>
    %108 = arith.mulf %107, %106 : vector<8x64xf32>
    %109 = arith.mulf %96, %108 : vector<8x64xf32>
    %110 = arith.truncf %109 : vector<8x64xf32> to vector<8x64xbf16>
    %c0_41 = arith.constant 0 : index
    %c0_42 = arith.constant 0 : index
    %111 = vector.load %arg12[%c0_41, %c0_42] : memref<64x32xbf16, #tpu.memory_space<vmem>>, vector<64x32xbf16>
    %cst_43 = arith.constant dense<0.000000e+00> : vector<8x32xf32>
    %112 = tpu.matmul %110, %111, %cst_43 {dimension_numbers = #tpu.dot_dimension_numbers<[1], [0], [0], [1], [0, 0, 1, 1], [], []>} : vector<8x64xbf16>, vector<64x32xbf16>, vector<8x32xf32> -> vector<8x32xf32>
    %c0_44 = arith.constant 0 : index
    %c0_45 = arith.constant 0 : index
    %113 = vector.load %arg13[%c0_44, %c0_45] : memref<1x32xf32, #tpu.memory_space<vmem>>, vector<1x32xf32>
    %114 = vector.broadcast %113 : vector<1x32xf32> to vector<8x32xf32>
    %115 = arith.addf %112, %114 : vector<8x32xf32>
    %116 = arith.addf %90, %115 : vector<8x32xf32>
    %cst_46 = arith.constant dense<0.000000e+00> : vector<8xf32>
    %117 = vector.multi_reduction <add>, %116, %cst_46 [1] : vector<8x32xf32> to vector<8xf32>
    %118 = vector.shape_cast %117 : vector<8xf32> to vector<8x1xf32>
    %cst_47 = arith.constant 3.200000e+01 : f32
    %119 = vector.broadcast %cst_47 : f32 to vector<8x1xf32>
    %120 = arith.divf %118, %119 : vector<8x1xf32>
    %121 = vector.broadcast %120 : vector<8x1xf32> to vector<8x32xf32>
    %122 = arith.subf %116, %121 : vector<8x32xf32>
    %123 = arith.mulf %122, %122 : vector<8x32xf32>
    %cst_48 = arith.constant dense<0.000000e+00> : vector<8xf32>
    %124 = vector.multi_reduction <add>, %123, %cst_48 [1] : vector<8x32xf32> to vector<8xf32>
    %125 = vector.shape_cast %124 : vector<8xf32> to vector<8x1xf32>
    %cst_49 = arith.constant 3.200000e+01 : f32
    %126 = vector.broadcast %cst_49 : f32 to vector<8x1xf32>
    %127 = arith.divf %125, %126 : vector<8x1xf32>
    %cst_50 = arith.constant 9.99999974E-6 : f32
    %128 = vector.broadcast %cst_50 : f32 to vector<8x1xf32>
    %129 = arith.addf %127, %128 : vector<8x1xf32>
    %130 = math.rsqrt %129 : vector<8x1xf32>
    %131 = vector.broadcast %130 : vector<8x1xf32> to vector<8x32xf32>
    %132 = arith.mulf %122, %131 : vector<8x32xf32>
    %c0_51 = arith.constant 0 : index
    %c0_52 = arith.constant 0 : index
    %133 = vector.load %arg14[%c0_51, %c0_52] : memref<1x32xf32, #tpu.memory_space<vmem>>, vector<1x32xf32>
    %134 = vector.broadcast %133 : vector<1x32xf32> to vector<8x32xf32>
    %135 = arith.mulf %132, %134 : vector<8x32xf32>
    %c0_53 = arith.constant 0 : index
    %c0_54 = arith.constant 0 : index
    %136 = vector.load %arg15[%c0_53, %c0_54] : memref<1x32xf32, #tpu.memory_space<vmem>>, vector<1x32xf32>
    %137 = vector.broadcast %136 : vector<1x32xf32> to vector<8x32xf32>
    %138 = arith.addf %135, %137 : vector<8x32xf32>
    %c0_55 = arith.constant 0 : index
    %c0_56 = arith.constant 0 : index
    %139 = vector.load %arg16[%c0_55, %c0_56] : memref<8x32xf32, #tpu.memory_space<vmem>>, vector<8x32xf32>
    tpu.vector_store %arg16[%c0_55, %c0_56], %138 {strides = array<i32>} : memref<8x32xf32, #tpu.memory_space<vmem>>, vector<8x32xf32>,
    return
  }
  func.func @transform_0(%arg0: i32) -> (i32, i32) {
    %c0_i32 = arith.constant 0 : i32
    %c0_i32_0 = arith.constant 0 : i32
    return %arg0, %c0_i32 : i32, i32
  }
  func.func @transform_1(%arg0: i32) -> (i32, i32, i32) {
    %c0_i32 = arith.constant 0 : i32
    %c0_i32_0 = arith.constant 0 : i32
    %c0_i32_1 = arith.constant 0 : i32
    %c0_i32_2 = arith.constant 0 : i32
    return %c0_i32, %c0_i32_0, %c0_i32_1 : i32, i32, i32
  }
  func.func @transform_2(%arg0: i32) -> (i32, i32) {
    %c0_i32 = arith.constant 0 : i32
    %c0_i32_0 = arith.constant 0 : i32
    %c0_i32_1 = arith.constant 0 : i32
    return %c0_i32, %c0_i32_0 : i32, i32
  }
  func.func @transform_3(%arg0: i32) -> (i32, i32) {
    %c0_i32 = arith.constant 0 : i32
    %c0_i32_0 = arith.constant 0 : i32
    %c0_i32_1 = arith.constant 0 : i32
    return %c0_i32, %c0_i32_0 : i32, i32
  }
  func.func @transform_4(%arg0: i32) -> (i32, i32) {
    %c0_i32 = arith.constant 0 : i32
    %c0_i32_0 = arith.constant 0 : i32
    %c0_i32_1 = arith.constant 0 : i32
    return %c0_i32, %c0_i32_0 : i32, i32
  }
  func.func @transform_5(%arg0: i32) -> (i32, i32) {
    %c0_i32 = arith.constant 0 : i32
    %c0_i32_0 = arith.constant 0 : i32
    %c0_i32_1 = arith.constant 0 : i32
    return %c0_i32, %c0_i32_0 : i32, i32
  }
  func.func @transform_6(%arg0: i32) -> (i32, i32) {
    %c0_i32 = arith.constant 0 : i32
    %c0_i32_0 = arith.constant 0 : i32
    %c0_i32_1 = arith.constant 0 : i32
    return %c0_i32, %c0_i32_0 : i32, i32
  }
  func.func @transform_7(%arg0: i32) -> (i32, i32) {
    %c0_i32 = arith.constant 0 : i32
    %c0_i32_0 = arith.constant 0 : i32
    %c0_i32_1 = arith.constant 0 : i32
    return %c0_i32, %c0_i32_0 : i32, i32
  }
  func.func @transform_8(%arg0: i32) -> (i32, i32) {
    %c0_i32 = arith.constant 0 : i32
    %c0_i32_0 = arith.constant 0 : i32
    %c0_i32_1 = arith.constant 0 : i32
    return %c0_i32, %c0_i32_0 : i32, i32
  }
  func.func @transform_9(%arg0: i32) -> (i32, i32) {
    %c0_i32 = arith.constant 0 : i32
    %c0_i32_0 = arith.constant 0 : i32
    %c0_i32_1 = arith.constant 0 : i32
    return %c0_i32, %c0_i32_0 : i32, i32
  }
  func.func @transform_10(%arg0: i32) -> (i32, i32) {
    %c0_i32 = arith.constant 0 : i32
    %c0_i32_0 = arith.constant 0 : i32
    %c0_i32_1 = arith.constant 0 : i32
    return %c0_i32, %c0_i32_0 : i32, i32
  }
  func.func @transform_11(%arg0: i32) -> (i32, i32) {
    %c0_i32 = arith.constant 0 : i32
    %c0_i32_0 = arith.constant 0 : i32
    %c0_i32_1 = arith.constant 0 : i32
    return %c0_i32, %c0_i32_0 : i32, i32
  }
  func.func @transform_12(%arg0: i32) -> (i32, i32) {
    %c0_i32 = arith.constant 0 : i32
    %c0_i32_0 = arith.constant 0 : i32
    %c0_i32_1 = arith.constant 0 : i32
    return %c0_i32, %c0_i32_0 : i32, i32
  }
  func.func @transform_13(%arg0: i32) -> (i32, i32) {
    %c0_i32 = arith.constant 0 : i32
    %c0_i32_0 = arith.constant 0 : i32
    %c0_i32_1 = arith.constant 0 : i32
    return %c0_i32, %c0_i32_0 : i32, i32
  }
  func.func @transform_14(%arg0: i32) -> (i32, i32) {
    %c0_i32 = arith.constant 0 : i32
    %c0_i32_0 = arith.constant 0 : i32
    %c0_i32_1 = arith.constant 0 : i32
    return %c0_i32, %c0_i32_0 : i32, i32
  }
  func.func @transform_15(%arg0: i32) -> (i32, i32) {
    %c0_i32 = arith.constant 0 : i32
    %c0_i32_0 = arith.constant 0 : i32
    return %arg0, %c0_i32 : i32, i32
  }
}

module attributes {stable_mosaic.version = 11 : i64} {
  func.func @_encoder_layer_kernel(%arg0: i32, %arg1: memref<8x32xf32, #tpu.memory_space<vmem>>, %arg2: memref<4x8x8xf32, #tpu.memory_space<vmem>>, %arg3: memref<32x104xbf16, #tpu.memory_space<vmem>>, %arg4: memref<1x104xf32, #tpu.memory_space<vmem>>, %arg5: memref<1x4xf32, #tpu.memory_space<vmem>>, %arg6: memref<32x32xbf16, #tpu.memory_space<vmem>>, %arg7: memref<1x32xf32, #tpu.memory_space<vmem>>, %arg8: memref<1x32xf32, #tpu.memory_space<vmem>>, %arg9: memref<1x32xf32, #tpu.memory_space<vmem>>, %arg10: memref<32x64xbf16, #tpu.memory_space<vmem>>, %arg11: memref<1x64xf32, #tpu.memory_space<vmem>>, %arg12: memref<64x32xbf16, #tpu.memory_space<vmem>>, %arg13: memref<1x32xf32, #tpu.memory_space<vmem>>, %arg14: memref<1x32xf32, #tpu.memory_space<vmem>>, %arg15: memref<1x32xf32, #tpu.memory_space<vmem>>, %arg16: memref<8x32xf32, #tpu.memory_space<vmem>>) attributes {dimension_semantics = [#tpu.dimension_semantics<parallel>], iteration_bounds = array<i64: 2>, scalar_prefetch = 0 : i64, scratch_operands = 0 : i64, tpu.core_type = #tpu.core_type<tc>, window_params = [{transform_indices = @transform_0, window_bounds = array<i64: 8, 32>}, {pipeline_mode = #tpu.pipeline_mode<synchronous>, transform_indices = @transform_1, window_bounds = array<i64: 4, 8, 8>}, {pipeline_mode = #tpu.pipeline_mode<synchronous>, transform_indices = @transform_2, window_bounds = array<i64: 32, 104>}, {pipeline_mode = #tpu.pipeline_mode<synchronous>, transform_indices = @transform_3, window_bounds = array<i64: 1, 104>}, {pipeline_mode = #tpu.pipeline_mode<synchronous>, transform_indices = @transform_4, window_bounds = array<i64: 1, 4>}, {pipeline_mode = #tpu.pipeline_mode<synchronous>, transform_indices = @transform_5, window_bounds = array<i64: 32, 32>}, {pipeline_mode = #tpu.pipeline_mode<synchronous>, transform_indices = @transform_6, window_bounds = array<i64: 1, 32>}, {pipeline_mode = #tpu.pipeline_mode<synchronous>, transform_indices = @transform_7, window_bounds = array<i64: 1, 32>}, {pipeline_mode = #tpu.pipeline_mode<synchronous>, transform_indices = @transform_8, window_bounds = array<i64: 1, 32>}, {pipeline_mode = #tpu.pipeline_mode<synchronous>, transform_indices = @transform_9, window_bounds = array<i64: 32, 64>}, {pipeline_mode = #tpu.pipeline_mode<synchronous>, transform_indices = @transform_10, window_bounds = array<i64: 1, 64>}, {pipeline_mode = #tpu.pipeline_mode<synchronous>, transform_indices = @transform_11, window_bounds = array<i64: 64, 32>}, {pipeline_mode = #tpu.pipeline_mode<synchronous>, transform_indices = @transform_12, window_bounds = array<i64: 1, 32>}, {pipeline_mode = #tpu.pipeline_mode<synchronous>, transform_indices = @transform_13, window_bounds = array<i64: 1, 32>}, {pipeline_mode = #tpu.pipeline_mode<synchronous>, transform_indices = @transform_14, window_bounds = array<i64: 1, 32>}, {transform_indices = @transform_15, window_bounds = array<i64: 8, 32>}]} {
    %c0 = arith.constant 0 : index
    %c0_0 = arith.constant 0 : index
    %0 = vector.load %arg1[%c0, %c0_0] : memref<8x32xf32, #tpu.memory_space<vmem>>, vector<8x32xf32>
    %1 = arith.truncf %0 : vector<8x32xf32> to vector<8x32xbf16>
    %c0_1 = arith.constant 0 : index
    %c0_2 = arith.constant 0 : index
    %2 = vector.load %arg3[%c0_1, %c0_2] : memref<32x104xbf16, #tpu.memory_space<vmem>>, vector<32x104xbf16>
    %cst = arith.constant dense<0.000000e+00> : vector<8x104xf32>
    %3 = tpu.matmul %1, %2, %cst {dimension_numbers = #tpu.dot_dimension_numbers<[1], [0], [0], [1], [0, 0, 1, 1], [], []>} : vector<8x32xbf16>, vector<32x104xbf16>, vector<8x104xf32> -> vector<8x104xf32>
    %c0_3 = arith.constant 0 : index
    %c0_4 = arith.constant 0 : index
    %4 = vector.load %arg4[%c0_3, %c0_4] : memref<1x104xf32, #tpu.memory_space<vmem>>, vector<1x104xf32>
    %5 = vector.broadcast %4 : vector<1x104xf32> to vector<8x104xf32>
    %6 = arith.addf %3, %5 : vector<8x104xf32>
    %7 = vector.extract_strided_slice %6 {offsets = [0, 0], sizes = [8, 32], strides = [1, 1]} : vector<8x104xf32> to vector<8x32xf32>
    %8 = vector.extract_strided_slice %6 {offsets = [0, 32], sizes = [8, 32], strides = [1, 1]} : vector<8x104xf32> to vector<8x32xf32>
    %9 = vector.extract_strided_slice %6 {offsets = [0, 64], sizes = [8, 32], strides = [1, 1]} : vector<8x104xf32> to vector<8x32xf32>
    %10 = vector.extract_strided_slice %6 {offsets = [0, 96], sizes = [8, 4], strides = [1, 1]} : vector<8x104xf32> to vector<8x4xf32>
    %11 = arith.negf %10 : vector<8x4xf32>
    %12 = math.exp %11 : vector<8x4xf32>
    %cst_5 = arith.constant 1.000000e+00 : f32
    %13 = vector.broadcast %cst_5 : f32 to vector<8x4xf32>
    %14 = arith.addf %13, %12 : vector<8x4xf32>
    %15 = arith.divf %13, %14 : vector<8x4xf32>
    %16 = vector.extract_strided_slice %6 {offsets = [0, 100], sizes = [8, 4], strides = [1, 1]} : vector<8x104xf32> to vector<8x4xf32>
    %17 = arith.negf %16 : vector<8x4xf32>
    %18 = math.exp %17 : vector<8x4xf32>
    %cst_6 = arith.constant 1.000000e+00 : f32
    %19 = vector.broadcast %cst_6 : f32 to vector<8x4xf32>
    %20 = arith.addf %19, %18 : vector<8x4xf32>
    %21 = arith.divf %19, %20 : vector<8x4xf32>
    %c0_7 = arith.constant 0 : index
    %c0_8 = arith.constant 0 : index
    %22 = vector.load %arg5[%c0_7, %c0_8] : memref<1x4xf32, #tpu.memory_space<vmem>>, vector<1x4xf32>
    %23 = vector.broadcast %22 : vector<1x4xf32> to vector<8x4xf32>
    %24 = arith.mulf %21, %23 : vector<8x4xf32>
    %cst_9 = arith.constant 1.000000e+00 : f32
    %25 = vector.broadcast %cst_9 : f32 to vector<8x4xf32>
    %26 = arith.subf %24, %25 : vector<8x4xf32>
    %27 = arith.mulf %15, %26 : vector<8x4xf32>
    %cst_10 = arith.constant 2.000000e+00 : f32
    %28 = vector.broadcast %cst_10 : f32 to vector<8x4xf32>
    %29 = arith.addf %27, %28 : vector<8x4xf32>
    %30 = vector.shape_cast %7 : vector<8x32xf32> to vector<8x4x8xf32>
    %31 = tpu.transpose %30, [1, 0, 2] : vector<8x4x8xf32> -> vector<4x8x8xf32>
    %32 = vector.shape_cast %8 : vector<8x32xf32> to vector<8x4x8xf32>
    %33 = tpu.transpose %32, [1, 0, 2] : vector<8x4x8xf32> -> vector<4x8x8xf32>
    %34 = vector.shape_cast %9 : vector<8x32xf32> to vector<8x4x8xf32>
    %35 = tpu.transpose %34, [1, 0, 2] : vector<8x4x8xf32> -> vector<4x8x8xf32>
    %36 = vector.shape_cast %29 : vector<8x4xf32> to vector<8x4x1xf32>
    %37 = tpu.transpose %36, [1, 0, 2] : vector<8x4x1xf32> -> vector<4x8x1xf32>
    %c0_11 = arith.constant 0 : index
    %c0_12 = arith.constant 0 : index
    %c0_13 = arith.constant 0 : index
    %38 = vector.load %arg2[%c0_11, %c0_12, %c0_13] : memref<4x8x8xf32, #tpu.memory_space<vmem>>, vector<4x8x8xf32>
    %39 = vector.shape_cast %38 : vector<4x8x8xf32> to vector<4x1x8x8xf32>
    %40 = vector.shape_cast %39 : vector<4x1x8x8xf32> to vector<4x8x8xf32>
    %41 = vector.broadcast %37 : vector<4x8x1xf32> to vector<4x8x8xf32>
    %42 = arith.mulf %41, %40 : vector<4x8x8xf32>
    %43 = arith.truncf %31 : vector<4x8x8xf32> to vector<4x8x8xbf16>
    %44 = arith.truncf %33 : vector<4x8x8xf32> to vector<4x8x8xbf16>
    "tpu.trace_start"() <{level = 10 : i32, message = "gqd,gkd->gqk"}> : () -> ()
    %cst_14 = arith.constant dense<0.000000e+00> : vector<4x8x8xf32>
    %45 = tpu.matmul %43, %44, %cst_14 {dimension_numbers = #tpu.dot_dimension_numbers<[2], [2], [1], [1], [0, 0, 0, 1, 1, 1], [0], [0]>} : vector<4x8x8xbf16>, vector<4x8x8xbf16>, vector<4x8x8xf32> -> vector<4x8x8xf32>
    "tpu.trace_stop"() : () -> ()
    %46 = arith.addf %45, %42 : vector<4x8x8xf32>
    %cst_15 = arith.constant dense<0xFF800000> : vector<4x8xf32>
    %47 = vector.multi_reduction <maximumf>, %46, %cst_15 [2] : vector<4x8x8xf32> to vector<4x8xf32>
    %48 = vector.shape_cast %47 : vector<4x8xf32> to vector<4x8x1xf32>
    %49 = vector.broadcast %48 : vector<4x8x1xf32> to vector<4x8x8xf32>
    %50 = arith.subf %46, %49 : vector<4x8x8xf32>
    %51 = math.exp %50 : vector<4x8x8xf32>
    %cst_16 = arith.constant dense<0.000000e+00> : vector<4x8xf32>
    %52 = vector.multi_reduction <add>, %51, %cst_16 [2] : vector<4x8x8xf32> to vector<4x8xf32>
    %53 = vector.shape_cast %52 : vector<4x8xf32> to vector<4x8x1xf32>
    %54 = tpu.reciprocal %53 {approx = true} : vector<4x8x1xf32> -> vector<4x8x1xf32>
    %55 = vector.broadcast %54 : vector<4x8x1xf32> to vector<4x8x8xf32>
    %56 = arith.mulf %51, %55 : vector<4x8x8xf32>
    %57 = arith.truncf %56 : vector<4x8x8xf32> to vector<4x8x8xbf16>
    %58 = arith.truncf %35 : vector<4x8x8xf32> to vector<4x8x8xbf16>
    "tpu.trace_start"() <{level = 10 : i32, message = "gqk,gkd->gqd"}> : () -> ()
    %cst_17 = arith.constant dense<0.000000e+00> : vector<4x8x8xf32>
    %59 = tpu.matmul %57, %58, %cst_17 {dimension_numbers = #tpu.dot_dimension_numbers<[2], [1], [1], [2], [0, 0, 0, 1, 1, 2], [0], [0]>} : vector<4x8x8xbf16>, vector<4x8x8xbf16>, vector<4x8x8xf32> -> vector<4x8x8xf32>
    "tpu.trace_stop"() : () -> ()
    %60 = tpu.transpose %59, [1, 0, 2] : vector<4x8x8xf32> -> vector<8x4x8xf32>
    %61 = vector.shape_cast %60 : vector<8x4x8xf32> to vector<8x32xf32>
    %62 = arith.truncf %61 : vector<8x32xf32> to vector<8x32xbf16>
    %c0_18 = arith.constant 0 : index
    %c0_19 = arith.constant 0 : index
    %63 = vector.load %arg6[%c0_18, %c0_19] : memref<32x32xbf16, #tpu.memory_space<vmem>>, vector<32x32xbf16>
    %cst_20 = arith.constant dense<0.000000e+00> : vector<8x32xf32>
    %64 = tpu.matmul %62, %63, %cst_20 {dimension_numbers = #tpu.dot_dimension_numbers<[1], [0], [0], [1], [0, 0, 1, 1], [], []>} : vector<8x32xbf16>, vector<32x32xbf16>, vector<8x32xf32> -> vector<8x32xf32>
    %c0_21 = arith.constant 0 : index
    %c0_22 = arith.constant 0 : index
    %65 = vector.load %arg7[%c0_21, %c0_22] : memref<1x32xf32, #tpu.memory_space<vmem>>, vector<1x32xf32>
    %66 = vector.broadcast %65 : vector<1x32xf32> to vector<8x32xf32>
    %67 = arith.addf %64, %66 : vector<8x32xf32>
    %68 = arith.addf %0, %67 : vector<8x32xf32>
    %cst_23 = arith.constant dense<0.000000e+00> : vector<8xf32>
    %69 = vector.multi_reduction <add>, %68, %cst_23 [1] : vector<8x32xf32> to vector<8xf32>
    %70 = vector.shape_cast %69 : vector<8xf32> to vector<8x1xf32>
    %cst_24 = arith.constant 3.200000e+01 : f32
    %71 = vector.broadcast %cst_24 : f32 to vector<8x1xf32>
    %72 = arith.divf %70, %71 : vector<8x1xf32>
    %73 = vector.broadcast %72 : vector<8x1xf32> to vector<8x32xf32>
    %74 = arith.subf %68, %73 : vector<8x32xf32>
    %75 = arith.mulf %74, %74 : vector<8x32xf32>
    %cst_25 = arith.constant dense<0.000000e+00> : vector<8xf32>
    %76 = vector.multi_reduction <add>, %75, %cst_25 [1] : vector<8x32xf32> to vector<8xf32>
    %77 = vector.shape_cast %76 : vector<8xf32> to vector<8x1xf32>
    %cst_26 = arith.constant 3.200000e+01 : f32
    %78 = vector.broadcast %cst_26 : f32 to vector<8x1xf32>
    %79 = arith.divf %77, %78 : vector<8x1xf32>
    %cst_27 = arith.constant 9.99999974E-6 : f32
    %80 = vector.broadcast %cst_27 : f32 to vector<8x1xf32>
    %81 = arith.addf %79, %80 : vector<8x1xf32>
    %82 = math.rsqrt %81 : vector<8x1xf32>
    %83 = vector.broadcast %82 : vector<8x1xf32> to vector<8x32xf32>
    %84 = arith.mulf %74, %83 : vector<8x32xf32>
    %c0_28 = arith.constant 0 : index
    %c0_29 = arith.constant 0 : index
    %85 = vector.load %arg8[%c0_28, %c0_29] : memref<1x32xf32, #tpu.memory_space<vmem>>, vector<1x32xf32>
    %86 = vector.broadcast %85 : vector<1x32xf32> to vector<8x32xf32>
    %87 = arith.mulf %84, %86 : vector<8x32xf32>
    %c0_30 = arith.constant 0 : index
    %c0_31 = arith.constant 0 : index
    %88 = vector.load %arg9[%c0_30, %c0_31] : memref<1x32xf32, #tpu.memory_space<vmem>>, vector<1x32xf32>
    %89 = vector.broadcast %88 : vector<1x32xf32> to vector<8x32xf32>
    %90 = arith.addf %87, %89 : vector<8x32xf32>
    %91 = arith.truncf %90 : vector<8x32xf32> to vector<8x32xbf16>
    %c0_32 = arith.constant 0 : index
    %c0_33 = arith.constant 0 : index
    %92 = vector.load %arg10[%c0_32, %c0_33] : memref<32x64xbf16, #tpu.memory_space<vmem>>, vector<32x64xbf16>
    %cst_34 = arith.constant dense<0.000000e+00> : vector<8x64xf32>
    %93 = tpu.matmul %91, %92, %cst_34 {dimension_numbers = #tpu.dot_dimension_numbers<[1], [0], [0], [1], [0, 0, 1, 1], [], []>} : vector<8x32xbf16>, vector<32x64xbf16>, vector<8x64xf32> -> vector<8x64xf32>
    %c0_35 = arith.constant 0 : index
    %c0_36 = arith.constant 0 : index
    %94 = vector.load %arg11[%c0_35, %c0_36] : memref<1x64xf32, #tpu.memory_space<vmem>>, vector<1x64xf32>
    %95 = vector.broadcast %94 : vector<1x64xf32> to vector<8x64xf32>
    %96 = arith.addf %93, %95 : vector<8x64xf32>
    %97 = arith.mulf %96, %96 : vector<8x64xf32>
    %98 = arith.mulf %96, %97 : vector<8x64xf32>
    %cst_37 = arith.constant 4.471500e-02 : f32
    %99 = vector.broadcast %cst_37 : f32 to vector<8x64xf32>
    %100 = arith.mulf %99, %98 : vector<8x64xf32>
    %101 = arith.addf %96, %100 : vector<8x64xf32>
    %cst_38 = arith.constant 0.797884583 : f32
    %102 = vector.broadcast %cst_38 : f32 to vector<8x64xf32>
    %103 = arith.mulf %102, %101 : vector<8x64xf32>
    %104 = math.tanh %103 : vector<8x64xf32>
    %cst_39 = arith.constant 1.000000e+00 : f32
    %105 = vector.broadcast %cst_39 : f32 to vector<8x64xf32>
    %106 = arith.addf %105, %104 : vector<8x64xf32>
    %cst_40 = arith.constant 5.000000e-01 : f32
    %107 = vector.broadcast %cst_40 : f32 to vector<8x64xf32>
    %108 = arith.mulf %107, %106 : vector<8x64xf32>
    %109 = arith.mulf %96, %108 : vector<8x64xf32>
    %110 = arith.truncf %109 : vector<8x64xf32> to vector<8x64xbf16>
    %c0_41 = arith.constant 0 : index
    %c0_42 = arith.constant 0 : index
    %111 = vector.load %arg12[%c0_41, %c0_42] : memref<64x32xbf16, #tpu.memory_space<vmem>>, vector<64x32xbf16>
    %cst_43 = arith.constant dense<0.000000e+00> : vector<8x32xf32>
    %112 = tpu.matmul %110, %111, %cst_43 {dimension_numbers = #tpu.dot_dimension_numbers<[1], [0], [0], [1], [0, 0, 1, 1], [], []>} : vector<8x64xbf16>, vector<64x32xbf16>, vector<8x32xf32> -> vector<8x32xf32>
    %c0_44 = arith.constant 0 : index
    %c0_45 = arith.constant 0 : index
    %113 = vector.load %arg13[%c0_44, %c0_45] : memref<1x32xf32, #tpu.memory_space<vmem>>, vector<1x32xf32>
    %114 = vector.broadcast %113 : vector<1x32xf32> to vector<8x32xf32>
    %115 = arith.addf %112, %114 : vector<8x32xf32>
    %116 = arith.addf %90, %115 : vector<8x32xf32>
    %cst_46 = arith.constant dense<0.000000e+00> : vector<8xf32>
    %117 = vector.multi_reduction <add>, %116, %cst_46 [1] : vector<8x32xf32> to vector<8xf32>
    %118 = vector.shape_cast %117 : vector<8xf32> to vector<8x1xf32>
    %cst_47 = arith.constant 3.200000e+01 : f32
    %119 = vector.broadcast %cst_47 : f32 to vector<8x1xf32>
    %120 = arith.divf %118, %119 : vector<8x1xf32>
    %121 = vector.broadcast %120 : vector<8x1xf32> to vector<8x32xf32>
    %122 = arith.subf %116, %121 : vector<8x32xf32>
    %123 = arith.mulf %122, %122 : vector<8x32xf32>
    %cst_48 = arith.constant dense<0.000000e+00> : vector<8xf32>
    %124 = vector.multi_reduction <add>, %123, %cst_48 [1] : vector<8x32xf32> to vector<8xf32>
    %125 = vector.shape_cast %124 : vector<8xf32> to vector<8x1xf32>
    %cst_49 = arith.constant 3.200000e+01 : f32
    %126 = vector.broadcast %cst_49 : f32 to vector<8x1xf32>
    %127 = arith.divf %125, %126 : vector<8x1xf32>
    %cst_50 = arith.constant 9.99999974E-6 : f32
    %128 = vector.broadcast %cst_50 : f32 to vector<8x1xf32>
    %129 = arith.addf %127, %128 : vector<8x1xf32>
    %130 = math.rsqrt %129 : vector<8x1xf32>
    %131 = vector.broadcast %130 : vector<8x1xf32> to vector<8x32xf32>
    %132 = arith.mulf %122, %131 : vector<8x32xf32>
    %c0_51 = arith.constant 0 : index
    %c0_52 = arith.constant 0 : index
    %133 = vector.load %arg14[%c0_51, %c0_52] : memref<1x32xf32, #tpu.memory_space<vmem>>, vector<1x32xf32>
    %134 = vector.broadcast %133 : vector<1x32xf32> to vector<8x32xf32>
    %135 = arith.mulf %132, %134 : vector<8x32xf32>
    %c0_53 = arith.constant 0 : index
    %c0_54 = arith.constant 0 : index
    %136 = vector.load %arg15[%c0_53, %c0_54] : memref<1x32xf32, #tpu.memory_space<vmem>>, vector<1x32xf32>
    %137 = vector.broadcast %136 : vector<1x32xf32> to vector<8x32xf32>
    %138 = arith.addf %135, %137 : vector<8x32xf32>
    %c0_55 = arith.constant 0 : index
    %c0_56 = arith.constant 0 : index
    %139 = vector.load %arg16[%c0_55, %c0_56] : memref<8x32xf32, #tpu.memory_space<vmem>>, vector<8x32xf32>
    tpu.vector_store %arg16[%c0_55, %c0_56], %138 {strides = array<i32>} : memref<8x32xf32, #tpu.memory_space<vmem>>, vector<8x32xf32>,
    return
  }
  func.func @transform_0(%arg0: i32) -> (i32, i32) {
    %c0_i32 = arith.constant 0 : i32
    %c0_i32_0 = arith.constant 0 : i32
    return %arg0, %c0_i32 : i32, i32
  }
  func.func @transform_1(%arg0: i32) -> (i32, i32, i32) {
    %c0_i32 = arith.constant 0 : i32
    %c0_i32_0 = arith.constant 0 : i32
    %c0_i32_1 = arith.constant 0 : i32
    %c0_i32_2 = arith.constant 0 : i32
    return %c0_i32, %c0_i32_0, %c0_i32_1 : i32, i32, i32
  }
  func.func @transform_2(%arg0: i32) -> (i32, i32) {
    %c0_i32 = arith.constant 0 : i32
    %c0_i32_0 = arith.constant 0 : i32
    %c0_i32_1 = arith.constant 0 : i32
    return %c0_i32, %c0_i32_0 : i32, i32
  }
  func.func @transform_3(%arg0: i32) -> (i32, i32) {
    %c0_i32 = arith.constant 0 : i32
    %c0_i32_0 = arith.constant 0 : i32
    %c0_i32_1 = arith.constant 0 : i32
    return %c0_i32, %c0_i32_0 : i32, i32
  }
  func.func @transform_4(%arg0: i32) -> (i32, i32) {
    %c0_i32 = arith.constant 0 : i32
    %c0_i32_0 = arith.constant 0 : i32
    %c0_i32_1 = arith.constant 0 : i32
    return %c0_i32, %c0_i32_0 : i32, i32
  }
  func.func @transform_5(%arg0: i32) -> (i32, i32) {
    %c0_i32 = arith.constant 0 : i32
    %c0_i32_0 = arith.constant 0 : i32
    %c0_i32_1 = arith.constant 0 : i32
    return %c0_i32, %c0_i32_0 : i32, i32
  }
  func.func @transform_6(%arg0: i32) -> (i32, i32) {
    %c0_i32 = arith.constant 0 : i32
    %c0_i32_0 = arith.constant 0 : i32
    %c0_i32_1 = arith.constant 0 : i32
    return %c0_i32, %c0_i32_0 : i32, i32
  }
  func.func @transform_7(%arg0: i32) -> (i32, i32) {
    %c0_i32 = arith.constant 0 : i32
    %c0_i32_0 = arith.constant 0 : i32
    %c0_i32_1 = arith.constant 0 : i32
    return %c0_i32, %c0_i32_0 : i32, i32
  }
  func.func @transform_8(%arg0: i32) -> (i32, i32) {
    %c0_i32 = arith.constant 0 : i32
    %c0_i32_0 = arith.constant 0 : i32
    %c0_i32_1 = arith.constant 0 : i32
    return %c0_i32, %c0_i32_0 : i32, i32
  }
  func.func @transform_9(%arg0: i32) -> (i32, i32) {
    %c0_i32 = arith.constant 0 : i32
    %c0_i32_0 = arith.constant 0 : i32
    %c0_i32_1 = arith.constant 0 : i32
    return %c0_i32, %c0_i32_0 : i32, i32
  }
  func.func @transform_10(%arg0: i32) -> (i32, i32) {
    %c0_i32 = arith.constant 0 : i32
    %c0_i32_0 = arith.constant 0 : i32
    %c0_i32_1 = arith.constant 0 : i32
    return %c0_i32, %c0_i32_0 : i32, i32
  }
  func.func @transform_11(%arg0: i32) -> (i32, i32) {
    %c0_i32 = arith.constant 0 : i32
    %c0_i32_0 = arith.constant 0 : i32
    %c0_i32_1 = arith.constant 0 : i32
    return %c0_i32, %c0_i32_0 : i32, i32
  }
  func.func @transform_12(%arg0: i32) -> (i32, i32) {
    %c0_i32 = arith.constant 0 : i32
    %c0_i32_0 = arith.constant 0 : i32
    %c0_i32_1 = arith.constant 0 : i32
    return %c0_i32, %c0_i32_0 : i32, i32
  }
  func.func @transform_13(%arg0: i32) -> (i32, i32) {
    %c0_i32 = arith.constant 0 : i32
    %c0_i32_0 = arith.constant 0 : i32
    %c0_i32_1 = arith.constant 0 : i32
    return %c0_i32, %c0_i32_0 : i32, i32
  }
  func.func @transform_14(%arg0: i32) -> (i32, i32) {
    %c0_i32 = arith.constant 0 : i32
    %c0_i32_0 = arith.constant 0 : i32
    %c0_i32_1 = arith.constant 0 : i32
    return %c0_i32, %c0_i32_0 : i32, i32
  }
  func.func @transform_15(%arg0: i32) -> (i32, i32) {
    %c0_i32 = arith.constant 0 : i32
    %c0_i32_0 = arith.constant 0 : i32
    return %arg0, %c0_i32 : i32, i32
  }
}

</mosaic_0001>

<bundles_post_ra>
// kernel: tpu_custom_call.1
= control target key start
LH: loop header
LB: loop body
LE: loop exit
PB: predicated region body
PF: predicated region fallthrough
CT: control target
= control target key end

     0   :  { %s3397_s0 = inlined_call_operand.vmem [shape: f32[16,32], index: 0, kind: input, shape index: {}]   ;;  %s3398_s1 = inlined_call_operand.vmem [shape: f32[4,8,8], index: 1, kind: input, shape index: {}]   ;;  %s3399_s2 = inlined_call_operand.hbm [shape: bf16[32,104], index: 2, kind: input, shape index: {}]   ;;  %s3400_s3 = inlined_call_operand.vmem [shape: f32[1,104], index: 3, kind: input, shape index: {}]   ;;  %s3401_s4 = inlined_call_operand.vmem [shape: f32[1,4], index: 4, kind: input, shape index: {}]   ;;  %s3402_s5 = inlined_call_operand.hbm [shape: bf16[32,32], index: 5, kind: input, shape index: {}]   ;;  %s3403_s6 = inlined_call_operand.hbm [shape: f32[1,32], index: 6, kind: input, shape index: {}]   ;;  %s3404_s7 = inlined_call_operand.hbm [shape: f32[1,32], index: 7, kind: input, shape index: {}]   ;;  %s3405_s8 = inlined_call_operand.hbm [shape: f32[1,32], index: 8, kind: input, shape index: {}]   ;;  %s3406_s9 = inlined_call_operand.vmem [shape: bf16[32,64], index: 9, kind: input, shape index: {}]   ;;  %s3407_s10 = inlined_call_operand.vmem [shape: f32[1,64], index: 10, kind: input, shape index: {}]   ;;  %s3408_s11 = inlined_call_operand.vmem [shape: bf16[64,32], index: 11, kind: input, shape index: {}]   ;;  %s3409_s12 = inlined_call_operand.vmem [shape: f32[1,32], index: 12, kind: input, shape index: {}]   ;;  %s3410_s13 = inlined_call_operand.vmem [shape: f32[1,32], index: 13, kind: input, shape index: {}]   ;;  %s3411_s14 = inlined_call_operand.vmem [shape: f32[1,32], index: 14, kind: input, shape index: {}]   ;;  %s3412_s15 = inlined_call_operand.hbm [shape: f32[16,32], index: 15, kind: output, shape index: {}]  }
   0x1   :  { %3426 = sst [smem:[#allocation24_spill]] %s3402_s5 }
   0x2   :  { %3427 = sst [smem:[#allocation25_spill]] %s3410_s13 }
   0x3   :  { %3428 = sst [smem:[#allocation26_spill]] %s3411_s14 }
   0x4   :  { %3429 = sst [smem:[#allocation27_spill]] %s3412_s15 }
   0x5   :  { %20 = vsyncpa [#allocation3], 0 }
   0x6   :  { %21 = vsyncpa [#allocation6], 0 }
   0x7   :  { %22 = vsyncpa [#allocation9], 0 }
   0x8   :  { %23 = vsyncpa [#allocation4], 0 }
   0x9   :  { %25 = vsyncpa [#allocation4 + $0x1], 0  ;;  %s2886_s18 = smov 0   ;;  %s2888_s19 = smov 0  }
   0xa   :  { %s2890_s20 = smov 0   ;;  %s2892_s21 = smov 0  }
   0xb LB: > { %3430 = sst [smem:[#allocation16_spill]] %s2769_s18  ;;  %s2907_s22 = sadd.s32 4294967295, %s2781_s21   ;;  %s2781_s21 = sphi %s2892_s21, %s3461_s21   ;;  %s2777_s20 = sphi %s2890_s20, %s3464_s20   ;;  %s2773_s19 = sphi %s2888_s19, %s3463_s19   ;;  %s2769_s18 = sphi %s2886_s18, %s3462_s18  }
   0xc   : > { %3431 = sst [smem:[#allocation17_spill]] %s2773_s19  ;;  %s2247_s23 = sadd.s32 4294967294, %s2781_s21  }
   0xd   : > { %3432 = sst [smem:[#allocation18_spill]] %s2777_s20  ;;  %s2911_s24 = sadd.s32 1, %s2781_s21  }
   0xe   : > { %3433 = sst [smem:[#allocation19_spill]] %s2781_s21  ;;  %s358_s25 = sadd.s32 1, %s2777_s20 }
   0xf   : > { %3434 = sst [smem:[#allocation20_spill]] %s2911_s24  ;;  %s355_s26 = ssub.s32 %s2781_s21, %s2911_s24 }
  0x10   : > { %p368_p0 = scmp.ne.s32.totalorder %s2777_s20, %s2773_s19  ;;  %p356_p1 = scmp.eq.s32.totalorder %s355_s26, 0 }
  0x11   : > { %p369_p2 = scmp.eq.s32.totalorder %s2907_s22, 1  ;;  %p374_p3 = scmp.ne.s32.totalorder %s2773_s19, %s2769_s18 }
  0x12   : > { %p375_p4 = scmp.eq.s32.totalorder %s2247_s23, 1  ;;  %p2248_p7 = scmp.ge.s32.totalorder %s2781_s21, 1 }
  0x13   : > { %s2922_s27 = scalar_select %p356_p1, %s2777_s20, %s358_s25  }
  0x14   : > { %p2924_p5 = por %p369_p2, %p368_p0  ;;  %p2928_p6 = por %p375_p4, %p374_p3 }
  0x15   : > { %3435 = sst [smem:[#allocation21_spill]] %s2922_s27  ;;  %p382_p8 = scmp.lt.s32.totalorder %s2781_s21, 3 }
  0x16   : > { %s3436_s28 = scalar_select %p2924_p5, 1, 0 }
  0x17   : > { %s3438_s29 = scalar_select %p2928_p6, 1, 0 }
  0x18   : > { %3437 = sst [smem:[#allocation22_spill]] %s3436_s28  ;;  %p3420_p9 = scmp.eq.s32.totalorder %s2907_s22, 0 }
  0x19   : > { %3439 = sst [smem:[#allocation23_spill]] %s3438_s29  ;;  %p2935_p10 = pnand %p2248_p7, %p382_p8 }
  0x1a   : > { %s2783_s16 = smov [#allocation5]   ;;  %s2784_s25 = smov [#allocation8]  }
  0x1b   : > { %s3440_s30 = scalar_select %p2935_p10, 1, 0 }
  0x1c   : > { %p2444_p11 = pneg %p2935_p10  ;;  %s416_s17 = sshll.u32 %s2783_s16, 4  ;;  %s2941_s17 = int_to_ptr.vmem [resolvable:$true] %s416_s17 }
  0x1d   : > { %s441_s26 = sshll.u32 %s2784_s25, 4  ;;  %s2785_s27 = smov [#allocation2]   ;;  %s2949_s26 = int_to_ptr.vmem [resolvable:$true] %s441_s26 }
  0x1e   : > { %p2945_p12 = pnand %p3420_p9, %p2444_p11  ;;  %s2951_s20 = sshll.u32 %s2785_s27, 4  ;;  %s398_s20 = int_to_ptr.vmem [resolvable:$true] %s2951_s20 }
  0x1f   : > { %s3442_s5 = sld [smem:[#allocation24_spill]] }
  0x20   : > { %p2961_p0 = pneg %p2945_p12 }
  0x25   : > { %s2567_s18 = scalar_lea.hbm %s3442_s5, 256 }
  0x26   : > { %p2568_p13 = scmp.ne.s32.totalorder %s3442_s5, %s2567_s18  ;;  %p2574_p3 = scmp.lt.u32.totalorder %s2567_s18, %s3442_s5 }
  0x28   : > { %p2570_p1 = pnand %p2961_p0, %p2568_p13 }
  0x2a   : > { %p2571_p2 = pneg %p2570_p1 }
  0x2c   : > { %p2576_p4 = pnand %p2574_p3, %p2571_p2 }
  0x2e   : > { %2579 = shalt.err (!%p2576_p4)
}
  0x2f   : > { %s2580_s21 = scalar_lea.vmem %s2941_s17, 256  ;;  %p2588_p9 = scmp.lt.s32.totalorder %s2941_s17, %s2941_s17 }
  0x30   : > { %p2581_p7 = scmp.ne.s32.totalorder %s2941_s17, %s2580_s21  ;;  %p2589_p6 = scmp.lt.s32.totalorder %s2580_s21, %s2580_s21 }
  0x32   : > { %p2583_p8 = pnand %p2581_p7, %p2961_p0  ;;  %p2590_p13 = por %p2589_p6, %p2588_p9 }
  0x34   : > { %p2584_p11 = pneg %p2583_p8 }
  0x36   : > { %p2591_p1 = pnand %p2590_p13, %p2584_p11 }
  0x38   : > { %2594 = shalt.err (!%p2591_p1)
}
  0x39   : > { %s2786_s24 = smov 64   ;;  %s2787_s18 = smov 4  }
  0x3a   : > { %2450 = dma.hbm_to_vmem [thread:$0]  (!%p2945_p12), %s3442_s5, 256, %s2941_s17, [#allocation6], %s2786_s24, %s2786_s24, %s2787_s18  }
  0x3b   : > { %s2595_s21 = scalar_lea.hbm %s3404_s7, 16 }
  0x3c   : > { %p2596_p6 = scmp.ne.s32.totalorder %s3404_s7, %s2595_s21  ;;  %p2602_p3 = scmp.lt.u32.totalorder %s2595_s21, %s3404_s7 }
  0x3e   : > { %p2598_p9 = pnand %p2596_p6, %p2961_p0 }
  0x40   : > { %p2599_p2 = pneg %p2598_p9 }
  0x42   : > { %p2604_p4 = pnand %p2602_p3, %p2599_p2 }
  0x44   : > { %2607 = shalt.err (!%p2604_p4)
}
  0x45   : > { %s2608_s17 = scalar_lea.vmem %s2949_s26, 16  ;;  %s2615_s13 = scalar_lea.vmem %s2949_s26, 32 }
  0x46   : > { %p2609_p7 = scmp.ne.s32.totalorder %s2949_s26, %s2608_s17  ;;  %p2616_p13 = scmp.lt.s32.totalorder %s2949_s26, %s2949_s26 }
  0x47   : > { %p2617_p1 = scmp.lt.s32.totalorder %s2615_s13, %s2608_s17 }
  0x48   : > { %p2611_p8 = pnand %p2609_p7, %p2961_p0 }
  0x49   : > { %p2618_p6 = por %p2617_p1, %p2616_p13 }
  0x4a   : > { %p2612_p11 = pneg %p2611_p8 }
  0x4c   : > { %p2619_p9 = pnand %p2618_p6, %p2612_p11 }
  0x4e   : > { %2622 = shalt.err (!%p2619_p9)
}
  0x4f   : > { %2456 = dma.hbm_to_vmem [thread:$0]  (!%p2945_p12), %s3404_s7, 16, %s2949_s26, [#allocation9]  }
  0x50   : > { %s2623_s16 = scalar_lea.hbm %s3399_s2, 256 }
  0x51   : > { %p2624_p2 = scmp.ne.s32.totalorder %s3399_s2, %s2623_s16  ;;  %p2630_p7 = scmp.lt.u32.totalorder %s2623_s16, %s3399_s2 }
  0x53   : > { %p2626_p3 = pnand %p2624_p2, %p2961_p0 }
  0x55   : > { %p2627_p4 = pneg %p2626_p3 }
  0x57   : > { %p2632_p8 = pnand %p2630_p7, %p2627_p4 }
  0x59   : > { %2635 = shalt.err (!%p2632_p8)
}
  0x5a   : > { %s2636_s13 = scalar_lea.vmem %s398_s20, 256  ;;  %p2644_p6 = scmp.lt.s32.totalorder %s398_s20, %s398_s20 }
  0x5b   : > { %p2637_p11 = scmp.ne.s32.totalorder %s398_s20, %s2636_s13  ;;  %p2645_p9 = scmp.lt.s32.totalorder %s2636_s13, %s2636_s13 }
  0x5d   : > { %p2639_p13 = pnand %p2637_p11, %p2961_p0  ;;  %p2646_p5 = por %p2645_p9, %p2644_p6 }
  0x5f   : > { %p2640_p1 = pneg %p2639_p13 }
  0x61   : > { %p2647_p10 = pnand %p2646_p5, %p2640_p1 }
  0x63   : > { %2650 = shalt.err (!%p2647_p10)
}
  0x64   : > { %2447 = dma.hbm_to_vmem [thread:$0]  (!%p2945_p12), %s3399_s2, 256, %s398_s20, [#allocation3], %s2786_s24, %s2786_s24, %s2787_s18  }
  0x65   : > { %s2788_s19 = smov [#allocation7]   ;;  %s2789_s29 = smov [#allocation10]  }
  0x66   : > { %s430_s28 = sshll.u32 %s2788_s19, 4  ;;  %s452_s16 = sshll.u32 %s2789_s29, 4  ;;  %s431_s28 = int_to_ptr.vmem [resolvable:$true] %s430_s28  ;;  %s453_s16 = int_to_ptr.vmem [resolvable:$true] %s452_s16 }
  0x67   : > { %s2651_s21 = scalar_lea.hbm %s3403_s6, 16 }
  0x68   : > { %p2652_p5 = scmp.ne.s32.totalorder %s3403_s6, %s2651_s21  ;;  %p2658_p3 = scmp.lt.u32.totalorder %s2651_s21, %s3403_s6 }
  0x6a   : > { %p2654_p10 = pnand %p2652_p5, %p2961_p0 }
  0x6c   : > { %p2655_p2 = pneg %p2654_p10 }
  0x6e   : > { %p2660_p4 = pnand %p2658_p3, %p2655_p2 }
  0x70   : > { %2663 = shalt.err (!%p2660_p4)
}
  0x71   : > { %s2664_s20 = scalar_lea.vmem %s431_s28, 16  ;;  %s2671_s24 = scalar_lea.vmem %s431_s28, 32 }
  0x72   : > { %p2665_p7 = scmp.ne.s32.totalorder %s431_s28, %s2664_s20  ;;  %p2672_p13 = scmp.lt.s32.totalorder %s431_s28, %s431_s28 }
  0x73   : > { %p2673_p1 = scmp.lt.s32.totalorder %s2671_s24, %s2664_s20 }
  0x74   : > { %p2667_p8 = pnand %p2665_p7, %p2961_p0 }
  0x75   : > { %p2674_p6 = por %p2673_p1, %p2672_p13 }
  0x76   : > { %p2668_p11 = pneg %p2667_p8 }
  0x78   : > { %p2675_p9 = pnand %p2674_p6, %p2668_p11 }
  0x7a   : > { %2678 = shalt.err (!%p2675_p9)
}
  0x7b   : > { %2453 = dma.hbm_to_vmem [thread:$0]  (!%p2945_p12), %s3403_s6, 16, %s431_s28, [#allocation6]  }
  0x7c   : > { %s2679_s29 = scalar_lea.hbm %s3405_s8, 16 }
  0x7d   : > { %p2680_p5 = scmp.ne.s32.totalorder %s3405_s8, %s2679_s29  ;;  %p2686_p3 = scmp.lt.u32.totalorder %s2679_s29, %s3405_s8 }
  0x7f   : > { %p2682_p10 = pnand %p2680_p5, %p2961_p0 }
  0x81   : > { %p2683_p2 = pneg %p2682_p10 }
  0x83   : > { %p2688_p4 = pnand %p2686_p3, %p2683_p2 }
  0x85   : > { %2691 = shalt.err (!%p2688_p4)
}
  0x86   : > { %s2692_s13 = scalar_lea.vmem %s453_s16, 16  ;;  %s2699_s28 = scalar_lea.vmem %s453_s16, 32 }
  0x87   : > { %p2693_p7 = scmp.ne.s32.totalorder %s453_s16, %s2692_s13  ;;  %p2700_p13 = scmp.lt.s32.totalorder %s453_s16, %s453_s16 }
  0x88   : > { %p2701_p1 = scmp.lt.s32.totalorder %s2699_s28, %s2692_s13 }
  0x89   : > { %p2695_p8 = pnand %p2693_p7, %p2961_p0 }
  0x8a   : > { %p2702_p6 = por %p2701_p1, %p2700_p13 }
  0x8b   : > { %p2696_p11 = pneg %p2695_p8 }
  0x8d   : > { %p2703_p9 = pnand %p2702_p6, %p2696_p11 }
  0x8f   : > { %2706 = shalt.err (!%p2703_p9)
}
  0x90   : > { %2459 = dma.hbm_to_vmem [thread:$0]  (!%p2945_p12), %s3405_s8, 16, %s453_s16, [#allocation9]  }
  0x91   : > { %p3444_p5 = scmp.ne.s32.totalorder %s3440_s30, 0 }
  0x92   : > { %p3445_p10 = scmp.eq.s32.totalorder (!%p3444_p5), %s2907_s22, 0 }
  0x93   : > { %490 = sbr.rel (%p3444_p5) target bundleno = 3061 (0xbf5), region = 80 }
  0x9a   : > { %2752 = dma.done.wait (%p3445_p10), [#allocation3], 256   ;;  %p3446_p0 = pmov %p3445_p10 }
  0x9c   : > { %2754 = vsyncadd (%p3446_p0), [#allocation3], 4294967040  ;;  %p3447_p2 = pmov %p3446_p0 }
  0x9d   : > { %p3448_p3 = pmov %p3446_p0 }
  0x9e   : > { %2756 = dma.done.wait (%p3447_p2), [#allocation6], 272  }
  0x9f   : > { %2758 = vsyncadd (%p3448_p3), [#allocation6], 4294967024  ;;  %p3449_p4 = pmov %p3446_p0 }
  0xa0   : > { %p3450_p12 = pmov %p3446_p0 }
  0xa1   : > { %2760 = dma.done.wait (%p3449_p4), [#allocation9], 32  }
  0xa2   : > { %2762 = vsyncadd (%p3450_p12), [#allocation9], 4294967264  ;;  %p553_p7 = scmp.lt.s32.totalorder %s2907_s22, 1  ;;  %v2790_v0 = vmov 0.0   ;;  %vm2791_vm0 = vmmov 0   ;;  %v2531_v1 = vld [vmem:[#allocation2] sm:$0xff]   ;;  %v665_v18 = vlaneseq }
  0xa3   : > { %2338 = vmatprep.subr.bf16.mxu0 %v2790_v0  ;;  %2342 = vmatprep.mubr.msk.bf16.mxu0 %vm2791_vm0, %v2790_v0  ;;  %v2532_v2 = vld [vmem:[#allocation2 + $0x8] sm:$0xff]   ;;  %vm583_vm1 = vcmask 261120   ;;  %v2263_v5 = vld [vmem:[%s3400_s3] ss:$0 sm:$0xff]  ;;  %s2792_s5 = smov 104   ;;  %s2793_s19 = smov 120  }
  0xa4   : > { %s554_s15 = scalar_select %p553_p7, %s2907_s22, 1  ;;  %2346 = vmatprep.subr.bf16.mxu1 %v2790_v0  ;;  %2348 = vmatprep.mubr.msk.bf16.mxu1 %vm2791_vm0, %v2790_v0  ;;  %v2268_v14 = vld [vmem:[%s3401_s4] ss:$0 sm:$0xff]  ;;  %v2797_v16 = vmov 1983009808   ;;  %v3123_v20 = vshrl.u32 %v665_v18, 7 }
  0xa5   : > { %2339 = vmatpush3.bf16.msra.mxu0 %v2531_v1  ;;  %s2794_s29 = smov 96   ;;  %s2795_s25 = smov 112   ;;  %v663_v17 = vunpack.c.l.s4 %v2797_v16  ;;  %v2798_v22 = vmov 1934713408   ;;  %vm1260_vm2 = vcmask 64512   ;;  %vm1500_vm3 = vcmask 1043456  }
  0xa6   : > { %s2262_s30 = sshll.u32 %s554_s15, 3  ;;  %2340 = vmatprep.subr.bf16.mxu0 %v2790_v0  ;;  %s2796_s17 = smov 100   ;;  %v695_v23 = vunpack.c.l.s4 %v2798_v22  ;;  %vm1831_vm4 = vcmask 130048   ;;  %vm1833_vm5 = vcmask 195584   ;;  %vm2049_vm6 = vcmask 523264  }
  0xa7   : > { %s556_s24 = scalar_lea.vmem %s3397_s0, %s2262_s30  ;;  %v664_v19 = vunpack.c.0.s8 %v663_v17  ;;  %s2799_s13 = smov 124  }
  0xa8   : > { %v3092_v3 = vld [vmem:[%s556_s24] sm:$0xff]  ;;  %v696_v30 = vunpack.c.0.s8 %v695_v23  ;;  %s2801_s18 = smov 64   ;;  %s2802_s14 = smov 16  }
  0xa9   : > { %v559_v4 = vpack.c.bf16 %v3092_v3, %v3092_v3  ;;  %2341 = vmatpush3.bf16.msra.mxu0 %v2532_v2  ;;  %v3128_v25 = vsub.s32 %v664_v19, %v3123_v20  ;;  %s3454_s26 = sld [smem:[#allocation26_spill]]  ;;  %s2305_s20 = sshll.u32 %s2907_s22, 7 }
  0xaa   : > { %2352 = vmatprep.subr.bf16.mxu0 %v2790_v0  ;;  %v3141_v36 = vsub.s32 %v696_v30, %v3123_v20  ;;  %s3455_s24 = sld [smem:[#allocation27_spill]]  ;;  %s2805_s22 = smov [#allocation11]  }
  0xac   : > { %2343 = vmatmul.mubr.msk.bf16.vlgmr.msra.gmra.mrb[0].mxu0 %vm583_vm1, %v559_v4 }
  0xad   : > { %2354 = vmatprep.mubr.msk.bf16.mxu0 %vm2791_vm0, %v2790_v0 }
 0x17f   : > { %v621_v6 = vpop.f32.mrb[0].mxu0 }
 0x180   : > { %v3104_v7 = vadd.f32 %v2263_v5, %v621_v6  ;;  %v2344_v8 = vpop.f32.mrb[1].mxu0 }
 0x181   : > { %v624_v9 = vpop.f32.mrb[2].mxu0 }
 0x182   : > { %657 = vrot.lane.b32.xlu1 %v3104_v7, %s2792_s5  ;;  %651 = vrot.lane.b32.xlu0 %v3104_v7, %s2793_s19  ;;  %v2345_v10 = vpop.f32.mrb[3].mxu0  ;;  %v2267_v15 = vmul.f32 -1.442695, %v3104_v7  ;;  %s2803_s5 = smov 8   ;;  %s2804_s19 = smov 24  }
 0x184   : > { %2541 = vpow2.f32 %v2267_v15 }
 0x186   : > { %796 = vrot.lane.b32.xlu1 %v3104_v7, %s2794_s29  ;;  %654 = vrot.lane.b32.xlu0 %v3104_v7, %s2795_s25  ;;  %s3452_s25 = sld [smem:[#allocation22_spill]] }
 0x18c   : > { %p3456_p11 = scmp.ne.s32.totalorder %s3452_s25, 0 }
 0x18e   : > { %v2542_v21 = vpop.eup %2541 }
 0x18f   : > { %v630_v28 = vadd.f32 1.0, %v2542_v21 }
 0x191   : > { %2543 = vrcp.f32 %v630_v28 }
 0x19b   : > { %v3151_v58 = vpop.eup %2543 }
 0x1f4   : > { %v3110_v11 = vpop.permute.xlu0 %651  ;;  %v3113_v12 = vpop.permute.xlu1 %657 }
 0x1f5   : > { %798 = vrot.lane.b32.xlu0 %v3110_v11, %s2794_s29  ;;  %v676_v26 = vcombine.low %v3110_v11, %v3113_v12  ;;  %v677_v29 = vcombine.high %v3110_v11, %v3113_v12 }
 0x1f7   : > { %v684_v32 = vrot.slane %v676_v26, %v3128_v25  ;;  %v691_v34 = vrot.slane %v677_v29, %v3128_v25 }
 0x1f8   : > { %v3115_v13 = vpop.permute.xlu0 %654  ;;  %v797_v35 = vpop.permute.xlu1 %796 }
 0x1f9   : > { %802 = vrot.lane.b32.xlu0 %v3113_v12, %s2794_s29  ;;  %800 = vrot.lane.b32.xlu1 %v3115_v13, %s2794_s29  ;;  %v660_v24 = vcombine.low %v3104_v7, %v3115_v13  ;;  %v661_v27 = vcombine.high %v3104_v7, %v3115_v13 }
 0x1fb   : > { %v668_v31 = vrot.slane %v660_v24, %v3128_v25  ;;  %v675_v33 = vrot.slane %v661_v27, %v3128_v25 }
 0x1fd   : > { %639 = vrot.lane.b32.xlu1 %v2268_v14, %s2796_s17  ;;  %v692_v37 = vcombine.low %v668_v31, %v684_v32  ;;  %v693_v38 = vcombine.high %v668_v31, %v684_v32  ;;  %v708_v40 = vcombine.low %v675_v33, %v691_v34  ;;  %v709_v41 = vcombine.high %v675_v33, %v691_v34  ;;  %s3453_s17 = sld [smem:[#allocation25_spill]] }
 0x1ff   : > { %v700_v42 = vrot.slane %v692_v37, %v3141_v36  ;;  %v707_v43 = vrot.slane %v693_v38, %v3141_v36  ;;  %v716_v50 = vrot.slane %v708_v40, %v3141_v36  ;;  %v723_v51 = vrot.slane %v709_v41, %v3141_v36 }
 0x201   : > { %v728_v56 = vcombine.low %v700_v42, %v707_v43  ;;  %v2270_v63 = vcombine.high %v700_v42, %v707_v43  ;;  %v744_v1 = vcombine.low %v716_v50, %v723_v51  ;;  %v2271_v2 = vcombine.high %v716_v50, %v723_v51 }
 0x203   : > { %v735_v18 = vrot.slane %v728_v56, %v3128_v25  ;;  %v743_v19 = vrot.slane %v2270_v63, %v3128_v25  ;;  %v751_v21 = vrot.slane %v744_v1, %v3128_v25  ;;  %v759_v22 = vrot.slane %v2271_v2, %v3128_v25 }
 0x205   : > { %v760_v34 = vcombine.low %v735_v18, %v743_v19  ;;  %v777_v50 = vcombine.high %v751_v21, %v759_v22 }
 0x207   : > { %v768_v43 = vrot.slane %v760_v34, %v3141_v36 }
 0x267   : > { %v799_v39 = vpop.permute.xlu0 %798 }
 0x26b   : > { %v801_v44 = vpop.permute.xlu1 %800  ;;  %v803_v45 = vpop.permute.xlu0 %802 }
 0x26c   : > { %v808_v46 = vcombine.low %v797_v35, %v801_v44  ;;  %v809_v47 = vcombine.high %v797_v35, %v801_v44  ;;  %v824_v48 = vcombine.low %v799_v39, %v803_v45  ;;  %v825_v49 = vcombine.high %v799_v39, %v803_v45 }
 0x26d   : > { %v776_v35 = vcombine.low %v751_v21, %v759_v22  ;;  %v1126_v21 = vsub.s32 4, %v3123_v20 }
 0x26e   : > { %v816_v52 = vrot.slane %v808_v46, %v3128_v25  ;;  %v823_v53 = vrot.slane %v809_v47, %v3128_v25  ;;  %v832_v54 = vrot.slane %v824_v48, %v3128_v25  ;;  %v839_v55 = vrot.slane %v825_v49, %v3128_v25 }
 0x26f   : > { %v640_v57 = vpop.permute.xlu1 %639  ;;  %v784_v44 = vrot.slane %v776_v35, %v3141_v36  ;;  %v761_v49 = vcombine.high %v735_v18, %v743_v19  ;;  %v1134_v19 = vsub.s32 5, %v3123_v20 }
 0x270   : > { %v840_v59 = vcombine.low %v816_v52, %v832_v54  ;;  %v841_v60 = vcombine.high %v816_v52, %v832_v54  ;;  %v856_v61 = vcombine.low %v823_v53, %v839_v55  ;;  %v857_v62 = vcombine.high %v823_v53, %v839_v55 }
 0x271   : > { %v642_v4 = vmul.f32 %v3151_v58, %v640_v57  ;;  %v792_v51 = vcombine.low %v768_v43, %v784_v44  ;;  %v793_v52 = vcombine.high %v768_v43, %v784_v44  ;;  %v775_v57 = vrot.slane %v761_v49, %v3141_v36 }
 0x272   : > { %v848_v5 = vrot.slane %v840_v59, %v3141_v36  ;;  %v855_v6 = vrot.slane %v841_v60, %v3141_v36  ;;  %v864_v8 = vrot.slane %v856_v61, %v3141_v36  ;;  %v871_v9 = vrot.slane %v857_v62, %v3141_v36 }
 0x273   : > { %v2269_v10 = vadd.f32 -1.0, %v642_v4  ;;  %v1252_v55 = vpack.c.bf16 %v792_v51, %v792_v51  ;;  %v1253_v56 = vpack.c.bf16 %v793_v52, %v793_v52  ;;  %v791_v59 = vrot.slane %v777_v50, %v3141_v36 }
 0x274   : > { %v876_v14 = vcombine.low %v848_v5, %v855_v6  ;;  %v2272_v15 = vcombine.high %v848_v5, %v855_v6  ;;  %v892_v16 = vcombine.low %v864_v8, %v871_v9  ;;  %v2273_v17 = vcombine.high %v864_v8, %v871_v9 }
 0x275   : > { %645 = vrot.lane.b32.xlu0 %v2269_v10, %s2799_s13  ;;  %v794_v62 = vcombine.low %v775_v57, %v791_v59  ;;  %v795_v63 = vcombine.high %v775_v57, %v791_v59  ;;  %v1102_v6 = vsub.s32 1, %v3123_v20  ;;  %v1094_v8 = vsub.s32 0, %v3123_v20 }
 0x276   : > { %v883_v23 = vrot.slane %v876_v14, %v3128_v25  ;;  %v891_v24 = vrot.slane %v2272_v15, %v3128_v25  ;;  %v899_v26 = vrot.slane %v892_v16, %v3128_v25  ;;  %v907_v27 = vrot.slane %v2273_v17, %v3128_v25 }
 0x277   : > { %v1254_v1 = vpack.c.bf16 %v794_v62, %v794_v62  ;;  %v1255_v2 = vpack.c.bf16 %v795_v63, %v795_v63  ;;  %v1118_v15 = vsub.s32 3, %v3123_v20  ;;  %v1110_v16 = vsub.s32 2, %v3123_v20 }
 0x278   : > { %v908_v28 = vcombine.low %v883_v23, %v891_v24  ;;  %v924_v29 = vcombine.low %v899_v26, %v907_v27  ;;  %v909_v30 = vcombine.high %v883_v23, %v891_v24  ;;  %v925_v31 = vcombine.high %v899_v26, %v907_v27 }
 0x279   : > { %v1150_v24 = vsub.s32 7, %v3123_v20  ;;  %v1142_v26 = vsub.s32 6, %v3123_v20 }
 0x27a   : > { %v916_v32 = vrot.slane %v908_v28, %v3141_v36  ;;  %v932_v33 = vrot.slane %v924_v29, %v3141_v36  ;;  %v923_v39 = vrot.slane %v909_v30, %v3141_v36  ;;  %v939_v40 = vrot.slane %v925_v31, %v3141_v36 }
 0x27c   : > { %v940_v37 = vcombine.low %v916_v32, %v932_v33  ;;  %v941_v38 = vcombine.high %v916_v32, %v932_v33  ;;  %v942_v47 = vcombine.low %v923_v39, %v939_v40  ;;  %v943_v48 = vcombine.high %v923_v39, %v939_v40 }
 0x27e   : > { %v1256_v41 = vpack.c.bf16 %v940_v37, %v940_v37  ;;  %v1257_v42 = vpack.c.bf16 %v941_v38, %v941_v38  ;;  %v1258_v53 = vpack.c.bf16 %v942_v47, %v942_v47  ;;  %v1259_v54 = vpack.c.bf16 %v943_v48, %v943_v48 }
 0x280   : > { %v1265_v45 = vsel %vm1260_vm2, %v1256_v41, 0  ;;  %v1311_v46 = vsel %vm1260_vm2, %v1257_v42, 0  ;;  %v1357_v60 = vsel %vm1260_vm2, %v1258_v53, 0  ;;  %v1403_v61 = vsel %vm1260_vm2, %v1259_v54, 0 }
 0x281   : > { %2347 = vmatpush3.bf16.xpose.msra.mxu1 %v1265_v45  ;;  %2353 = vmatpush3.bf16.xpose.msra.mxu0 %v1311_v46 }
 0x282   : > { %2358 = vmatprep.subr.bf16.mxu1 %v2790_v0  ;;  %2364 = vmatprep.subr.bf16.mxu0 %v2790_v0 }
 0x288   : > { %2349 = vmatmul.mubr.msk.bf16.vlgmr.msra.gmra.mrb[0].mxu1 %vm1260_vm2, %v1252_v55  ;;  %2355 = vmatmul.mubr.msk.bf16.vlgmr.msra.gmra.mrb[4].mxu0 %vm1260_vm2, %v1253_v56 }
 0x289   : > { %2359 = vmatpush3.bf16.xpose.msra.mxu1 %v1357_v60  ;;  %2365 = vmatpush3.bf16.xpose.msra.mxu0 %v1403_v61 }
 0x28a   : > { %2360 = vmatprep.mubr.msk.bf16.mxu1 %vm2791_vm0, %v2790_v0  ;;  %2366 = vmatprep.mubr.msk.bf16.mxu0 %vm2791_vm0, %v2790_v0 }
 0x28b   : > { %2370 = vmatprep.subr.bf16.mxu1 %v2790_v0  ;;  %2376 = vmatprep.subr.bf16.mxu0 %v2790_v0 }
 0x290   : > { %2361 = vmatmul.mubr.msk.bf16.vlgmr.msra.gmra.mrb[4].mxu1 %vm1260_vm2, %v1254_v1  ;;  %2367 = vmatmul.mubr.msk.bf16.vlgmr.msra.gmra.mrb[8].mxu0 %vm1260_vm2, %v1255_v2 }
 0x291   : > { %2372 = vmatprep.mubr.msk.bf16.mxu1 %vm2791_vm0, %v2790_v0  ;;  %2378 = vmatprep.mubr.msk.bf16.mxu0 %vm2791_vm0, %v2790_v0 }
 0x2e7   : > { %v646_v4 = vpop.permute.xlu0 %645 }
 0x2e8   : > { %v648_v5 = vmul.f32 %v3151_v58, %v646_v4  ;;  %v2800_v58 = vmov 0  }
 0x2e9   : > { %2530 = vset.pattern.permute.xlu0 %v2800_v58  ;;  %2529 = vset.pattern.permute.xlu1 %v2800_v58 }
 0x2ea   : > { %v649_v9 = vadd.f32 2.0, %v648_v5 }
 0x2ec   : > { %v1103_v10 = vrot.slane %v649_v9, %v1102_v6  ;;  %v1095_v14 = vrot.slane %v649_v9, %v1094_v8  ;;  %v1119_v17 = vrot.slane %v649_v9, %v1118_v15  ;;  %v1111_v18 = vrot.slane %v649_v9, %v1110_v16  ;;  %v1225_v16 = vld [vmem:[%s3398_s1 + $0x8] sm:$0xff] }
 0x2ed   : > { %v1135_v22 = vrot.slane %v649_v9, %v1134_v19  ;;  %v1127_v23 = vrot.slane %v649_v9, %v1126_v21  ;;  %v1151_v27 = vrot.slane %v649_v9, %v1150_v24  ;;  %v1143_v28 = vrot.slane %v649_v9, %v1142_v26 }
 0x2ee   : > { %1106 = vbcast.lane.b32.xlu0 %v1103_v10, 352  ;;  %1098 = vbcast.lane.b32.xlu1 %v1095_v14, 352 }
 0x2f2   : > { %1122 = vbcast.lane.b32.xlu0 %v1119_v17, 352  ;;  %1114 = vbcast.lane.b32.xlu1 %v1111_v18, 352  ;;  %v1224_v17 = vld [vmem:[%s3398_s1] sm:$0xff] }
 0x2f6   : > { %1138 = vbcast.lane.b32.xlu0 %v1135_v22, 352  ;;  %1130 = vbcast.lane.b32.xlu1 %v1127_v23, 352  ;;  %v1226_v22 = vld [vmem:[%s3398_s1 + $0x10] sm:$0xff] }
 0x2fa   : > { %1154 = vbcast.lane.b32.xlu0 %v1151_v27, 352  ;;  %1146 = vbcast.lane.b32.xlu1 %v1143_v28, 352 }
 0x35b   : > { %v1301_v29 = vpop.f32.mrb[0].mxu1  ;;  %v1347_v30 = vpop.f32.mrb[4].mxu0 }
 0x35c   : > { %v2350_v31 = vpop.f32.mrb[1].mxu1  ;;  %v2356_v32 = vpop.f32.mrb[5].mxu0 }
 0x35d   : > { %v1304_v33 = vpop.f32.mrb[2].mxu1  ;;  %v1350_v34 = vpop.f32.mrb[6].mxu0  ;;  %v1227_v32 = vld [vmem:[%s3398_s1 + $0x18] sm:$0xff] }
 0x35e   : > { %v2351_v35 = vpop.f32.mrb[3].mxu1  ;;  %v2357_v37 = vpop.f32.mrb[7].mxu0 }
 0x360   : > { %v1107_v38 = vpop.permute.xlu0 %1106  ;;  %v1099_v39 = vpop.permute.xlu1 %1098 }
 0x363   : > { %v1393_v40 = vpop.f32.mrb[4].mxu1  ;;  %v1439_v41 = vpop.f32.mrb[8].mxu0 }
 0x364   : > { %v1123_v42 = vpop.permute.xlu0 %1122  ;;  %v1115_v20 = vpop.permute.xlu1 %1114 }
 0x365   : > { %v2362_v43 = vpop.f32.mrb[5].mxu1  ;;  %v2368_v44 = vpop.f32.mrb[9].mxu0  ;;  %v1164_v47 = vcombine.low %v1107_v38, %v1123_v42  ;;  %v1156_v48 = vcombine.low %v1099_v39, %v1115_v20 }
 0x366   : > { %v1396_v45 = vpop.f32.mrb[6].mxu1  ;;  %v1442_v46 = vpop.f32.mrb[10].mxu0 }
 0x367   : > { %v2363_v49 = vpop.f32.mrb[7].mxu1  ;;  %v2369_v50 = vpop.f32.mrb[11].mxu0  ;;  %v1171_v53 = vrot.slane %v1164_v47, %v3128_v25  ;;  %v1163_v54 = vrot.slane %v1156_v48, %v3128_v25 }
 0x368   : > { %v1139_v51 = vpop.permute.xlu0 %1138  ;;  %v1131_v52 = vpop.permute.xlu1 %1130 }
 0x369   : > { %v1188_v60 = vcombine.low %v1163_v54, %v1171_v53  ;;  %v1189_v2 = vcombine.high %v1163_v54, %v1171_v53 }
 0x36b   : > { %v1196_v4 = vrot.slane %v1188_v60, %v3141_v36  ;;  %v1203_v10 = vrot.slane %v1189_v2, %v3141_v36 }
 0x36c   : > { %v1155_v55 = vpop.permute.xlu0 %1154  ;;  %v1147_v56 = vpop.permute.xlu1 %1146 }
 0x36d   : > { %v1180_v57 = vcombine.low %v1139_v51, %v1155_v55  ;;  %v1172_v59 = vcombine.low %v1131_v52, %v1147_v56 }
 0x36f   : > { %v1187_v61 = vrot.slane %v1180_v57, %v3128_v25  ;;  %v1179_v62 = vrot.slane %v1172_v59, %v3128_v25 }
 0x371   : > { %v1204_v63 = vcombine.low %v1179_v62, %v1187_v61  ;;  %v1205_v1 = vcombine.high %v1179_v62, %v1187_v61 }
 0x373   : > { %v1212_v5 = vrot.slane %v1204_v63, %v3141_v36  ;;  %v1219_v9 = vrot.slane %v1205_v1, %v3141_v36 }
 0x375   : > { %v1221_v6 = vcombine.high %v1196_v4, %v1212_v5  ;;  %v1220_v8 = vcombine.low %v1196_v4, %v1212_v5  ;;  %v1222_v14 = vcombine.low %v1203_v10, %v1219_v9  ;;  %v1223_v15 = vcombine.high %v1203_v10, %v1219_v9 }
 0x377   : > { %1235 = vperm.xlu0 %2530, %v1221_v6   ;;  %1230 = vperm.xlu1 %2529, %v1220_v8  }
 0x37b   : > { %1240 = vperm.xlu1 %2529, %v1222_v14  }
 0x37f   : > { %1245 = vperm.xlu1 %2529, %v1223_v15  }
 0x3f6   : > { %v1236_v18 = vpop.permute.xlu0 %1235  ;;  %v1231_v19 = vpop.permute.xlu1 %1230 }
 0x3f7   : > { %v1249_v21 = vmul.f32 %v1236_v18, %v1225_v16  ;;  %v1248_v58 = vmul.f32 %v1231_v19, %v1224_v17 }
 0x3f9   : > { %v1302_v23 = vadd.f32 %v1301_v29, %v1248_v58  ;;  %v1348_v24 = vadd.f32 %v1347_v30, %v1249_v21 }
 0x3fa   : > { %v1241_v26 = vpop.permute.xlu1 %1240 }
 0x3fb   : > { %v1250_v27 = vmul.f32 %v1241_v26, %v1226_v22  ;;  %v1445_v28 = vsel %vm1260_vm2, %v1302_v23, -inf  ;;  %v1448_v31 = vsel %vm1260_vm2, %v1348_v24, -inf }
 0x3fc   : > { %1446 = vmax.xlane.f32.xlu0 %v1445_v28  ;;  %1449 = vmax.xlane.f32.xlu1 %v1448_v31 }
 0x3fd   : > { %v1394_v33 = vadd.f32 %v1393_v40, %v1250_v27 }
 0x3fe   : > { %v1246_v34 = vpop.permute.xlu1 %1245 }
 0x3ff   : > { %v1251_v35 = vmul.f32 %v1246_v34, %v1227_v32  ;;  %v1451_v37 = vsel %vm1260_vm2, %v1394_v33, -inf }
 0x400   : > { %1452 = vmax.xlane.f32.xlu0 %v1451_v37 }
 0x401   : > { %v1440_v29 = vadd.f32 %v1439_v41, %v1251_v35 }
 0x403   : > { %v1454_v30 = vsel %vm1260_vm2, %v1440_v29, -inf }
 0x404   : > { %1455 = vmax.xlane.f32.xlu0 %v1454_v30 }
 0x40d   : > { %944 = vrot.lane.b32.xlu1 %v3104_v7, %s2801_s18 }
 0x489   : > { %v1447_v38 = vpop.xlane.xlu0 %1446  ;;  %v1450_v39 = vpop.xlane.xlu1 %1449 }
 0x48a   : > { %v1457_v42 = vsub.f32 %v1302_v23, %v1447_v38  ;;  %v1458_v20 = vsub.f32 %v1348_v24, %v1450_v39 }
 0x48c   : > { %v1461_v43 = vmul.f32 1.442695, %v1457_v42  ;;  %v1463_v44 = vmul.f32 1.442695, %v1458_v20 }
 0x48d   : > { %v1453_v7 = vpop.xlane.xlu0 %1452 }
 0x48e   : > { %2545 = vpow2.f32 %v1461_v43  ;;  %v1459_v47 = vsub.f32 %v1394_v33, %v1453_v7 }
 0x48f   : > { %2547 = vpow2.f32 %v1463_v44 }
 0x490   : > { %v1465_v50 = vmul.f32 1.442695, %v1459_v47 }
 0x491   : > { %v1456_v48 = vpop.xlane.xlu0 %1455 }
 0x492   : > { %v1460_v49 = vsub.f32 %v1440_v29, %v1456_v48  ;;  %2549 = vpow2.f32 %v1465_v50 }
 0x494   : > { %v1467_v51 = vmul.f32 1.442695, %v1460_v49 }
 0x496   : > { %2551 = vpow2.f32 %v1467_v51 }
 0x498   : > { %v3228_v40 = vpop.eup %2545 }
 0x499   : > { %v3230_v45 = vpop.eup %2547  ;;  %v1469_v41 = vsel %vm1260_vm2, %v3228_v40, 0.0 }
 0x49a   : > { %1470 = vadd.xlane.f32.xlu1 %v1469_v41  ;;  %v1472_v46 = vsel %vm1260_vm2, %v3230_v45, 0.0 }
 0x49b   : > { %1473 = vadd.xlane.f32.xlu0 %v1472_v46 }
 0x49c   : > { %v3239_v52 = vpop.eup %2549 }
 0x49d   : > { %v1475_v54 = vsel %vm1260_vm2, %v3239_v52, 0.0 }
 0x4a0   : > { %v3241_v53 = vpop.eup %2551 }
 0x4ab   : > { %948 = vrot.lane.b32.xlu1 %v3115_v13, %s2801_s18 }
 0x4af   : > { %950 = vrot.lane.b32.xlu1 %v3113_v12, %s2801_s18  ;;  %v1478_v12 = vsel %vm1260_vm2, %v3241_v53, 0.0 }
 0x4b1   : > { %946 = vrot.lane.b32.xlu0 %v3110_v11, %s2801_s18  ;;  %v945_v11 = vpop.permute.xlu1 %944  ;;  %s3354_s18 = scalar_lea.hbm %s3455_s24, %s2305_s20 }
 0x4d0   : > { %1476 = vadd.xlane.f32.xlu0 %v1475_v54 }
 0x4d3   : > { %1479 = vadd.xlane.f32.xlu1 %v1478_v12 }
 0x527   : > { %v1471_v13 = vpop.xlane.xlu1 %1470 }
 0x528   : > { %v1474_v55 = vpop.xlane.xlu0 %1473  ;;  %2553 = vrcp.f32 %v1471_v13 }
 0x529   : > { %2555 = vrcp.f32 %v1474_v55 }
 0x52b   : > { %v949_v56 = vpop.permute.xlu1 %948 }
 0x52c   : > { %v956_v57 = vcombine.low %v945_v11, %v949_v56  ;;  %v957_v59 = vcombine.high %v945_v11, %v949_v56  ;;  %v947_v60 = vpop.permute.xlu0 %946 }
 0x52e   : > { %v964_v1 = vrot.slane %v956_v57, %v3128_v25  ;;  %v971_v2 = vrot.slane %v957_v59, %v3128_v25 }
 0x52f   : > { %v951_v61 = vpop.permute.xlu1 %950 }
 0x530   : > { %v972_v62 = vcombine.low %v947_v60, %v951_v61  ;;  %v973_v63 = vcombine.high %v947_v60, %v951_v61  ;;  %v2533_v60 = vld [vmem:[#allocation5] sm:$0xff]  }
 0x532   : > { %v980_v4 = vrot.slane %v972_v62, %v3128_v25  ;;  %v987_v5 = vrot.slane %v973_v63, %v3128_v25  ;;  %v2554_v35 = vpop.eup %2553 }
 0x533   : > { %v2556_v30 = vpop.eup %2555  ;;  %v1485_v43 = vmul.f32 %v2554_v35, %v3228_v40 }
 0x534   : > { %v988_v6 = vcombine.low %v964_v1, %v980_v4  ;;  %v989_v8 = vcombine.high %v964_v1, %v980_v4  ;;  %v1004_v9 = vcombine.low %v971_v2, %v987_v5  ;;  %v1005_v10 = vcombine.high %v971_v2, %v987_v5 }
 0x535   : > { %v1486_v44 = vmul.f32 %v2556_v30, %v3230_v45  ;;  %v1489_v50 = vpack.c.bf16 %v1485_v43, %v1485_v43 }
 0x536   : > { %v996_v14 = vrot.slane %v988_v6, %v3141_v36  ;;  %v1003_v15 = vrot.slane %v989_v8, %v3141_v36  ;;  %v1012_v16 = vrot.slane %v1004_v9, %v3141_v36  ;;  %v1019_v17 = vrot.slane %v1005_v10, %v3141_v36 }
 0x537   : > { %v1490_v51 = vpack.c.bf16 %v1486_v44, %v1486_v44 }
 0x538   : > { %v1024_v18 = vcombine.low %v996_v14, %v1003_v15  ;;  %v2274_v19 = vcombine.high %v996_v14, %v1003_v15  ;;  %v1040_v21 = vcombine.low %v1012_v16, %v1019_v17  ;;  %v2275_v58 = vcombine.high %v1012_v16, %v1019_v17 }
 0x53a   : > { %v1031_v22 = vrot.slane %v1024_v18, %v3128_v25  ;;  %v1039_v23 = vrot.slane %v2274_v19, %v3128_v25  ;;  %v1047_v24 = vrot.slane %v1040_v21, %v3128_v25  ;;  %v1055_v26 = vrot.slane %v2275_v58, %v3128_v25 }
 0x53c   : > { %v1056_v27 = vcombine.low %v1031_v22, %v1039_v23  ;;  %v1057_v28 = vcombine.high %v1031_v22, %v1039_v23  ;;  %v1072_v31 = vcombine.low %v1047_v24, %v1055_v26  ;;  %v1073_v32 = vcombine.high %v1047_v24, %v1055_v26 }
 0x53e   : > { %v1064_v33 = vrot.slane %v1056_v27, %v3141_v36  ;;  %v1071_v34 = vrot.slane %v1057_v28, %v3141_v36  ;;  %v1080_v37 = vrot.slane %v1072_v31, %v3141_v36  ;;  %v1087_v29 = vrot.slane %v1073_v32, %v3141_v36  ;;  %v2534_v32 = vld [vmem:[#allocation5 + $0x8] sm:$0xff]  }
 0x540   : > { %v1088_v38 = vcombine.low %v1064_v33, %v1080_v37  ;;  %v1089_v39 = vcombine.high %v1064_v33, %v1080_v37  ;;  %v1090_v42 = vcombine.low %v1071_v34, %v1087_v29  ;;  %v1091_v20 = vcombine.high %v1071_v34, %v1087_v29 }
 0x542   : > { %v1493_v41 = vpack.c.bf16 %v1088_v38, %v1088_v38  ;;  %v1494_v46 = vpack.c.bf16 %v1089_v39, %v1089_v39  ;;  %v1495_v48 = vpack.c.bf16 %v1090_v42, %v1090_v42  ;;  %v1496_v49 = vpack.c.bf16 %v1091_v20, %v1091_v20 }
 0x544   : > { %v1502_v7 = vsel %vm1500_vm3, %v1493_v41, 0  ;;  %v1548_v47 = vsel %vm1500_vm3, %v1494_v46, 0  ;;  %v1594_v40 = vsel %vm1500_vm3, %v1495_v48, 0  ;;  %v1640_v45 = vsel %vm1500_vm3, %v1496_v49, 0 }
 0x545   : > { %2371 = vmatpush3.bf16.msra.mxu1 %v1502_v7  ;;  %2377 = vmatpush3.bf16.msra.mxu0 %v1548_v47 }
 0x546   : > { %2382 = vmatprep.subr.bf16.mxu1 %v2790_v0  ;;  %2388 = vmatprep.subr.bf16.mxu0 %v2790_v0 }
 0x548   : > { %2373 = vmatmul.mubr.msk.bf16.vlgmr.msra.gmra.mrb[8].mxu1 %vm1260_vm2, %v1489_v50  ;;  %2379 = vmatmul.mubr.msk.bf16.vlgmr.msra.gmra.mrb[12].mxu0 %vm1260_vm2, %v1490_v51 }
 0x549   : > { %2383 = vmatpush3.bf16.msra.mxu1 %v1594_v40  ;;  %2389 = vmatpush3.bf16.msra.mxu0 %v1640_v45 }
 0x54a   : > { %2384 = vmatprep.mubr.msk.bf16.mxu1 %vm2791_vm0, %v2790_v0  ;;  %2390 = vmatprep.mubr.msk.bf16.mxu0 %vm2791_vm0, %v2790_v0 }
 0x54b   : > { %2394 = vmatprep.subr.bf16.mxu1 %v2790_v0  ;;  %2402 = vmatprep.subr.bf16.mxu0 %v2790_v0 }
 0x55d   : > { %v1477_v54 = vpop.xlane.xlu0 %1476 }
 0x55e   : > { %2557 = vrcp.f32 %v1477_v54 }
 0x560   : > { %v1480_v12 = vpop.xlane.xlu1 %1479 }
 0x561   : > { %2559 = vrcp.f32 %v1480_v12 }
 0x568   : > { %v2558_v11 = vpop.eup %2557 }
 0x569   : > { %v1487_v13 = vmul.f32 %v2558_v11, %v3239_v52 }
 0x56b   : > { %v2560_v55 = vpop.eup %2559  ;;  %v1491_v56 = vpack.c.bf16 %v1487_v13, %v1487_v13 }
 0x56c   : > { %v1488_v57 = vmul.f32 %v2560_v55, %v3241_v53 }
 0x56d   : > { %2385 = vmatmul.mubr.msk.bf16.vlgmr.msra.gmra.mrb[12].mxu1 %vm1260_vm2, %v1491_v56 }
 0x56e   : > { %v1492_v59 = vpack.c.bf16 %v1488_v57, %v1488_v57  ;;  %2398 = vmatprep.mubr.msk.bf16.mxu1 %vm2791_vm0, %v2790_v0  ;;  %2395 = vmatpush3.bf16.msra.mxu1 %v2533_v60 }
 0x56f   : > { %2396 = vmatprep.subr.bf16.mxu1 %v2790_v0 }
 0x570   : > { %2391 = vmatmul.mubr.msk.bf16.vlgmr.msra.gmra.mrb[16].mxu0 %vm1260_vm2, %v1492_v59  ;;  %v2286_v59 = vld [vmem:[#allocation7] ss:$0 sm:$0xff] }
 0x571   : > { %2406 = vmatprep.mubr.msk.bf16.mxu0 %vm2791_vm0, %v2790_v0 }
 0x572   : > { %2397 = vmatpush3.bf16.msra.mxu1 %v2534_v32 }
 0x573   : > { %2410 = vmatprep.subr.bf16.mxu1 %v2790_v0 }
 0x61b   : > { %v1538_v52 = vpop.f32.mrb[8].mxu1  ;;  %v1584_v61 = vpop.f32.mrb[12].mxu0 }
 0x61c   : > { %v2374_v62 = vpop.f32.mrb[9].mxu1  ;;  %v2380_v63 = vpop.f32.mrb[13].mxu0 }
 0x61d   : > { %v1541_v53 = vpop.f32.mrb[10].mxu1  ;;  %v1587_v1 = vpop.f32.mrb[14].mxu0 }
 0x61e   : > { %v2375_v2 = vpop.f32.mrb[11].mxu1  ;;  %v2381_v4 = vpop.f32.mrb[15].mxu0 }
 0x640   : > { %v1630_v5 = vpop.f32.mrb[12].mxu1 }
 0x641   : > { %v1682_v6 = vcombine.low %v1538_v52, %v1630_v5  ;;  %v1683_v8 = vcombine.high %v1538_v52, %v1630_v5  ;;  %v2386_v9 = vpop.f32.mrb[13].mxu1 }
 0x642   : > { %v1633_v10 = vpop.f32.mrb[14].mxu1  ;;  %v2535_v9 = vld [vmem:[%s3406_s9] sm:$0xff]  }
 0x643   : > { %v2387_v14 = vpop.f32.mrb[15].mxu1  ;;  %v1676_v15 = vpop.f32.mrb[16].mxu0  ;;  %v1690_v21 = vrot.slane %v1682_v6, %v3128_v25  ;;  %v1697_v58 = vrot.slane %v1683_v8, %v3128_v25  ;;  %2403 = vmatpush3.bf16.msra.mxu0 %v2535_v9  ;;  %v2536_v10 = vld [vmem:[%s3406_s9 + $0x8] sm:$0xff]  }
 0x644   : > { %v1698_v16 = vcombine.low %v1584_v61, %v1676_v15  ;;  %v1699_v17 = vcombine.high %v1584_v61, %v1676_v15  ;;  %v2392_v18 = vpop.f32.mrb[17].mxu0  ;;  %2404 = vmatprep.subr.bf16.mxu0 %v2790_v0 }
 0x645   : > { %v1679_v19 = vpop.f32.mrb[18].mxu0 }
 0x646   : > { %v1706_v22 = vrot.slane %v1698_v16, %v3128_v25  ;;  %v1713_v23 = vrot.slane %v1699_v17, %v3128_v25  ;;  %v2393_v24 = vpop.f32.mrb[19].mxu0  ;;  %v2290_v17 = vld [vmem:[#allocation8] ss:$0 sm:$0xff]  ;;  %v2291_v19 = vld [vmem:[#allocation10] ss:$0 sm:$0xff] }
 0x647   : > { %2405 = vmatpush3.bf16.msra.mxu0 %v2536_v10  ;;  %v2538_v24 = vld [vmem:[%s3408_s11 + $0x8] sm:$0xff]  }
 0x648   : > { %v1714_v26 = vcombine.low %v1690_v21, %v1706_v22  ;;  %v1715_v27 = vcombine.high %v1690_v21, %v1706_v22  ;;  %v1730_v28 = vcombine.low %v1697_v58, %v1713_v23  ;;  %v1731_v31 = vcombine.high %v1697_v58, %v1713_v23  ;;  %v2537_v23 = vld [vmem:[%s3408_s11] sm:$0xff]  }
 0x64a   : > { %v1722_v33 = vrot.slane %v1714_v26, %v3141_v36  ;;  %v1729_v34 = vrot.slane %v1715_v27, %v3141_v36  ;;  %v1738_v35 = vrot.slane %v1730_v28, %v3141_v36  ;;  %v1745_v37 = vrot.slane %v1731_v31, %v3141_v36  ;;  %v2539_v26 = vld [vmem:[%s3408_s11 + $0x10] sm:$0xff]   ;;  %v2540_v27 = vld [vmem:[%s3408_s11 + $0x18] sm:$0xff]   ;;  %v2292_v28 = vld [vmem:[%s3407_s10] ss:$0 sm:$0xff] }
 0x64c   : > { %v1750_v29 = vcombine.low %v1722_v33, %v1729_v34  ;;  %v2284_v30 = vcombine.high %v1722_v33, %v1729_v34  ;;  %v1766_v38 = vcombine.low %v1738_v35, %v1745_v37  ;;  %v2285_v39 = vcombine.high %v1738_v35, %v1745_v37 }
 0x64e   : > { %v1757_v42 = vrot.slane %v1750_v29, %v3128_v25  ;;  %v1765_v20 = vrot.slane %v2284_v30, %v3128_v25  ;;  %v1773_v43 = vrot.slane %v1766_v38, %v3128_v25  ;;  %v1781_v44 = vrot.slane %v2285_v39, %v3128_v25 }
 0x650   : > { %v1783_v41 = vcombine.high %v1757_v42, %v1765_v20  ;;  %v1799_v46 = vcombine.high %v1773_v43, %v1781_v44  ;;  %v1782_v7 = vcombine.low %v1757_v42, %v1765_v20  ;;  %v1798_v47 = vcombine.low %v1773_v43, %v1781_v44 }
 0x652   : > { %v1797_v48 = vrot.slane %v1783_v41, %v3141_v36  ;;  %v1813_v49 = vrot.slane %v1799_v46, %v3141_v36  ;;  %v1790_v50 = vrot.slane %v1782_v7, %v3141_v36  ;;  %v1806_v51 = vrot.slane %v1798_v47, %v3141_v36  ;;  %v2296_v41 = vld [vmem:[%s3409_s12] ss:$0 sm:$0xff] }
 0x654   : > { %v1816_v40 = vcombine.low %v1797_v48, %v1813_v49  ;;  %v1815_v45 = vcombine.high %v1790_v50, %v1806_v51  ;;  %v1817_v54 = vcombine.high %v1797_v48, %v1813_v49  ;;  %v1814_v12 = vcombine.low %v1790_v50, %v1806_v51 }
 0x656   : > { %1823 = vrot.lane.b32.xlu1 %v1816_v40, %s2802_s14  ;;  %1819 = vrot.lane.b32.xlu0 %v1815_v45, %s2803_s5  ;;  %s3451_s5 = sld [smem:[#allocation17_spill]] }
 0x65a   : > { %1827 = vrot.lane.b32.xlu0 %v1817_v54, %s2804_s19 }
 0x65c   : > { %s550_s19 = sand.u32 1, %s3451_s5  }
 0x65d   : > { %s2261_s29 = sshll.u32 %s550_s19, 3  ;;  %s2125_s14 = scalar_lea.sflag [#allocation4], %s550_s19 }
 0x65e   : > { %s552_s15 = scalar_lea.vmem [#allocation11], %s2261_s29  ;;  %s2711_s29 = sshll.u32 %s2805_s22, 4  ;;  %s2712_s29 = int_to_ptr.vmem [resolvable:$false] %s2711_s29 }
 0x65f   : > { %s2138_s30 = sshll.u32 %s552_s15, 4  ;;  %s2713_s27 = scalar_lea.vmem %s2712_s29, 256  ;;  %s3356_s30 = int_to_ptr.vmem [resolvable:$true] %s2138_s30 }
 0x660   : > { %s2707_s5 = scalar_lea.vmem %s3356_s30, 128  ;;  %p2714_p6 = scmp.lt.s32.totalorder %s3356_s30, %s2712_s29 }
 0x661   : > { %p2708_p8 = scmp.ne.s32.totalorder %s3356_s30, %s2707_s5  ;;  %p2715_p9 = scmp.lt.s32.totalorder %s2713_s27, %s2707_s5 }
 0x663   : > { %p2709_p13 = pnand %p2708_p8, %p3456_p11  ;;  %p2716_p5 = por %p2715_p9, %p2714_p6 }
 0x665   : > { %p2710_p1 = pneg %p2709_p13 }
 0x667   : > { %p2717_p10 = pnand %p2716_p5, %p2710_p1 }
 0x6c8   : > { %v1820_v25 = vpop.permute.xlu0 %1819  ;;  %v1824_v11 = vpop.permute.xlu1 %1823 }
 0x6c9   : > { %v1830_v13 = vsel %vm1260_vm2, %v1814_v12, %v1820_v25 }
 0x6ca   : > { %v1832_v56 = vsel %vm1831_vm4, %v1830_v13, %v1824_v11 }
 0x6cc   : > { %v1828_v55 = vpop.permute.xlu0 %1827 }
 0x6cd   : > { %v1834_v57 = vsel %vm1833_vm5, %v1832_v56, %v1828_v55 }
 0x6ce   : > { %v1835_v36 = vpack.c.bf16 %v1834_v57, %v1834_v57  ;;  %v2302_v57 = vld [vmem:[%s3453_s17] ss:$0 sm:$0xff] }
 0x6d0   : > { %2399 = vmatmul.mubr.msk.bf16.vlgmr.msra.gmra.mrb[16].mxu1 %vm583_vm1, %v1835_v36 }
 0x6d1   : > { %2418 = vmatprep.mubr.msk.bf16.mxu1 %vm2791_vm0, %v2790_v0  ;;  %2411 = vmatpush3.bf16.msra.mxu1 %v2537_v23 }
 0x6d2   : > { %2412 = vmatprep.subr.bf16.mxu1 %v2790_v0 }
 0x6d5   : > { %2413 = vmatpush3.bf16.msra.mxu1 %v2538_v24 }
 0x6d6   : > { %2414 = vmatprep.subr.bf16.mxu1 %v2790_v0 }
 0x6d9   : > { %2415 = vmatpush3.bf16.msra.mxu1 %v2539_v26 }
 0x6da   : > { %2416 = vmatprep.subr.bf16.mxu1 %v2790_v0 }
 0x6dd   : > { %2417 = vmatpush3.bf16.msra.mxu1 %v2540_v27 }
 0x7a3   : > { %v1896_v60 = vpop.f32.mrb[16].mxu1 }
 0x7a4   : > { %v1897_v52 = vadd.f32 %v2286_v59, %v1896_v60  ;;  %v2400_v61 = vpop.f32.mrb[17].mxu1  ;;  %v2303_v59 = vld [vmem:[%s3454_s26] ss:$0 sm:$0xff] }
 0x7a5   : > { %v1899_v62 = vpop.f32.mrb[18].mxu1 }
 0x7a6   : > { %v2401_v63 = vpop.f32.mrb[19].mxu1  ;;  %v1902_v53 = vadd.f32 %v1897_v52, %v3092_v3 }
 0x7a8   : > { %v1903_v1 = vsel %vm583_vm1, %v1902_v53, 0.0 }
 0x7a9   : > { %1904 = vadd.xlane.f32.xlu1 %v1903_v1 }
 0x836   : > { %v1905_v2 = vpop.xlane.xlu1 %1904 }
 0x837   : > { %v1907_v4 = vmul.f32 0.03125, %v1905_v2 }
 0x839   : > { %v1908_v5 = vsub.f32 %v1902_v53, %v1907_v4 }
 0x83b   : > { %v1909_v6 = vmul.f32 %v1908_v5, %v1908_v5 }
 0x83d   : > { %v1910_v8 = vsel %vm583_vm1, %v1909_v6, 0.0 }
 0x83e   : > { %1911 = vadd.xlane.f32.xlu0 %v1910_v8 }
 0x8cb   : > { %v1912_v3 = vpop.xlane.xlu0 %1911 }
 0x8cc   : > { %v1913_v14 = vmul.f32 0.03125, %v1912_v3 }
 0x8ce   : > { %v1914_v15 = vadd.f32 1e-05, %v1913_v14 }
 0x8d0   : > { %2561 = vrsqrt.f32 %v1914_v15 }
 0x8da   : > { %v2562_v16 = vpop.eup %2561 }
 0x8db   : > { %v1916_v18 = vmul.f32 %v2562_v16, %v1908_v5 }
 0x8dd   : > { %v1924_v21 = vmul.f32 %v2290_v17, %v1916_v18 }
 0x8df   : > { %v1932_v58 = vadd.f32 %v2291_v19, %v1924_v21 }
 0x8e1   : > { %v1933_v22 = vpack.c.bf16 %v1932_v58, %v1932_v58 }
 0x8e3   : > { %2407 = vmatmul.mubr.msk.bf16.vlgmr.msra.gmra.mrb[20].mxu0 %vm583_vm1, %v1933_v22 }
 0x9b6   : > { %v1994_v31 = vpop.f32.mrb[20].mxu0 }
 0x9b7   : > { %v1995_v32 = vadd.f32 %v2292_v28, %v1994_v31  ;;  %v2408_v33 = vpop.f32.mrb[21].mxu0 }
 0x9b8   : > { %v1997_v34 = vpop.f32.mrb[22].mxu0 }
 0x9b9   : > { %v2000_v35 = vmul.f32 %v1995_v32, %v1995_v32  ;;  %v2409_v37 = vpop.f32.mrb[23].mxu0 }
 0x9bb   : > { %v2001_v29 = vmul.f32 %v2000_v35, %v1995_v32 }
 0x9bd   : > { %v2002_v30 = vmul.f32 0.044715, %v2001_v29 }
 0x9bf   : > { %v2003_v38 = vadd.f32 %v2002_v30, %v1995_v32 }
 0x9c1   : > { %v2004_v39 = vmul.f32 0.7978846, %v2003_v38 }
 0x9c3   : > { %2563 = vtanh.f32 %v2004_v39 }
 0x9cd   : > { %v2564_v0 = vpop.eup %2563 }
 0x9ce   : > { %v2006_v42 = vadd.f32 1.0, %v2564_v0 }
 0x9d0   : > { %v2007_v20 = vmul.f32 0.5, %v2006_v42 }
 0x9d2   : > { %v2008_v43 = vmul.f32 %v2007_v20, %v1995_v32 }
 0x9d4   : > { %v2009_v44 = vpack.c.bf16 %v2008_v43, %v2008_v43 }
 0x9d6   : > { %2419 = vmatmul.mubr.msk.bf16.vlgmr.msra.gmra.mrb[20].mxu1 %vm2049_vm6, %v2009_v44 }
 0xaa9   : > { %v2087_v46 = vpop.f32.mrb[20].mxu1 }
 0xaaa   : > { %v2088_v7 = vadd.f32 %v2296_v41, %v2087_v46  ;;  %v2420_v47 = vpop.f32.mrb[21].mxu1 }
 0xaab   : > { %v2090_v48 = vpop.f32.mrb[22].mxu1 }
 0xaac   : > { %v2421_v49 = vpop.f32.mrb[23].mxu1  ;;  %v2093_v50 = vadd.f32 %v2088_v7, %v1932_v58 }
 0xaae   : > { %v2094_v51 = vsel %vm583_vm1, %v2093_v50, 0.0 }
 0xaaf   : > { %2095 = vadd.xlane.f32.xlu0 %v2094_v51 }
 0xb3c   : > { %v2096_v40 = vpop.xlane.xlu0 %2095 }
 0xb3d   : > { %v2097_v45 = vmul.f32 0.03125, %v2096_v40 }
 0xb3f   : > { %v2098_v54 = vsub.f32 %v2093_v50, %v2097_v45 }
 0xb41   : > { %v2099_v12 = vmul.f32 %v2098_v54, %v2098_v54 }
 0xb43   : > { %v2100_v25 = vsel %vm583_vm1, %v2099_v12, 0.0 }
 0xb44   : > { %2101 = vadd.xlane.f32.xlu1 %v2100_v25 }
 0xbd1   : > { %v2102_v11 = vpop.xlane.xlu1 %2101 }
 0xbd2   : > { %v2103_v13 = vmul.f32 0.03125, %v2102_v11 }
 0xbd4   : > { %v2104_v55 = vadd.f32 1e-05, %v2103_v13 }
 0xbd6   : > { %2565 = vrsqrt.f32 %v2104_v55 }
 0xbe0   : > { %v2566_v56 = vpop.eup %2565 }
 0xbe1   : > { %v2106_v36 = vmul.f32 %v2566_v56, %v2098_v54 }
 0xbe3   : > { %v2114_v60 = vmul.f32 %v2302_v57, %v2106_v36 }
 0xbe5   : > { %v2122_v52 = vadd.f32 %v2303_v59, %v2114_v60 }
 0xbe7   : > { %2123 = vst.msk [vmem:[%s552_s15] sm:$0xff] %vm583_vm1, %v2122_v52 }
 0xbe8   : > { %2720 = shalt.err (!%p2717_p10)
}
 0xbe9   : > { %s2721_s19 = scalar_lea.hbm %s3354_s18, 128  ;;  %s2725_s13 = scalar_lea.hbm %s3455_s24, 256 }
 0xbea   : > { %p2722_p0 = scmp.ne.s32.totalorder %s3354_s18, %s2721_s19  ;;  %p2726_p4 = scmp.lt.u32.totalorder %s3354_s18, %s3455_s24 }
 0xbeb   : > { %p2727_p12 = scmp.lt.u32.totalorder %s2725_s13, %s2721_s19  ;;  %p2729_p8 = scmp.lt.u32.totalorder %s2721_s19, %s3354_s18 }
 0xbec   : > { %p2723_p2 = pnand %p2722_p0, %p3456_p11 }
 0xbed   : > { %p2728_p7 = por %p2727_p12, %p2726_p4 }
 0xbee   : > { %p2724_p3 = pneg %p2723_p2 }
 0xbef   : > { %p2730_p13 = por %p2729_p8, %p2728_p7 }
 0xbf1   : > { %p2731_p1 = pnand %p2730_p13, %p2724_p3 }
 0xbf3   : > { %2734 = shalt.err (!%p2731_p1)
}
 0xbf4   : > { %2442 = dma.vmem_to_hbm [thread:$0]  (%p3456_p11), %s3356_s30, 128, %s3354_s18, %s2125_s14  }
 0xbf5 PF: > { %s3457_s20 = sld [smem:[#allocation19_spill]]  ;;  %s3458_s15 = sld [smem:[#allocation16_spill]] }
 0xbf6   : > { %s3459_s23 = sld [smem:[#allocation23_spill]] }
 0xbfb   : > { %p2474_p6 = scmp.ge.s32.totalorder %s3457_s20, 2  ;;  %s2150_s16 = sand.u32 1, %s3458_s15  }
 0xbfc   : > { %p3460_p9 = scmp.ne.s32.totalorder %s3459_s23, 0  ;;  %s2151_s5 = scalar_lea.sflag [#allocation4], %s2150_s16 }
 0xbfe   : > { %p2461_p5 = pnand %p2474_p6, %p3460_p9 }
 0xc00   : > { %2764 = dma.done.wait (!%p2461_p5), %s2151_s5, 128  }
 0xc01   : > { %2766 = vsyncadd (!%p2461_p5), %s2151_s5, 4294967168  ;;  %s3461_s21 = sld [smem:[#allocation20_spill]]  ;;  %s3462_s18 = sld [smem:[#allocation17_spill]] }
 0xc02   : > { %s3463_s19 = sld [smem:[#allocation18_spill]]  ;;  %s3464_s20 = sld [smem:[#allocation21_spill]] }
 0xc07   : > { %p28_p10 = scmp.ge.s32.totalorder %s3461_s21, 4  }
 0xc09   :  { %30 = sbr.rel (!%p28_p10) target bundleno = 11 (0xb), region = 136 }
 0xc10   :  { %2156 = vsyncpa [#allocation3], 1 }
 0xc11   :  { %2158 = vsyncpa [#allocation3 + $0x1], 1 }
 0xc12   :  { %2159 = vsyncpa [#allocation6], 1 }
 0xc13   :  { %2160 = vsyncpa [#allocation9], 1 }
 0xc14   :  { %2161 = vsyncpa [#allocation4], 1 }
 0xc15   :  { %2163 = vsyncpa [#allocation4 + $0x1], 1 }

// kernel: tpu_custom_call.1
= control target key start
LH: loop header
LB: loop body
LE: loop exit
PB: predicated region body
PF: predicated region fallthrough
CT: control target
= control target key end

     0   :  { %s3397_s0 = inlined_call_operand.vmem [shape: f32[16,32], index: 0, kind: input, shape index: {}]   ;;  %s3398_s1 = inlined_call_operand.vmem [shape: f32[4,8,8], index: 1, kind: input, shape index: {}]   ;;  %s3399_s2 = inlined_call_operand.hbm [shape: bf16[32,104], index: 2, kind: input, shape index: {}]   ;;  %s3400_s3 = inlined_call_operand.vmem [shape: f32[1,104], index: 3, kind: input, shape index: {}]   ;;  %s3401_s4 = inlined_call_operand.vmem [shape: f32[1,4], index: 4, kind: input, shape index: {}]   ;;  %s3402_s5 = inlined_call_operand.hbm [shape: bf16[32,32], index: 5, kind: input, shape index: {}]   ;;  %s3403_s6 = inlined_call_operand.hbm [shape: f32[1,32], index: 6, kind: input, shape index: {}]   ;;  %s3404_s7 = inlined_call_operand.hbm [shape: f32[1,32], index: 7, kind: input, shape index: {}]   ;;  %s3405_s8 = inlined_call_operand.hbm [shape: f32[1,32], index: 8, kind: input, shape index: {}]   ;;  %s3406_s9 = inlined_call_operand.vmem [shape: bf16[32,64], index: 9, kind: input, shape index: {}]   ;;  %s3407_s10 = inlined_call_operand.vmem [shape: f32[1,64], index: 10, kind: input, shape index: {}]   ;;  %s3408_s11 = inlined_call_operand.vmem [shape: bf16[64,32], index: 11, kind: input, shape index: {}]   ;;  %s3409_s12 = inlined_call_operand.vmem [shape: f32[1,32], index: 12, kind: input, shape index: {}]   ;;  %s3410_s13 = inlined_call_operand.vmem [shape: f32[1,32], index: 13, kind: input, shape index: {}]   ;;  %s3411_s14 = inlined_call_operand.vmem [shape: f32[1,32], index: 14, kind: input, shape index: {}]   ;;  %s3412_s15 = inlined_call_operand.hbm [shape: f32[16,32], index: 15, kind: output, shape index: {}]  }
   0x1   :  { %3426 = sst [smem:[#allocation24_spill]] %s3402_s5 }
   0x2   :  { %3427 = sst [smem:[#allocation25_spill]] %s3410_s13 }
   0x3   :  { %3428 = sst [smem:[#allocation26_spill]] %s3411_s14 }
   0x4   :  { %3429 = sst [smem:[#allocation27_spill]] %s3412_s15 }
   0x5   :  { %20 = vsyncpa [#allocation3], 0 }
   0x6   :  { %21 = vsyncpa [#allocation6], 0 }
   0x7   :  { %22 = vsyncpa [#allocation9], 0 }
   0x8   :  { %23 = vsyncpa [#allocation4], 0 }
   0x9   :  { %25 = vsyncpa [#allocation4 + $0x1], 0  ;;  %s2886_s18 = smov 0   ;;  %s2888_s19 = smov 0  }
   0xa   :  { %s2890_s20 = smov 0   ;;  %s2892_s21 = smov 0  }
   0xb LB: > { %3430 = sst [smem:[#allocation16_spill]] %s2769_s18  ;;  %s2907_s22 = sadd.s32 4294967295, %s2781_s21   ;;  %s2781_s21 = sphi %s2892_s21, %s3461_s21   ;;  %s2777_s20 = sphi %s2890_s20, %s3464_s20   ;;  %s2773_s19 = sphi %s2888_s19, %s3463_s19   ;;  %s2769_s18 = sphi %s2886_s18, %s3462_s18  }
   0xc   : > { %3431 = sst [smem:[#allocation17_spill]] %s2773_s19  ;;  %s2247_s23 = sadd.s32 4294967294, %s2781_s21  }
   0xd   : > { %3432 = sst [smem:[#allocation18_spill]] %s2777_s20  ;;  %s2911_s24 = sadd.s32 1, %s2781_s21  }
   0xe   : > { %3433 = sst [smem:[#allocation19_spill]] %s2781_s21  ;;  %s358_s25 = sadd.s32 1, %s2777_s20 }
   0xf   : > { %3434 = sst [smem:[#allocation20_spill]] %s2911_s24  ;;  %s355_s26 = ssub.s32 %s2781_s21, %s2911_s24 }
  0x10   : > { %p368_p0 = scmp.ne.s32.totalorder %s2777_s20, %s2773_s19  ;;  %p356_p1 = scmp.eq.s32.totalorder %s355_s26, 0 }
  0x11   : > { %p369_p2 = scmp.eq.s32.totalorder %s2907_s22, 1  ;;  %p374_p3 = scmp.ne.s32.totalorder %s2773_s19, %s2769_s18 }
  0x12   : > { %p375_p4 = scmp.eq.s32.totalorder %s2247_s23, 1  ;;  %p2248_p7 = scmp.ge.s32.totalorder %s2781_s21, 1 }
  0x13   : > { %s2922_s27 = scalar_select %p356_p1, %s2777_s20, %s358_s25  }
  0x14   : > { %p2924_p5 = por %p369_p2, %p368_p0  ;;  %p2928_p6 = por %p375_p4, %p374_p3 }
  0x15   : > { %3435 = sst [smem:[#allocation21_spill]] %s2922_s27  ;;  %p382_p8 = scmp.lt.s32.totalorder %s2781_s21, 3 }
  0x16   : > { %s3436_s28 = scalar_select %p2924_p5, 1, 0 }
  0x17   : > { %s3438_s29 = scalar_select %p2928_p6, 1, 0 }
  0x18   : > { %3437 = sst [smem:[#allocation22_spill]] %s3436_s28  ;;  %p3420_p9 = scmp.eq.s32.totalorder %s2907_s22, 0 }
  0x19   : > { %3439 = sst [smem:[#allocation23_spill]] %s3438_s29  ;;  %p2935_p10 = pnand %p2248_p7, %p382_p8 }
  0x1a   : > { %s2783_s16 = smov [#allocation5]   ;;  %s2784_s25 = smov [#allocation8]  }
  0x1b   : > { %s3440_s30 = scalar_select %p2935_p10, 1, 0 }
  0x1c   : > { %p2444_p11 = pneg %p2935_p10  ;;  %s416_s17 = sshll.u32 %s2783_s16, 4  ;;  %s2941_s17 = int_to_ptr.vmem [resolvable:$true] %s416_s17 }
  0x1d   : > { %s441_s26 = sshll.u32 %s2784_s25, 4  ;;  %s2785_s27 = smov [#allocation2]   ;;  %s2949_s26 = int_to_ptr.vmem [resolvable:$true] %s441_s26 }
  0x1e   : > { %p2945_p12 = pnand %p3420_p9, %p2444_p11  ;;  %s2951_s20 = sshll.u32 %s2785_s27, 4  ;;  %s398_s20 = int_to_ptr.vmem [resolvable:$true] %s2951_s20 }
  0x1f   : > { %s3442_s5 = sld [smem:[#allocation24_spill]] }
  0x20   : > { %p2961_p0 = pneg %p2945_p12 }
  0x25   : > { %s2567_s18 = scalar_lea.hbm %s3442_s5, 256 }
  0x26   : > { %p2568_p13 = scmp.ne.s32.totalorder %s3442_s5, %s2567_s18  ;;  %p2574_p3 = scmp.lt.u32.totalorder %s2567_s18, %s3442_s5 }
  0x28   : > { %p2570_p1 = pnand %p2961_p0, %p2568_p13 }
  0x2a   : > { %p2571_p2 = pneg %p2570_p1 }
  0x2c   : > { %p2576_p4 = pnand %p2574_p3, %p2571_p2 }
  0x2e   : > { %2579 = shalt.err (!%p2576_p4)
}
  0x2f   : > { %s2580_s21 = scalar_lea.vmem %s2941_s17, 256  ;;  %p2588_p9 = scmp.lt.s32.totalorder %s2941_s17, %s2941_s17 }
  0x30   : > { %p2581_p7 = scmp.ne.s32.totalorder %s2941_s17, %s2580_s21  ;;  %p2589_p6 = scmp.lt.s32.totalorder %s2580_s21, %s2580_s21 }
  0x32   : > { %p2583_p8 = pnand %p2581_p7, %p2961_p0  ;;  %p2590_p13 = por %p2589_p6, %p2588_p9 }
  0x34   : > { %p2584_p11 = pneg %p2583_p8 }
  0x36   : > { %p2591_p1 = pnand %p2590_p13, %p2584_p11 }
  0x38   : > { %2594 = shalt.err (!%p2591_p1)
}
  0x39   : > { %s2786_s24 = smov 64   ;;  %s2787_s18 = smov 4  }
  0x3a   : > { %2450 = dma.hbm_to_vmem [thread:$0]  (!%p2945_p12), %s3442_s5, 256, %s2941_s17, [#allocation6], %s2786_s24, %s2786_s24, %s2787_s18  }
  0x3b   : > { %s2595_s21 = scalar_lea.hbm %s3404_s7, 16 }
  0x3c   : > { %p2596_p6 = scmp.ne.s32.totalorder %s3404_s7, %s2595_s21  ;;  %p2602_p3 = scmp.lt.u32.totalorder %s2595_s21, %s3404_s7 }
  0x3e   : > { %p2598_p9 = pnand %p2596_p6, %p2961_p0 }
  0x40   : > { %p2599_p2 = pneg %p2598_p9 }
  0x42   : > { %p2604_p4 = pnand %p2602_p3, %p2599_p2 }
  0x44   : > { %2607 = shalt.err (!%p2604_p4)
}
  0x45   : > { %s2608_s17 = scalar_lea.vmem %s2949_s26, 16  ;;  %s2615_s13 = scalar_lea.vmem %s2949_s26, 32 }
  0x46   : > { %p2609_p7 = scmp.ne.s32.totalorder %s2949_s26, %s2608_s17  ;;  %p2616_p13 = scmp.lt.s32.totalorder %s2949_s26, %s2949_s26 }
  0x47   : > { %p2617_p1 = scmp.lt.s32.totalorder %s2615_s13, %s2608_s17 }
  0x48   : > { %p2611_p8 = pnand %p2609_p7, %p2961_p0 }
  0x49   : > { %p2618_p6 = por %p2617_p1, %p2616_p13 }
  0x4a   : > { %p2612_p11 = pneg %p2611_p8 }
  0x4c   : > { %p2619_p9 = pnand %p2618_p6, %p2612_p11 }
  0x4e   : > { %2622 = shalt.err (!%p2619_p9)
}
  0x4f   : > { %2456 = dma.hbm_to_vmem [thread:$0]  (!%p2945_p12), %s3404_s7, 16, %s2949_s26, [#allocation9]  }
  0x50   : > { %s2623_s16 = scalar_lea.hbm %s3399_s2, 256 }
  0x51   : > { %p2624_p2 = scmp.ne.s32.totalorder %s3399_s2, %s2623_s16  ;;  %p2630_p7 = scmp.lt.u32.totalorder %s2623_s16, %s3399_s2 }
  0x53   : > { %p2626_p3 = pnand %p2624_p2, %p2961_p0 }
  0x55   : > { %p2627_p4 = pneg %p2626_p3 }
  0x57   : > { %p2632_p8 = pnand %p2630_p7, %p2627_p4 }
  0x59   : > { %2635 = shalt.err (!%p2632_p8)
}
  0x5a   : > { %s2636_s13 = scalar_lea.vmem %s398_s20, 256  ;;  %p2644_p6 = scmp.lt.s32.totalorder %s398_s20, %s398_s20 }
  0x5b   : > { %p2637_p11 = scmp.ne.s32.totalorder %s398_s20, %s2636_s13  ;;  %p2645_p9 = scmp.lt.s32.totalorder %s2636_s13, %s2636_s13 }
  0x5d   : > { %p2639_p13 = pnand %p2637_p11, %p2961_p0  ;;  %p2646_p5 = por %p2645_p9, %p2644_p6 }
  0x5f   : > { %p2640_p1 = pneg %p2639_p13 }
  0x61   : > { %p2647_p10 = pnand %p2646_p5, %p2640_p1 }
  0x63   : > { %2650 = shalt.err (!%p2647_p10)
}
  0x64   : > { %2447 = dma.hbm_to_vmem [thread:$0]  (!%p2945_p12), %s3399_s2, 256, %s398_s20, [#allocation3], %s2786_s24, %s2786_s24, %s2787_s18  }
  0x65   : > { %s2788_s19 = smov [#allocation7]   ;;  %s2789_s29 = smov [#allocation10]  }
  0x66   : > { %s430_s28 = sshll.u32 %s2788_s19, 4  ;;  %s452_s16 = sshll.u32 %s2789_s29, 4  ;;  %s431_s28 = int_to_ptr.vmem [resolvable:$true] %s430_s28  ;;  %s453_s16 = int_to_ptr.vmem [resolvable:$true] %s452_s16 }
  0x67   : > { %s2651_s21 = scalar_lea.hbm %s3403_s6, 16 }
  0x68   : > { %p2652_p5 = scmp.ne.s32.totalorder %s3403_s6, %s2651_s21  ;;  %p2658_p3 = scmp.lt.u32.totalorder %s2651_s21, %s3403_s6 }
  0x6a   : > { %p2654_p10 = pnand %p2652_p5, %p2961_p0 }
  0x6c   : > { %p2655_p2 = pneg %p2654_p10 }
  0x6e   : > { %p2660_p4 = pnand %p2658_p3, %p2655_p2 }
  0x70   : > { %2663 = shalt.err (!%p2660_p4)
}
  0x71   : > { %s2664_s20 = scalar_lea.vmem %s431_s28, 16  ;;  %s2671_s24 = scalar_lea.vmem %s431_s28, 32 }
  0x72   : > { %p2665_p7 = scmp.ne.s32.totalorder %s431_s28, %s2664_s20  ;;  %p2672_p13 = scmp.lt.s32.totalorder %s431_s28, %s431_s28 }
  0x73   : > { %p2673_p1 = scmp.lt.s32.totalorder %s2671_s24, %s2664_s20 }
  0x74   : > { %p2667_p8 = pnand %p2665_p7, %p2961_p0 }
  0x75   : > { %p2674_p6 = por %p2673_p1, %p2672_p13 }
  0x76   : > { %p2668_p11 = pneg %p2667_p8 }
  0x78   : > { %p2675_p9 = pnand %p2674_p6, %p2668_p11 }
  0x7a   : > { %2678 = shalt.err (!%p2675_p9)
}
  0x7b   : > { %2453 = dma.hbm_to_vmem [thread:$0]  (!%p2945_p12), %s3403_s6, 16, %s431_s28, [#allocation6]  }
  0x7c   : > { %s2679_s29 = scalar_lea.hbm %s3405_s8, 16 }
  0x7d   : > { %p2680_p5 = scmp.ne.s32.totalorder %s3405_s8, %s2679_s29  ;;  %p2686_p3 = scmp.lt.u32.totalorder %s2679_s29, %s3405_s8 }
  0x7f   : > { %p2682_p10 = pnand %p2680_p5, %p2961_p0 }
  0x81   : > { %p2683_p2 = pneg %p2682_p10 }
  0x83   : > { %p2688_p4 = pnand %p2686_p3, %p2683_p2 }
  0x85   : > { %2691 = shalt.err (!%p2688_p4)
}
  0x86   : > { %s2692_s13 = scalar_lea.vmem %s453_s16, 16  ;;  %s2699_s28 = scalar_lea.vmem %s453_s16, 32 }
  0x87   : > { %p2693_p7 = scmp.ne.s32.totalorder %s453_s16, %s2692_s13  ;;  %p2700_p13 = scmp.lt.s32.totalorder %s453_s16, %s453_s16 }
  0x88   : > { %p2701_p1 = scmp.lt.s32.totalorder %s2699_s28, %s2692_s13 }
  0x89   : > { %p2695_p8 = pnand %p2693_p7, %p2961_p0 }
  0x8a   : > { %p2702_p6 = por %p2701_p1, %p2700_p13 }
  0x8b   : > { %p2696_p11 = pneg %p2695_p8 }
  0x8d   : > { %p2703_p9 = pnand %p2702_p6, %p2696_p11 }
  0x8f   : > { %2706 = shalt.err (!%p2703_p9)
}
  0x90   : > { %2459 = dma.hbm_to_vmem [thread:$0]  (!%p2945_p12), %s3405_s8, 16, %s453_s16, [#allocation9]  }
  0x91   : > { %p3444_p5 = scmp.ne.s32.totalorder %s3440_s30, 0 }
  0x92   : > { %p3445_p10 = scmp.eq.s32.totalorder (!%p3444_p5), %s2907_s22, 0 }
  0x93   : > { %490 = sbr.rel (%p3444_p5) target bundleno = 3061 (0xbf5), region = 80 }
  0x9a   : > { %2752 = dma.done.wait (%p3445_p10), [#allocation3], 256   ;;  %p3446_p0 = pmov %p3445_p10 }
  0x9c   : > { %2754 = vsyncadd (%p3446_p0), [#allocation3], 4294967040  ;;  %p3447_p2 = pmov %p3446_p0 }
  0x9d   : > { %p3448_p3 = pmov %p3446_p0 }
  0x9e   : > { %2756 = dma.done.wait (%p3447_p2), [#allocation6], 272  }
  0x9f   : > { %2758 = vsyncadd (%p3448_p3), [#allocation6], 4294967024  ;;  %p3449_p4 = pmov %p3446_p0 }
  0xa0   : > { %p3450_p12 = pmov %p3446_p0 }
  0xa1   : > { %2760 = dma.done.wait (%p3449_p4), [#allocation9], 32  }
  0xa2   : > { %2762 = vsyncadd (%p3450_p12), [#allocation9], 4294967264  ;;  %p553_p7 = scmp.lt.s32.totalorder %s2907_s22, 1  ;;  %v2790_v0 = vmov 0.0   ;;  %vm2791_vm0 = vmmov 0   ;;  %v2531_v1 = vld [vmem:[#allocation2] sm:$0xff]   ;;  %v665_v18 = vlaneseq }
  0xa3   : > { %2338 = vmatprep.subr.bf16.mxu0 %v2790_v0  ;;  %2342 = vmatprep.mubr.msk.bf16.mxu0 %vm2791_vm0, %v2790_v0  ;;  %v2532_v2 = vld [vmem:[#allocation2 + $0x8] sm:$0xff]   ;;  %vm583_vm1 = vcmask 261120   ;;  %v2263_v5 = vld [vmem:[%s3400_s3] ss:$0 sm:$0xff]  ;;  %s2792_s5 = smov 104   ;;  %s2793_s19 = smov 120  }
  0xa4   : > { %s554_s15 = scalar_select %p553_p7, %s2907_s22, 1  ;;  %2346 = vmatprep.subr.bf16.mxu1 %v2790_v0  ;;  %2348 = vmatprep.mubr.msk.bf16.mxu1 %vm2791_vm0, %v2790_v0  ;;  %v2268_v14 = vld [vmem:[%s3401_s4] ss:$0 sm:$0xff]  ;;  %v2797_v16 = vmov 1983009808   ;;  %v3123_v20 = vshrl.u32 %v665_v18, 7 }
  0xa5   : > { %2339 = vmatpush3.bf16.msra.mxu0 %v2531_v1  ;;  %s2794_s29 = smov 96   ;;  %s2795_s25 = smov 112   ;;  %v663_v17 = vunpack.c.l.s4 %v2797_v16  ;;  %v2798_v22 = vmov 1934713408   ;;  %vm1260_vm2 = vcmask 64512   ;;  %vm1500_vm3 = vcmask 1043456  }
  0xa6   : > { %s2262_s30 = sshll.u32 %s554_s15, 3  ;;  %2340 = vmatprep.subr.bf16.mxu0 %v2790_v0  ;;  %s2796_s17 = smov 100   ;;  %v695_v23 = vunpack.c.l.s4 %v2798_v22  ;;  %vm1831_vm4 = vcmask 130048   ;;  %vm1833_vm5 = vcmask 195584   ;;  %vm2049_vm6 = vcmask 523264  }
  0xa7   : > { %s556_s24 = scalar_lea.vmem %s3397_s0, %s2262_s30  ;;  %v664_v19 = vunpack.c.0.s8 %v663_v17  ;;  %s2799_s13 = smov 124  }
  0xa8   : > { %v3092_v3 = vld [vmem:[%s556_s24] sm:$0xff]  ;;  %v696_v30 = vunpack.c.0.s8 %v695_v23  ;;  %s2801_s18 = smov 64   ;;  %s2802_s14 = smov 16  }
  0xa9   : > { %v559_v4 = vpack.c.bf16 %v3092_v3, %v3092_v3  ;;  %2341 = vmatpush3.bf16.msra.mxu0 %v2532_v2  ;;  %v3128_v25 = vsub.s32 %v664_v19, %v3123_v20  ;;  %s3454_s26 = sld [smem:[#allocation26_spill]]  ;;  %s2305_s20 = sshll.u32 %s2907_s22, 7 }
  0xaa   : > { %2352 = vmatprep.subr.bf16.mxu0 %v2790_v0  ;;  %v3141_v36 = vsub.s32 %v696_v30, %v3123_v20  ;;  %s3455_s24 = sld [smem:[#allocation27_spill]]  ;;  %s2805_s22 = smov [#allocation11]  }
  0xac   : > { %2343 = vmatmul.mubr.msk.bf16.vlgmr.msra.gmra.mrb[0].mxu0 %vm583_vm1, %v559_v4 }
  0xad   : > { %2354 = vmatprep.mubr.msk.bf16.mxu0 %vm2791_vm0, %v2790_v0 }
 0x17f   : > { %v621_v6 = vpop.f32.mrb[0].mxu0 }
 0x180   : > { %v3104_v7 = vadd.f32 %v2263_v5, %v621_v6  ;;  %v2344_v8 = vpop.f32.mrb[1].mxu0 }
 0x181   : > { %v624_v9 = vpop.f32.mrb[2].mxu0 }
 0x182   : > { %657 = vrot.lane.b32.xlu1 %v3104_v7, %s2792_s5  ;;  %651 = vrot.lane.b32.xlu0 %v3104_v7, %s2793_s19  ;;  %v2345_v10 = vpop.f32.mrb[3].mxu0  ;;  %v2267_v15 = vmul.f32 -1.442695, %v3104_v7  ;;  %s2803_s5 = smov 8   ;;  %s2804_s19 = smov 24  }
 0x184   : > { %2541 = vpow2.f32 %v2267_v15 }
 0x186   : > { %796 = vrot.lane.b32.xlu1 %v3104_v7, %s2794_s29  ;;  %654 = vrot.lane.b32.xlu0 %v3104_v7, %s2795_s25  ;;  %s3452_s25 = sld [smem:[#allocation22_spill]] }
 0x18c   : > { %p3456_p11 = scmp.ne.s32.totalorder %s3452_s25, 0 }
 0x18e   : > { %v2542_v21 = vpop.eup %2541 }
 0x18f   : > { %v630_v28 = vadd.f32 1.0, %v2542_v21 }
 0x191   : > { %2543 = vrcp.f32 %v630_v28 }
 0x19b   : > { %v3151_v58 = vpop.eup %2543 }
 0x1f4   : > { %v3110_v11 = vpop.permute.xlu0 %651  ;;  %v3113_v12 = vpop.permute.xlu1 %657 }
 0x1f5   : > { %798 = vrot.lane.b32.xlu0 %v3110_v11, %s2794_s29  ;;  %v676_v26 = vcombine.low %v3110_v11, %v3113_v12  ;;  %v677_v29 = vcombine.high %v3110_v11, %v3113_v12 }
 0x1f7   : > { %v684_v32 = vrot.slane %v676_v26, %v3128_v25  ;;  %v691_v34 = vrot.slane %v677_v29, %v3128_v25 }
 0x1f8   : > { %v3115_v13 = vpop.permute.xlu0 %654  ;;  %v797_v35 = vpop.permute.xlu1 %796 }
 0x1f9   : > { %802 = vrot.lane.b32.xlu0 %v3113_v12, %s2794_s29  ;;  %800 = vrot.lane.b32.xlu1 %v3115_v13, %s2794_s29  ;;  %v660_v24 = vcombine.low %v3104_v7, %v3115_v13  ;;  %v661_v27 = vcombine.high %v3104_v7, %v3115_v13 }
 0x1fb   : > { %v668_v31 = vrot.slane %v660_v24, %v3128_v25  ;;  %v675_v33 = vrot.slane %v661_v27, %v3128_v25 }
 0x1fd   : > { %639 = vrot.lane.b32.xlu1 %v2268_v14, %s2796_s17  ;;  %v692_v37 = vcombine.low %v668_v31, %v684_v32  ;;  %v693_v38 = vcombine.high %v668_v31, %v684_v32  ;;  %v708_v40 = vcombine.low %v675_v33, %v691_v34  ;;  %v709_v41 = vcombine.high %v675_v33, %v691_v34  ;;  %s3453_s17 = sld [smem:[#allocation25_spill]] }
 0x1ff   : > { %v700_v42 = vrot.slane %v692_v37, %v3141_v36  ;;  %v707_v43 = vrot.slane %v693_v38, %v3141_v36  ;;  %v716_v50 = vrot.slane %v708_v40, %v3141_v36  ;;  %v723_v51 = vrot.slane %v709_v41, %v3141_v36 }
 0x201   : > { %v728_v56 = vcombine.low %v700_v42, %v707_v43  ;;  %v2270_v63 = vcombine.high %v700_v42, %v707_v43  ;;  %v744_v1 = vcombine.low %v716_v50, %v723_v51  ;;  %v2271_v2 = vcombine.high %v716_v50, %v723_v51 }
 0x203   : > { %v735_v18 = vrot.slane %v728_v56, %v3128_v25  ;;  %v743_v19 = vrot.slane %v2270_v63, %v3128_v25  ;;  %v751_v21 = vrot.slane %v744_v1, %v3128_v25  ;;  %v759_v22 = vrot.slane %v2271_v2, %v3128_v25 }
 0x205   : > { %v760_v34 = vcombine.low %v735_v18, %v743_v19  ;;  %v777_v50 = vcombine.high %v751_v21, %v759_v22 }
 0x207   : > { %v768_v43 = vrot.slane %v760_v34, %v3141_v36 }
 0x267   : > { %v799_v39 = vpop.permute.xlu0 %798 }
 0x26b   : > { %v801_v44 = vpop.permute.xlu1 %800  ;;  %v803_v45 = vpop.permute.xlu0 %802 }
 0x26c   : > { %v808_v46 = vcombine.low %v797_v35, %v801_v44  ;;  %v809_v47 = vcombine.high %v797_v35, %v801_v44  ;;  %v824_v48 = vcombine.low %v799_v39, %v803_v45  ;;  %v825_v49 = vcombine.high %v799_v39, %v803_v45 }
 0x26d   : > { %v776_v35 = vcombine.low %v751_v21, %v759_v22  ;;  %v1126_v21 = vsub.s32 4, %v3123_v20 }
 0x26e   : > { %v816_v52 = vrot.slane %v808_v46, %v3128_v25  ;;  %v823_v53 = vrot.slane %v809_v47, %v3128_v25  ;;  %v832_v54 = vrot.slane %v824_v48, %v3128_v25  ;;  %v839_v55 = vrot.slane %v825_v49, %v3128_v25 }
 0x26f   : > { %v640_v57 = vpop.permute.xlu1 %639  ;;  %v784_v44 = vrot.slane %v776_v35, %v3141_v36  ;;  %v761_v49 = vcombine.high %v735_v18, %v743_v19  ;;  %v1134_v19 = vsub.s32 5, %v3123_v20 }
 0x270   : > { %v840_v59 = vcombine.low %v816_v52, %v832_v54  ;;  %v841_v60 = vcombine.high %v816_v52, %v832_v54  ;;  %v856_v61 = vcombine.low %v823_v53, %v839_v55  ;;  %v857_v62 = vcombine.high %v823_v53, %v839_v55 }
 0x271   : > { %v642_v4 = vmul.f32 %v3151_v58, %v640_v57  ;;  %v792_v51 = vcombine.low %v768_v43, %v784_v44  ;;  %v793_v52 = vcombine.high %v768_v43, %v784_v44  ;;  %v775_v57 = vrot.slane %v761_v49, %v3141_v36 }
 0x272   : > { %v848_v5 = vrot.slane %v840_v59, %v3141_v36  ;;  %v855_v6 = vrot.slane %v841_v60, %v3141_v36  ;;  %v864_v8 = vrot.slane %v856_v61, %v3141_v36  ;;  %v871_v9 = vrot.slane %v857_v62, %v3141_v36 }
 0x273   : > { %v2269_v10 = vadd.f32 -1.0, %v642_v4  ;;  %v1252_v55 = vpack.c.bf16 %v792_v51, %v792_v51  ;;  %v1253_v56 = vpack.c.bf16 %v793_v52, %v793_v52  ;;  %v791_v59 = vrot.slane %v777_v50, %v3141_v36 }
 0x274   : > { %v876_v14 = vcombine.low %v848_v5, %v855_v6  ;;  %v2272_v15 = vcombine.high %v848_v5, %v855_v6  ;;  %v892_v16 = vcombine.low %v864_v8, %v871_v9  ;;  %v2273_v17 = vcombine.high %v864_v8, %v871_v9 }
 0x275   : > { %645 = vrot.lane.b32.xlu0 %v2269_v10, %s2799_s13  ;;  %v794_v62 = vcombine.low %v775_v57, %v791_v59  ;;  %v795_v63 = vcombine.high %v775_v57, %v791_v59  ;;  %v1102_v6 = vsub.s32 1, %v3123_v20  ;;  %v1094_v8 = vsub.s32 0, %v3123_v20 }
 0x276   : > { %v883_v23 = vrot.slane %v876_v14, %v3128_v25  ;;  %v891_v24 = vrot.slane %v2272_v15, %v3128_v25  ;;  %v899_v26 = vrot.slane %v892_v16, %v3128_v25  ;;  %v907_v27 = vrot.slane %v2273_v17, %v3128_v25 }
 0x277   : > { %v1254_v1 = vpack.c.bf16 %v794_v62, %v794_v62  ;;  %v1255_v2 = vpack.c.bf16 %v795_v63, %v795_v63  ;;  %v1118_v15 = vsub.s32 3, %v3123_v20  ;;  %v1110_v16 = vsub.s32 2, %v3123_v20 }
 0x278   : > { %v908_v28 = vcombine.low %v883_v23, %v891_v24  ;;  %v924_v29 = vcombine.low %v899_v26, %v907_v27  ;;  %v909_v30 = vcombine.high %v883_v23, %v891_v24  ;;  %v925_v31 = vcombine.high %v899_v26, %v907_v27 }
 0x279   : > { %v1150_v24 = vsub.s32 7, %v3123_v20  ;;  %v1142_v26 = vsub.s32 6, %v3123_v20 }
 0x27a   : > { %v916_v32 = vrot.slane %v908_v28, %v3141_v36  ;;  %v932_v33 = vrot.slane %v924_v29, %v3141_v36  ;;  %v923_v39 = vrot.slane %v909_v30, %v3141_v36  ;;  %v939_v40 = vrot.slane %v925_v31, %v3141_v36 }
 0x27c   : > { %v940_v37 = vcombine.low %v916_v32, %v932_v33  ;;  %v941_v38 = vcombine.high %v916_v32, %v932_v33  ;;  %v942_v47 = vcombine.low %v923_v39, %v939_v40  ;;  %v943_v48 = vcombine.high %v923_v39, %v939_v40 }
 0x27e   : > { %v1256_v41 = vpack.c.bf16 %v940_v37, %v940_v37  ;;  %v1257_v42 = vpack.c.bf16 %v941_v38, %v941_v38  ;;  %v1258_v53 = vpack.c.bf16 %v942_v47, %v942_v47  ;;  %v1259_v54 = vpack.c.bf16 %v943_v48, %v943_v48 }
 0x280   : > { %v1265_v45 = vsel %vm1260_vm2, %v1256_v41, 0  ;;  %v1311_v46 = vsel %vm1260_vm2, %v1257_v42, 0  ;;  %v1357_v60 = vsel %vm1260_vm2, %v1258_v53, 0  ;;  %v1403_v61 = vsel %vm1260_vm2, %v1259_v54, 0 }
 0x281   : > { %2347 = vmatpush3.bf16.xpose.msra.mxu1 %v1265_v45  ;;  %2353 = vmatpush3.bf16.xpose.msra.mxu0 %v1311_v46 }
 0x282   : > { %2358 = vmatprep.subr.bf16.mxu1 %v2790_v0  ;;  %2364 = vmatprep.subr.bf16.mxu0 %v2790_v0 }
 0x288   : > { %2349 = vmatmul.mubr.msk.bf16.vlgmr.msra.gmra.mrb[0].mxu1 %vm1260_vm2, %v1252_v55  ;;  %2355 = vmatmul.mubr.msk.bf16.vlgmr.msra.gmra.mrb[4].mxu0 %vm1260_vm2, %v1253_v56 }
 0x289   : > { %2359 = vmatpush3.bf16.xpose.msra.mxu1 %v1357_v60  ;;  %2365 = vmatpush3.bf16.xpose.msra.mxu0 %v1403_v61 }
 0x28a   : > { %2360 = vmatprep.mubr.msk.bf16.mxu1 %vm2791_vm0, %v2790_v0  ;;  %2366 = vmatprep.mubr.msk.bf16.mxu0 %vm2791_vm0, %v2790_v0 }
 0x28b   : > { %2370 = vmatprep.subr.bf16.mxu1 %v2790_v0  ;;  %2376 = vmatprep.subr.bf16.mxu0 %v2790_v0 }
 0x290   : > { %2361 = vmatmul.mubr.msk.bf16.vlgmr.msra.gmra.mrb[4].mxu1 %vm1260_vm2, %v1254_v1  ;;  %2367 = vmatmul.mubr.msk.bf16.vlgmr.msra.gmra.mrb[8].mxu0 %vm1260_vm2, %v1255_v2 }
 0x291   : > { %2372 = vmatprep.mubr.msk.bf16.mxu1 %vm2791_vm0, %v2790_v0  ;;  %2378 = vmatprep.mubr.msk.bf16.mxu0 %vm2791_vm0, %v2790_v0 }
 0x2e7   : > { %v646_v4 = vpop.permute.xlu0 %645 }
 0x2e8   : > { %v648_v5 = vmul.f32 %v3151_v58, %v646_v4  ;;  %v2800_v58 = vmov 0  }
 0x2e9   : > { %2530 = vset.pattern.permute.xlu0 %v2800_v58  ;;  %2529 = vset.pattern.permute.xlu1 %v2800_v58 }
 0x2ea   : > { %v649_v9 = vadd.f32 2.0, %v648_v5 }
 0x2ec   : > { %v1103_v10 = vrot.slane %v649_v9, %v1102_v6  ;;  %v1095_v14 = vrot.slane %v649_v9, %v1094_v8  ;;  %v1119_v17 = vrot.slane %v649_v9, %v1118_v15  ;;  %v1111_v18 = vrot.slane %v649_v9, %v1110_v16  ;;  %v1225_v16 = vld [vmem:[%s3398_s1 + $0x8] sm:$0xff] }
 0x2ed   : > { %v1135_v22 = vrot.slane %v649_v9, %v1134_v19  ;;  %v1127_v23 = vrot.slane %v649_v9, %v1126_v21  ;;  %v1151_v27 = vrot.slane %v649_v9, %v1150_v24  ;;  %v1143_v28 = vrot.slane %v649_v9, %v1142_v26 }
 0x2ee   : > { %1106 = vbcast.lane.b32.xlu0 %v1103_v10, 352  ;;  %1098 = vbcast.lane.b32.xlu1 %v1095_v14, 352 }
 0x2f2   : > { %1122 = vbcast.lane.b32.xlu0 %v1119_v17, 352  ;;  %1114 = vbcast.lane.b32.xlu1 %v1111_v18, 352  ;;  %v1224_v17 = vld [vmem:[%s3398_s1] sm:$0xff] }
 0x2f6   : > { %1138 = vbcast.lane.b32.xlu0 %v1135_v22, 352  ;;  %1130 = vbcast.lane.b32.xlu1 %v1127_v23, 352  ;;  %v1226_v22 = vld [vmem:[%s3398_s1 + $0x10] sm:$0xff] }
 0x2fa   : > { %1154 = vbcast.lane.b32.xlu0 %v1151_v27, 352  ;;  %1146 = vbcast.lane.b32.xlu1 %v1143_v28, 352 }
 0x35b   : > { %v1301_v29 = vpop.f32.mrb[0].mxu1  ;;  %v1347_v30 = vpop.f32.mrb[4].mxu0 }
 0x35c   : > { %v2350_v31 = vpop.f32.mrb[1].mxu1  ;;  %v2356_v32 = vpop.f32.mrb[5].mxu0 }
 0x35d   : > { %v1304_v33 = vpop.f32.mrb[2].mxu1  ;;  %v1350_v34 = vpop.f32.mrb[6].mxu0  ;;  %v1227_v32 = vld [vmem:[%s3398_s1 + $0x18] sm:$0xff] }
 0x35e   : > { %v2351_v35 = vpop.f32.mrb[3].mxu1  ;;  %v2357_v37 = vpop.f32.mrb[7].mxu0 }
 0x360   : > { %v1107_v38 = vpop.permute.xlu0 %1106  ;;  %v1099_v39 = vpop.permute.xlu1 %1098 }
 0x363   : > { %v1393_v40 = vpop.f32.mrb[4].mxu1  ;;  %v1439_v41 = vpop.f32.mrb[8].mxu0 }
 0x364   : > { %v1123_v42 = vpop.permute.xlu0 %1122  ;;  %v1115_v20 = vpop.permute.xlu1 %1114 }
 0x365   : > { %v2362_v43 = vpop.f32.mrb[5].mxu1  ;;  %v2368_v44 = vpop.f32.mrb[9].mxu0  ;;  %v1164_v47 = vcombine.low %v1107_v38, %v1123_v42  ;;  %v1156_v48 = vcombine.low %v1099_v39, %v1115_v20 }
 0x366   : > { %v1396_v45 = vpop.f32.mrb[6].mxu1  ;;  %v1442_v46 = vpop.f32.mrb[10].mxu0 }
 0x367   : > { %v2363_v49 = vpop.f32.mrb[7].mxu1  ;;  %v2369_v50 = vpop.f32.mrb[11].mxu0  ;;  %v1171_v53 = vrot.slane %v1164_v47, %v3128_v25  ;;  %v1163_v54 = vrot.slane %v1156_v48, %v3128_v25 }
 0x368   : > { %v1139_v51 = vpop.permute.xlu0 %1138  ;;  %v1131_v52 = vpop.permute.xlu1 %1130 }
 0x369   : > { %v1188_v60 = vcombine.low %v1163_v54, %v1171_v53  ;;  %v1189_v2 = vcombine.high %v1163_v54, %v1171_v53 }
 0x36b   : > { %v1196_v4 = vrot.slane %v1188_v60, %v3141_v36  ;;  %v1203_v10 = vrot.slane %v1189_v2, %v3141_v36 }
 0x36c   : > { %v1155_v55 = vpop.permute.xlu0 %1154  ;;  %v1147_v56 = vpop.permute.xlu1 %1146 }
 0x36d   : > { %v1180_v57 = vcombine.low %v1139_v51, %v1155_v55  ;;  %v1172_v59 = vcombine.low %v1131_v52, %v1147_v56 }
 0x36f   : > { %v1187_v61 = vrot.slane %v1180_v57, %v3128_v25  ;;  %v1179_v62 = vrot.slane %v1172_v59, %v3128_v25 }
 0x371   : > { %v1204_v63 = vcombine.low %v1179_v62, %v1187_v61  ;;  %v1205_v1 = vcombine.high %v1179_v62, %v1187_v61 }
 0x373   : > { %v1212_v5 = vrot.slane %v1204_v63, %v3141_v36  ;;  %v1219_v9 = vrot.slane %v1205_v1, %v3141_v36 }
 0x375   : > { %v1221_v6 = vcombine.high %v1196_v4, %v1212_v5  ;;  %v1220_v8 = vcombine.low %v1196_v4, %v1212_v5  ;;  %v1222_v14 = vcombine.low %v1203_v10, %v1219_v9  ;;  %v1223_v15 = vcombine.high %v1203_v10, %v1219_v9 }
 0x377   : > { %1235 = vperm.xlu0 %2530, %v1221_v6   ;;  %1230 = vperm.xlu1 %2529, %v1220_v8  }
 0x37b   : > { %1240 = vperm.xlu1 %2529, %v1222_v14  }
 0x37f   : > { %1245 = vperm.xlu1 %2529, %v1223_v15  }
 0x3f6   : > { %v1236_v18 = vpop.permute.xlu0 %1235  ;;  %v1231_v19 = vpop.permute.xlu1 %1230 }
 0x3f7   : > { %v1249_v21 = vmul.f32 %v1236_v18, %v1225_v16  ;;  %v1248_v58 = vmul.f32 %v1231_v19, %v1224_v17 }
 0x3f9   : > { %v1302_v23 = vadd.f32 %v1301_v29, %v1248_v58  ;;  %v1348_v24 = vadd.f32 %v1347_v30, %v1249_v21 }
 0x3fa   : > { %v1241_v26 = vpop.permute.xlu1 %1240 }
 0x3fb   : > { %v1250_v27 = vmul.f32 %v1241_v26, %v1226_v22  ;;  %v1445_v28 = vsel %vm1260_vm2, %v1302_v23, -inf  ;;  %v1448_v31 = vsel %vm1260_vm2, %v1348_v24, -inf }
 0x3fc   : > { %1446 = vmax.xlane.f32.xlu0 %v1445_v28  ;;  %1449 = vmax.xlane.f32.xlu1 %v1448_v31 }
 0x3fd   : > { %v1394_v33 = vadd.f32 %v1393_v40, %v1250_v27 }
 0x3fe   : > { %v1246_v34 = vpop.permute.xlu1 %1245 }
 0x3ff   : > { %v1251_v35 = vmul.f32 %v1246_v34, %v1227_v32  ;;  %v1451_v37 = vsel %vm1260_vm2, %v1394_v33, -inf }
 0x400   : > { %1452 = vmax.xlane.f32.xlu0 %v1451_v37 }
 0x401   : > { %v1440_v29 = vadd.f32 %v1439_v41, %v1251_v35 }
 0x403   : > { %v1454_v30 = vsel %vm1260_vm2, %v1440_v29, -inf }
 0x404   : > { %1455 = vmax.xlane.f32.xlu0 %v1454_v30 }
 0x40d   : > { %944 = vrot.lane.b32.xlu1 %v3104_v7, %s2801_s18 }
 0x489   : > { %v1447_v38 = vpop.xlane.xlu0 %1446  ;;  %v1450_v39 = vpop.xlane.xlu1 %1449 }
 0x48a   : > { %v1457_v42 = vsub.f32 %v1302_v23, %v1447_v38  ;;  %v1458_v20 = vsub.f32 %v1348_v24, %v1450_v39 }
 0x48c   : > { %v1461_v43 = vmul.f32 1.442695, %v1457_v42  ;;  %v1463_v44 = vmul.f32 1.442695, %v1458_v20 }
 0x48d   : > { %v1453_v7 = vpop.xlane.xlu0 %1452 }
 0x48e   : > { %2545 = vpow2.f32 %v1461_v43  ;;  %v1459_v47 = vsub.f32 %v1394_v33, %v1453_v7 }
 0x48f   : > { %2547 = vpow2.f32 %v1463_v44 }
 0x490   : > { %v1465_v50 = vmul.f32 1.442695, %v1459_v47 }
 0x491   : > { %v1456_v48 = vpop.xlane.xlu0 %1455 }
 0x492   : > { %v1460_v49 = vsub.f32 %v1440_v29, %v1456_v48  ;;  %2549 = vpow2.f32 %v1465_v50 }
 0x494   : > { %v1467_v51 = vmul.f32 1.442695, %v1460_v49 }
 0x496   : > { %2551 = vpow2.f32 %v1467_v51 }
 0x498   : > { %v3228_v40 = vpop.eup %2545 }
 0x499   : > { %v3230_v45 = vpop.eup %2547  ;;  %v1469_v41 = vsel %vm1260_vm2, %v3228_v40, 0.0 }
 0x49a   : > { %1470 = vadd.xlane.f32.xlu1 %v1469_v41  ;;  %v1472_v46 = vsel %vm1260_vm2, %v3230_v45, 0.0 }
 0x49b   : > { %1473 = vadd.xlane.f32.xlu0 %v1472_v46 }
 0x49c   : > { %v3239_v52 = vpop.eup %2549 }
 0x49d   : > { %v1475_v54 = vsel %vm1260_vm2, %v3239_v52, 0.0 }
 0x4a0   : > { %v3241_v53 = vpop.eup %2551 }
 0x4ab   : > { %948 = vrot.lane.b32.xlu1 %v3115_v13, %s2801_s18 }
 0x4af   : > { %950 = vrot.lane.b32.xlu1 %v3113_v12, %s2801_s18  ;;  %v1478_v12 = vsel %vm1260_vm2, %v3241_v53, 0.0 }
 0x4b1   : > { %946 = vrot.lane.b32.xlu0 %v3110_v11, %s2801_s18  ;;  %v945_v11 = vpop.permute.xlu1 %944  ;;  %s3354_s18 = scalar_lea.hbm %s3455_s24, %s2305_s20 }
 0x4d0   : > { %1476 = vadd.xlane.f32.xlu0 %v1475_v54 }
 0x4d3   : > { %1479 = vadd.xlane.f32.xlu1 %v1478_v12 }
 0x527   : > { %v1471_v13 = vpop.xlane.xlu1 %1470 }
 0x528   : > { %v1474_v55 = vpop.xlane.xlu0 %1473  ;;  %2553 = vrcp.f32 %v1471_v13 }
 0x529   : > { %2555 = vrcp.f32 %v1474_v55 }
 0x52b   : > { %v949_v56 = vpop.permute.xlu1 %948 }
 0x52c   : > { %v956_v57 = vcombine.low %v945_v11, %v949_v56  ;;  %v957_v59 = vcombine.high %v945_v11, %v949_v56  ;;  %v947_v60 = vpop.permute.xlu0 %946 }
 0x52e   : > { %v964_v1 = vrot.slane %v956_v57, %v3128_v25  ;;  %v971_v2 = vrot.slane %v957_v59, %v3128_v25 }
 0x52f   : > { %v951_v61 = vpop.permute.xlu1 %950 }
 0x530   : > { %v972_v62 = vcombine.low %v947_v60, %v951_v61  ;;  %v973_v63 = vcombine.high %v947_v60, %v951_v61  ;;  %v2533_v60 = vld [vmem:[#allocation5] sm:$0xff]  }
 0x532   : > { %v980_v4 = vrot.slane %v972_v62, %v3128_v25  ;;  %v987_v5 = vrot.slane %v973_v63, %v3128_v25  ;;  %v2554_v35 = vpop.eup %2553 }
 0x533   : > { %v2556_v30 = vpop.eup %2555  ;;  %v1485_v43 = vmul.f32 %v2554_v35, %v3228_v40 }
 0x534   : > { %v988_v6 = vcombine.low %v964_v1, %v980_v4  ;;  %v989_v8 = vcombine.high %v964_v1, %v980_v4  ;;  %v1004_v9 = vcombine.low %v971_v2, %v987_v5  ;;  %v1005_v10 = vcombine.high %v971_v2, %v987_v5 }
 0x535   : > { %v1486_v44 = vmul.f32 %v2556_v30, %v3230_v45  ;;  %v1489_v50 = vpack.c.bf16 %v1485_v43, %v1485_v43 }
 0x536   : > { %v996_v14 = vrot.slane %v988_v6, %v3141_v36  ;;  %v1003_v15 = vrot.slane %v989_v8, %v3141_v36  ;;  %v1012_v16 = vrot.slane %v1004_v9, %v3141_v36  ;;  %v1019_v17 = vrot.slane %v1005_v10, %v3141_v36 }
 0x537   : > { %v1490_v51 = vpack.c.bf16 %v1486_v44, %v1486_v44 }
 0x538   : > { %v1024_v18 = vcombine.low %v996_v14, %v1003_v15  ;;  %v2274_v19 = vcombine.high %v996_v14, %v1003_v15  ;;  %v1040_v21 = vcombine.low %v1012_v16, %v1019_v17  ;;  %v2275_v58 = vcombine.high %v1012_v16, %v1019_v17 }
 0x53a   : > { %v1031_v22 = vrot.slane %v1024_v18, %v3128_v25  ;;  %v1039_v23 = vrot.slane %v2274_v19, %v3128_v25  ;;  %v1047_v24 = vrot.slane %v1040_v21, %v3128_v25  ;;  %v1055_v26 = vrot.slane %v2275_v58, %v3128_v25 }
 0x53c   : > { %v1056_v27 = vcombine.low %v1031_v22, %v1039_v23  ;;  %v1057_v28 = vcombine.high %v1031_v22, %v1039_v23  ;;  %v1072_v31 = vcombine.low %v1047_v24, %v1055_v26  ;;  %v1073_v32 = vcombine.high %v1047_v24, %v1055_v26 }
 0x53e   : > { %v1064_v33 = vrot.slane %v1056_v27, %v3141_v36  ;;  %v1071_v34 = vrot.slane %v1057_v28, %v3141_v36  ;;  %v1080_v37 = vrot.slane %v1072_v31, %v3141_v36  ;;  %v1087_v29 = vrot.slane %v1073_v32, %v3141_v36  ;;  %v2534_v32 = vld [vmem:[#allocation5 + $0x8] sm:$0xff]  }
 0x540   : > { %v1088_v38 = vcombine.low %v1064_v33, %v1080_v37  ;;  %v1089_v39 = vcombine.high %v1064_v33, %v1080_v37  ;;  %v1090_v42 = vcombine.low %v1071_v34, %v1087_v29  ;;  %v1091_v20 = vcombine.high %v1071_v34, %v1087_v29 }
 0x542   : > { %v1493_v41 = vpack.c.bf16 %v1088_v38, %v1088_v38  ;;  %v1494_v46 = vpack.c.bf16 %v1089_v39, %v1089_v39  ;;  %v1495_v48 = vpack.c.bf16 %v1090_v42, %v1090_v42  ;;  %v1496_v49 = vpack.c.bf16 %v1091_v20, %v1091_v20 }
 0x544   : > { %v1502_v7 = vsel %vm1500_vm3, %v1493_v41, 0  ;;  %v1548_v47 = vsel %vm1500_vm3, %v1494_v46, 0  ;;  %v1594_v40 = vsel %vm1500_vm3, %v1495_v48, 0  ;;  %v1640_v45 = vsel %vm1500_vm3, %v1496_v49, 0 }
 0x545   : > { %2371 = vmatpush3.bf16.msra.mxu1 %v1502_v7  ;;  %2377 = vmatpush3.bf16.msra.mxu0 %v1548_v47 }
 0x546   : > { %2382 = vmatprep.subr.bf16.mxu1 %v2790_v0  ;;  %2388 = vmatprep.subr.bf16.mxu0 %v2790_v0 }
 0x548   : > { %2373 = vmatmul.mubr.msk.bf16.vlgmr.msra.gmra.mrb[8].mxu1 %vm1260_vm2, %v1489_v50  ;;  %2379 = vmatmul.mubr.msk.bf16.vlgmr.msra.gmra.mrb[12].mxu0 %vm1260_vm2, %v1490_v51 }
 0x549   : > { %2383 = vmatpush3.bf16.msra.mxu1 %v1594_v40  ;;  %2389 = vmatpush3.bf16.msra.mxu0 %v1640_v45 }
 0x54a   : > { %2384 = vmatprep.mubr.msk.bf16.mxu1 %vm2791_vm0, %v2790_v0  ;;  %2390 = vmatprep.mubr.msk.bf16.mxu0 %vm2791_vm0, %v2790_v0 }
 0x54b   : > { %2394 = vmatprep.subr.bf16.mxu1 %v2790_v0  ;;  %2402 = vmatprep.subr.bf16.mxu0 %v2790_v0 }
 0x55d   : > { %v1477_v54 = vpop.xlane.xlu0 %1476 }
 0x55e   : > { %2557 = vrcp.f32 %v1477_v54 }
 0x560   : > { %v1480_v12 = vpop.xlane.xlu1 %1479 }
 0x561   : > { %2559 = vrcp.f32 %v1480_v12 }
 0x568   : > { %v2558_v11 = vpop.eup %2557 }
 0x569   : > { %v1487_v13 = vmul.f32 %v2558_v11, %v3239_v52 }
 0x56b   : > { %v2560_v55 = vpop.eup %2559  ;;  %v1491_v56 = vpack.c.bf16 %v1487_v13, %v1487_v13 }
 0x56c   : > { %v1488_v57 = vmul.f32 %v2560_v55, %v3241_v53 }
 0x56d   : > { %2385 = vmatmul.mubr.msk.bf16.vlgmr.msra.gmra.mrb[12].mxu1 %vm1260_vm2, %v1491_v56 }
 0x56e   : > { %v1492_v59 = vpack.c.bf16 %v1488_v57, %v1488_v57  ;;  %2398 = vmatprep.mubr.msk.bf16.mxu1 %vm2791_vm0, %v2790_v0  ;;  %2395 = vmatpush3.bf16.msra.mxu1 %v2533_v60 }
 0x56f   : > { %2396 = vmatprep.subr.bf16.mxu1 %v2790_v0 }
 0x570   : > { %2391 = vmatmul.mubr.msk.bf16.vlgmr.msra.gmra.mrb[16].mxu0 %vm1260_vm2, %v1492_v59  ;;  %v2286_v59 = vld [vmem:[#allocation7] ss:$0 sm:$0xff] }
 0x571   : > { %2406 = vmatprep.mubr.msk.bf16.mxu0 %vm2791_vm0, %v2790_v0 }
 0x572   : > { %2397 = vmatpush3.bf16.msra.mxu1 %v2534_v32 }
 0x573   : > { %2410 = vmatprep.subr.bf16.mxu1 %v2790_v0 }
 0x61b   : > { %v1538_v52 = vpop.f32.mrb[8].mxu1  ;;  %v1584_v61 = vpop.f32.mrb[12].mxu0 }
 0x61c   : > { %v2374_v62 = vpop.f32.mrb[9].mxu1  ;;  %v2380_v63 = vpop.f32.mrb[13].mxu0 }
 0x61d   : > { %v1541_v53 = vpop.f32.mrb[10].mxu1  ;;  %v1587_v1 = vpop.f32.mrb[14].mxu0 }
 0x61e   : > { %v2375_v2 = vpop.f32.mrb[11].mxu1  ;;  %v2381_v4 = vpop.f32.mrb[15].mxu0 }
 0x640   : > { %v1630_v5 = vpop.f32.mrb[12].mxu1 }
 0x641   : > { %v1682_v6 = vcombine.low %v1538_v52, %v1630_v5  ;;  %v1683_v8 = vcombine.high %v1538_v52, %v1630_v5  ;;  %v2386_v9 = vpop.f32.mrb[13].mxu1 }
 0x642   : > { %v1633_v10 = vpop.f32.mrb[14].mxu1  ;;  %v2535_v9 = vld [vmem:[%s3406_s9] sm:$0xff]  }
 0x643   : > { %v2387_v14 = vpop.f32.mrb[15].mxu1  ;;  %v1676_v15 = vpop.f32.mrb[16].mxu0  ;;  %v1690_v21 = vrot.slane %v1682_v6, %v3128_v25  ;;  %v1697_v58 = vrot.slane %v1683_v8, %v3128_v25  ;;  %2403 = vmatpush3.bf16.msra.mxu0 %v2535_v9  ;;  %v2536_v10 = vld [vmem:[%s3406_s9 + $0x8] sm:$0xff]  }
 0x644   : > { %v1698_v16 = vcombine.low %v1584_v61, %v1676_v15  ;;  %v1699_v17 = vcombine.high %v1584_v61, %v1676_v15  ;;  %v2392_v18 = vpop.f32.mrb[17].mxu0  ;;  %2404 = vmatprep.subr.bf16.mxu0 %v2790_v0 }
 0x645   : > { %v1679_v19 = vpop.f32.mrb[18].mxu0 }
 0x646   : > { %v1706_v22 = vrot.slane %v1698_v16, %v3128_v25  ;;  %v1713_v23 = vrot.slane %v1699_v17, %v3128_v25  ;;  %v2393_v24 = vpop.f32.mrb[19].mxu0  ;;  %v2290_v17 = vld [vmem:[#allocation8] ss:$0 sm:$0xff]  ;;  %v2291_v19 = vld [vmem:[#allocation10] ss:$0 sm:$0xff] }
 0x647   : > { %2405 = vmatpush3.bf16.msra.mxu0 %v2536_v10  ;;  %v2538_v24 = vld [vmem:[%s3408_s11 + $0x8] sm:$0xff]  }
 0x648   : > { %v1714_v26 = vcombine.low %v1690_v21, %v1706_v22  ;;  %v1715_v27 = vcombine.high %v1690_v21, %v1706_v22  ;;  %v1730_v28 = vcombine.low %v1697_v58, %v1713_v23  ;;  %v1731_v31 = vcombine.high %v1697_v58, %v1713_v23  ;;  %v2537_v23 = vld [vmem:[%s3408_s11] sm:$0xff]  }
 0x64a   : > { %v1722_v33 = vrot.slane %v1714_v26, %v3141_v36  ;;  %v1729_v34 = vrot.slane %v1715_v27, %v3141_v36  ;;  %v1738_v35 = vrot.slane %v1730_v28, %v3141_v36  ;;  %v1745_v37 = vrot.slane %v1731_v31, %v3141_v36  ;;  %v2539_v26 = vld [vmem:[%s3408_s11 + $0x10] sm:$0xff]   ;;  %v2540_v27 = vld [vmem:[%s3408_s11 + $0x18] sm:$0xff]   ;;  %v2292_v28 = vld [vmem:[%s3407_s10] ss:$0 sm:$0xff] }
 0x64c   : > { %v1750_v29 = vcombine.low %v1722_v33, %v1729_v34  ;;  %v2284_v30 = vcombine.high %v1722_v33, %v1729_v34  ;;  %v1766_v38 = vcombine.low %v1738_v35, %v1745_v37  ;;  %v2285_v39 = vcombine.high %v1738_v35, %v1745_v37 }
 0x64e   : > { %v1757_v42 = vrot.slane %v1750_v29, %v3128_v25  ;;  %v1765_v20 = vrot.slane %v2284_v30, %v3128_v25  ;;  %v1773_v43 = vrot.slane %v1766_v38, %v3128_v25  ;;  %v1781_v44 = vrot.slane %v2285_v39, %v3128_v25 }
 0x650   : > { %v1783_v41 = vcombine.high %v1757_v42, %v1765_v20  ;;  %v1799_v46 = vcombine.high %v1773_v43, %v1781_v44  ;;  %v1782_v7 = vcombine.low %v1757_v42, %v1765_v20  ;;  %v1798_v47 = vcombine.low %v1773_v43, %v1781_v44 }
 0x652   : > { %v1797_v48 = vrot.slane %v1783_v41, %v3141_v36  ;;  %v1813_v49 = vrot.slane %v1799_v46, %v3141_v36  ;;  %v1790_v50 = vrot.slane %v1782_v7, %v3141_v36  ;;  %v1806_v51 = vrot.slane %v1798_v47, %v3141_v36  ;;  %v2296_v41 = vld [vmem:[%s3409_s12] ss:$0 sm:$0xff] }
 0x654   : > { %v1816_v40 = vcombine.low %v1797_v48, %v1813_v49  ;;  %v1815_v45 = vcombine.high %v1790_v50, %v1806_v51  ;;  %v1817_v54 = vcombine.high %v1797_v48, %v1813_v49  ;;  %v1814_v12 = vcombine.low %v1790_v50, %v1806_v51 }
 0x656   : > { %1823 = vrot.lane.b32.xlu1 %v1816_v40, %s2802_s14  ;;  %1819 = vrot.lane.b32.xlu0 %v1815_v45, %s2803_s5  ;;  %s3451_s5 = sld [smem:[#allocation17_spill]] }
 0x65a   : > { %1827 = vrot.lane.b32.xlu0 %v1817_v54, %s2804_s19 }
 0x65c   : > { %s550_s19 = sand.u32 1, %s3451_s5  }
 0x65d   : > { %s2261_s29 = sshll.u32 %s550_s19, 3  ;;  %s2125_s14 = scalar_lea.sflag [#allocation4], %s550_s19 }
 0x65e   : > { %s552_s15 = scalar_lea.vmem [#allocation11], %s2261_s29  ;;  %s2711_s29 = sshll.u32 %s2805_s22, 4  ;;  %s2712_s29 = int_to_ptr.vmem [resolvable:$false] %s2711_s29 }
 0x65f   : > { %s2138_s30 = sshll.u32 %s552_s15, 4  ;;  %s2713_s27 = scalar_lea.vmem %s2712_s29, 256  ;;  %s3356_s30 = int_to_ptr.vmem [resolvable:$true] %s2138_s30 }
 0x660   : > { %s2707_s5 = scalar_lea.vmem %s3356_s30, 128  ;;  %p2714_p6 = scmp.lt.s32.totalorder %s3356_s30, %s2712_s29 }
 0x661   : > { %p2708_p8 = scmp.ne.s32.totalorder %s3356_s30, %s2707_s5  ;;  %p2715_p9 = scmp.lt.s32.totalorder %s2713_s27, %s2707_s5 }
 0x663   : > { %p2709_p13 = pnand %p2708_p8, %p3456_p11  ;;  %p2716_p5 = por %p2715_p9, %p2714_p6 }
 0x665   : > { %p2710_p1 = pneg %p2709_p13 }
 0x667   : > { %p2717_p10 = pnand %p2716_p5, %p2710_p1 }
 0x6c8   : > { %v1820_v25 = vpop.permute.xlu0 %1819  ;;  %v1824_v11 = vpop.permute.xlu1 %1823 }
 0x6c9   : > { %v1830_v13 = vsel %vm1260_vm2, %v1814_v12, %v1820_v25 }
 0x6ca   : > { %v1832_v56 = vsel %vm1831_vm4, %v1830_v13, %v1824_v11 }
 0x6cc   : > { %v1828_v55 = vpop.permute.xlu0 %1827 }
 0x6cd   : > { %v1834_v57 = vsel %vm1833_vm5, %v1832_v56, %v1828_v55 }
 0x6ce   : > { %v1835_v36 = vpack.c.bf16 %v1834_v57, %v1834_v57  ;;  %v2302_v57 = vld [vmem:[%s3453_s17] ss:$0 sm:$0xff] }
 0x6d0   : > { %2399 = vmatmul.mubr.msk.bf16.vlgmr.msra.gmra.mrb[16].mxu1 %vm583_vm1, %v1835_v36 }
 0x6d1   : > { %2418 = vmatprep.mubr.msk.bf16.mxu1 %vm2791_vm0, %v2790_v0  ;;  %2411 = vmatpush3.bf16.msra.mxu1 %v2537_v23 }
 0x6d2   : > { %2412 = vmatprep.subr.bf16.mxu1 %v2790_v0 }
 0x6d5   : > { %2413 = vmatpush3.bf16.msra.mxu1 %v2538_v24 }
 0x6d6   : > { %2414 = vmatprep.subr.bf16.mxu1 %v2790_v0 }
 0x6d9   : > { %2415 = vmatpush3.bf16.msra.mxu1 %v2539_v26 }
 0x6da   : > { %2416 = vmatprep.subr.bf16.mxu1 %v2790_v0 }
 0x6dd   : > { %2417 = vmatpush3.bf16.msra.mxu1 %v2540_v27 }
 0x7a3   : > { %v1896_v60 = vpop.f32.mrb[16].mxu1 }
 0x7a4   : > { %v1897_v52 = vadd.f32 %v2286_v59, %v1896_v60  ;;  %v2400_v61 = vpop.f32.mrb[17].mxu1  ;;  %v2303_v59 = vld [vmem:[%s3454_s26] ss:$0 sm:$0xff] }
 0x7a5   : > { %v1899_v62 = vpop.f32.mrb[18].mxu1 }
 0x7a6   : > { %v2401_v63 = vpop.f32.mrb[19].mxu1  ;;  %v1902_v53 = vadd.f32 %v1897_v52, %v3092_v3 }
 0x7a8   : > { %v1903_v1 = vsel %vm583_vm1, %v1902_v53, 0.0 }
 0x7a9   : > { %1904 = vadd.xlane.f32.xlu1 %v1903_v1 }
 0x836   : > { %v1905_v2 = vpop.xlane.xlu1 %1904 }
 0x837   : > { %v1907_v4 = vmul.f32 0.03125, %v1905_v2 }
 0x839   : > { %v1908_v5 = vsub.f32 %v1902_v53, %v1907_v4 }
 0x83b   : > { %v1909_v6 = vmul.f32 %v1908_v5, %v1908_v5 }
 0x83d   : > { %v1910_v8 = vsel %vm583_vm1, %v1909_v6, 0.0 }
 0x83e   : > { %1911 = vadd.xlane.f32.xlu0 %v1910_v8 }
 0x8cb   : > { %v1912_v3 = vpop.xlane.xlu0 %1911 }
 0x8cc   : > { %v1913_v14 = vmul.f32 0.03125, %v1912_v3 }
 0x8ce   : > { %v1914_v15 = vadd.f32 1e-05, %v1913_v14 }
 0x8d0   : > { %2561 = vrsqrt.f32 %v1914_v15 }
 0x8da   : > { %v2562_v16 = vpop.eup %2561 }
 0x8db   : > { %v1916_v18 = vmul.f32 %v2562_v16, %v1908_v5 }
 0x8dd   : > { %v1924_v21 = vmul.f32 %v2290_v17, %v1916_v18 }
 0x8df   : > { %v1932_v58 = vadd.f32 %v2291_v19, %v1924_v21 }
 0x8e1   : > { %v1933_v22 = vpack.c.bf16 %v1932_v58, %v1932_v58 }
 0x8e3   : > { %2407 = vmatmul.mubr.msk.bf16.vlgmr.msra.gmra.mrb[20].mxu0 %vm583_vm1, %v1933_v22 }
 0x9b6   : > { %v1994_v31 = vpop.f32.mrb[20].mxu0 }
 0x9b7   : > { %v1995_v32 = vadd.f32 %v2292_v28, %v1994_v31  ;;  %v2408_v33 = vpop.f32.mrb[21].mxu0 }
 0x9b8   : > { %v1997_v34 = vpop.f32.mrb[22].mxu0 }
 0x9b9   : > { %v2000_v35 = vmul.f32 %v1995_v32, %v1995_v32  ;;  %v2409_v37 = vpop.f32.mrb[23].mxu0 }
 0x9bb   : > { %v2001_v29 = vmul.f32 %v2000_v35, %v1995_v32 }
 0x9bd   : > { %v2002_v30 = vmul.f32 0.044715, %v2001_v29 }
 0x9bf   : > { %v2003_v38 = vadd.f32 %v2002_v30, %v1995_v32 }
 0x9c1   : > { %v2004_v39 = vmul.f32 0.7978846, %v2003_v38 }
 0x9c3   : > { %2563 = vtanh.f32 %v2004_v39 }
 0x9cd   : > { %v2564_v0 = vpop.eup %2563 }
 0x9ce   : > { %v2006_v42 = vadd.f32 1.0, %v2564_v0 }
 0x9d0   : > { %v2007_v20 = vmul.f32 0.5, %v2006_v42 }
 0x9d2   : > { %v2008_v43 = vmul.f32 %v2007_v20, %v1995_v32 }
 0x9d4   : > { %v2009_v44 = vpack.c.bf16 %v2008_v43, %v2008_v43 }
 0x9d6   : > { %2419 = vmatmul.mubr.msk.bf16.vlgmr.msra.gmra.mrb[20].mxu1 %vm2049_vm6, %v2009_v44 }
 0xaa9   : > { %v2087_v46 = vpop.f32.mrb[20].mxu1 }
 0xaaa   : > { %v2088_v7 = vadd.f32 %v2296_v41, %v2087_v46  ;;  %v2420_v47 = vpop.f32.mrb[21].mxu1 }
 0xaab   : > { %v2090_v48 = vpop.f32.mrb[22].mxu1 }
 0xaac   : > { %v2421_v49 = vpop.f32.mrb[23].mxu1  ;;  %v2093_v50 = vadd.f32 %v2088_v7, %v1932_v58 }
 0xaae   : > { %v2094_v51 = vsel %vm583_vm1, %v2093_v50, 0.0 }
 0xaaf   : > { %2095 = vadd.xlane.f32.xlu0 %v2094_v51 }
 0xb3c   : > { %v2096_v40 = vpop.xlane.xlu0 %2095 }
 0xb3d   : > { %v2097_v45 = vmul.f32 0.03125, %v2096_v40 }
 0xb3f   : > { %v2098_v54 = vsub.f32 %v2093_v50, %v2097_v45 }
 0xb41   : > { %v2099_v12 = vmul.f32 %v2098_v54, %v2098_v54 }
 0xb43   : > { %v2100_v25 = vsel %vm583_vm1, %v2099_v12, 0.0 }
 0xb44   : > { %2101 = vadd.xlane.f32.xlu1 %v2100_v25 }
 0xbd1   : > { %v2102_v11 = vpop.xlane.xlu1 %2101 }
 0xbd2   : > { %v2103_v13 = vmul.f32 0.03125, %v2102_v11 }
 0xbd4   : > { %v2104_v55 = vadd.f32 1e-05, %v2103_v13 }
 0xbd6   : > { %2565 = vrsqrt.f32 %v2104_v55 }
 0xbe0   : > { %v2566_v56 = vpop.eup %2565 }
 0xbe1   : > { %v2106_v36 = vmul.f32 %v2566_v56, %v2098_v54 }
 0xbe3   : > { %v2114_v60 = vmul.f32 %v2302_v57, %v2106_v36 }
 0xbe5   : > { %v2122_v52 = vadd.f32 %v2303_v59, %v2114_v60 }
 0xbe7   : > { %2123 = vst.msk [vmem:[%s552_s15] sm:$0xff] %vm583_vm1, %v2122_v52 }
 0xbe8   : > { %2720 = shalt.err (!%p2717_p10)
}
 0xbe9   : > { %s2721_s19 = scalar_lea.hbm %s3354_s18, 128  ;;  %s2725_s13 = scalar_lea.hbm %s3455_s24, 256 }
 0xbea   : > { %p2722_p0 = scmp.ne.s32.totalorder %s3354_s18, %s2721_s19  ;;  %p2726_p4 = scmp.lt.u32.totalorder %s3354_s18, %s3455_s24 }
 0xbeb   : > { %p2727_p12 = scmp.lt.u32.totalorder %s2725_s13, %s2721_s19  ;;  %p2729_p8 = scmp.lt.u32.totalorder %s2721_s19, %s3354_s18 }
 0xbec   : > { %p2723_p2 = pnand %p2722_p0, %p3456_p11 }
 0xbed   : > { %p2728_p7 = por %p2727_p12, %p2726_p4 }
 0xbee   : > { %p2724_p3 = pneg %p2723_p2 }
 0xbef   : > { %p2730_p13 = por %p2729_p8, %p2728_p7 }
 0xbf1   : > { %p2731_p1 = pnand %p2730_p13, %p2724_p3 }
 0xbf3   : > { %2734 = shalt.err (!%p2731_p1)
}
 0xbf4   : > { %2442 = dma.vmem_to_hbm [thread:$0]  (%p3456_p11), %s3356_s30, 128, %s3354_s18, %s2125_s14  }
 0xbf5 PF: > { %s3457_s20 = sld [smem:[#allocation19_spill]]  ;;  %s3458_s15 = sld [smem:[#allocation16_spill]] }
 0xbf6   : > { %s3459_s23 = sld [smem:[#allocation23_spill]] }
 0xbfb   : > { %p2474_p6 = scmp.ge.s32.totalorder %s3457_s20, 2  ;;  %s2150_s16 = sand.u32 1, %s3458_s15  }
 0xbfc   : > { %p3460_p9 = scmp.ne.s32.totalorder %s3459_s23, 0  ;;  %s2151_s5 = scalar_lea.sflag [#allocation4], %s2150_s16 }
 0xbfe   : > { %p2461_p5 = pnand %p2474_p6, %p3460_p9 }
 0xc00   : > { %2764 = dma.done.wait (!%p2461_p5), %s2151_s5, 128  }
 0xc01   : > { %2766 = vsyncadd (!%p2461_p5), %s2151_s5, 4294967168  ;;  %s3461_s21 = sld [smem:[#allocation20_spill]]  ;;  %s3462_s18 = sld [smem:[#allocation17_spill]] }
 0xc02   : > { %s3463_s19 = sld [smem:[#allocation18_spill]]  ;;  %s3464_s20 = sld [smem:[#allocation21_spill]] }
 0xc07   : > { %p28_p10 = scmp.ge.s32.totalorder %s3461_s21, 4  }
 0xc09   :  { %30 = sbr.rel (!%p28_p10) target bundleno = 11 (0xb), region = 136 }
 0xc10   :  { %2156 = vsyncpa [#allocation3], 1 }
 0xc11   :  { %2158 = vsyncpa [#allocation3 + $0x1], 1 }
 0xc12   :  { %2159 = vsyncpa [#allocation6], 1 }
 0xc13   :  { %2160 = vsyncpa [#allocation9], 1 }
 0xc14   :  { %2161 = vsyncpa [#allocation4], 1 }
 0xc15   :  { %2163 = vsyncpa [#allocation4 + $0x1], 1 }

</bundles_post_ra>
